<compile_context>
chip_gen: v5e
topology: v5e:2x2
jax: 0.10.0
libtpu: 0.0.40
codegen_flags: <defaults>
</compile_context>

<pallas_src>
import functools

import jax
import jax.numpy as jnp
from jax.experimental import pallas as pl
from jax.experimental.pallas import tpu as pltpu

EPS = 1e-5
LANE = 128     # TPU lane width; only the bottleneck mid channels are padded
W_OFF = 16     # bf16-sublane-aligned start column of the interior in pad_ref


def _round_up(v, m):
    return ((v + m - 1) // m) * m


def _pad_to(a, shape):
    return jnp.pad(a, [(0, t - s) for s, t in zip(a.shape, shape)])


@functools.lru_cache(maxsize=None)
def _vmem_limit_bytes():
    # ~3/4 of physical VMEM: ~96 MiB on v5e/v6e (128 MiB), ~48 MiB on v7x (64 MiB).
    try:
        info = pltpu.get_tpu_info()
        phys = getattr(info, "vmem_capacity_bytes", None)
        if phys:
            return max(32 * 1024 * 1024, int(phys) * 3 // 4)
    except Exception:
        pass
    return 48 * 1024 * 1024


def bottleneck_kernel(x_ref, w1_ref, s1_ref, b1_ref,
                      w2_ref, s2_ref, b2_ref,
                      w3_ref, s3_ref, b3_ref,
                      o_ref, pad_ref):
    # x_ref/o_ref : (Bt, H, W, C) f32   (C = real in/out channels, unpadded)
    # w1_ref      : (C, CM)  bf16       (CM = mid channels padded to 128)
    # w2_ref      : (9, CM, CM) bf16    (3x3 HWIO weight, one tap per k)
    # w3_ref      : (CM, C)  bf16
    # s*/b*       : (1, ch) f32 folded BatchNorm scale / bias
    # pad_ref     : (Bt, H+2, 2*W_OFF+W, CM) bf16 scratch (zero halo slabs)
    Bt, H, W, Cin = x_ref.shape
    CM = w1_ref.shape[1]
    Cout = w3_ref.shape[1]
    M = Bt * H * W
    PW = pad_ref.shape[2]

    x = x_ref[...]                                   # f32, kept for residual
    x2 = x.reshape(M, Cin)

    # scale / bias read once (hoisted broadcasts)
    s1, b1 = s1_ref[...], b1_ref[...]
    s2, b2 = s2_ref[...], b2_ref[...]
    s3, b3 = s3_ref[...], b3_ref[...]

    # ---- conv1 (1x1) + bn1 + relu : bf16 MXU, f32 accumulate -------------
    y1 = jnp.dot(x2.astype(jnp.bfloat16), w1_ref[...],
                 preferred_element_type=jnp.float32)
    y1 = jnp.maximum(y1 * s1 + b1, 0.0)              # (M, CM) f32

    # ---- conv2 (3x3, stride=1, pad=1) + bn2 + relu -----------------------
    # Re-zero only the halo each step (scratch is uninitialized and, with a
    # "parallel" batch axis, each TensorCore owns its own copy, so gating on
    # program_id(0)==0 would be unsafe).  Halo slabs are 16-wide and start at
    # bf16-sublane-aligned offsets -> dense stores, never read past column 1.
    zrow = jnp.zeros((Bt, 1, PW, CM), jnp.bfloat16)
    zcol = jnp.zeros((Bt, H, W_OFF, CM), jnp.bfloat16)
    pad_ref[:, 0:1, :, :] = zrow
    pad_ref[:, H + 1:H + 2, :, :] = zrow
    pad_ref[:, 1:H + 1, 0:W_OFF, :] = zcol
    pad_ref[:, 1:H + 1, W_OFF + W:W_OFF + W + W_OFF, :] = zcol
    # interior write starts at sublane offset W_OFF=16 -> aligned bf16 store
    pad_ref[:, 1:H + 1, W_OFF:W_OFF + W, :] = (
        y1.reshape(Bt, H, W, CM).astype(jnp.bfloat16))

    # 9 accumulated (M, CM) x (CM, CM) matmuls; taps read directly from the
    # bf16 pad scratch, f32 register accumulator (no im2col materialization).
    y2 = jnp.zeros((M, CM), jnp.float32)
    for kh in range(3):
        for kw in range(3):
            tap = pad_ref[:, kh:kh + H, W_OFF - 1 + kw:W_OFF - 1 + kw + W, :]
            y2 = y2 + jnp.dot(tap.reshape(M, CM), w2_ref[kh * 3 + kw],
                              preferred_element_type=jnp.float32)
    y2 = jnp.maximum(y2 * s2 + b2, 0.0)              # (M, CM) f32

    # ---- conv3 (1x1) + bn3, residual add, relu ---------------------------
    y3 = jnp.dot(y2.astype(jnp.bfloat16), w3_ref[...],
                 preferred_element_type=jnp.float32)
    y3 = y3 * s3 + b3
    o_ref[...] = jnp.maximum(y3 + x2, 0.0).reshape(Bt, H, W, Cout)


@functools.partial(jax.jit, static_argnames=("batch_tile",))
def bottleneck_pallas(x_nchw, w1, s1, b1, w2, s2, b2, w3, s3, b3,
                      *, batch_tile=1):
    N, Cin, H, W = x_nchw.shape
    Cm = w1.shape[1]
    Cout = w3.shape[1]
    assert Cin == Cout, "identity residual requires inplanes == 4*outplanes"
    assert N % batch_tile == 0
    Bt = batch_tile
    CM = _round_up(Cm, LANE)         # padded bottleneck (mid) channels

    # NCHW -> NHWC (required by the module's NCHW API; a production NHWC
    # pipeline would drop this pass).  Channels are NOT padded in HBM.
    x = jnp.transpose(x_nchw, (0, 2, 3, 1))

    # Weights: pad only the tiny mid-channel dims to the lane width and
    # pre-cast to bf16 (native MXU dtype); 3x3 weight laid out (9, CM, CM).
    w1p = _pad_to(w1, (Cin, CM)).astype(jnp.bfloat16)
    w2p = _pad_to(w2, (3, 3, CM, CM)).reshape(9, CM, CM).astype(jnp.bfloat16)
    w3p = _pad_to(w3, (CM, Cout)).astype(jnp.bfloat16)
    s1p, b1p = _pad_to(s1, (1, CM)), _pad_to(b1, (1, CM))
    s2p, b2p = _pad_to(s2, (1, CM)), _pad_to(b2, (1, CM))
    s3p, b3p = s3, b3                                  # (1, Cout) unpadded

    out = pl.pallas_call(
        bottleneck_kernel,
        out_shape=jax.ShapeDtypeStruct((N, H, W, Cout), jnp.float32),
        grid_spec=pltpu.PrefetchScalarGridSpec(
            num_scalar_prefetch=0,
            grid=(N // Bt,),
            in_specs=[
                pl.BlockSpec((Bt, H, W, Cin), lambda n: (n, 0, 0, 0)),
                pl.BlockSpec((Cin, CM), lambda n: (0, 0)),
                pl.BlockSpec((1, CM), lambda n: (0, 0)),
                pl.BlockSpec((1, CM), lambda n: (0, 0)),
                pl.BlockSpec((9, CM, CM), lambda n: (0, 0, 0)),
                pl.BlockSpec((1, CM), lambda n: (0, 0)),
                pl.BlockSpec((1, CM), lambda n: (0, 0)),
                pl.BlockSpec((CM, Cout), lambda n: (0, 0)),
                pl.BlockSpec((1, Cout), lambda n: (0, 0)),
                pl.BlockSpec((1, Cout), lambda n: (0, 0)),
            ],
            out_specs=pl.BlockSpec((Bt, H, W, Cout), lambda n: (n, 0, 0, 0)),
            scratch_shapes=[
                pltpu.VMEM((Bt, H + 2, 2 * W_OFF + W, CM), jnp.bfloat16),
            ],
        ),
        compiler_params=pltpu.CompilerParams(
            dimension_semantics=("parallel",),
            vmem_limit_bytes=_vmem_limit_bytes()),
    )(x, w1p, s1p, b1p, w2p, s2p, b2p, w3p, s3p, b3p)

    return jnp.transpose(out, (0, 3, 1, 2))            # NHWC -> NCHW


def fold_bn(gamma, beta, mean, var):
    scale = gamma / jnp.sqrt(var + EPS)
    bias = beta - mean * scale
    return scale[None, :], bias[None, :]               # (1, C)


def reference(x_nchw, w1, s1, b1, w2, s2, b2, w3, s3, b3):
    # Pure-JAX reference mirroring the kernel's bf16-MXU / f32-accumulate
    # precision path (eval-mode folded BN), NHWC internally.
    x = jnp.transpose(x_nchw, (0, 2, 3, 1))
    y = jnp.einsum('nhwc,cd->nhwd', x.astype(jnp.bfloat16),
                   w1.astype(jnp.bfloat16),
                   preferred_element_type=jnp.float32)
    y = jnp.maximum(y * s1 + b1, 0.0)
    y = jax.lax.conv_general_dilated(
        y.astype(jnp.bfloat16), w2.astype(jnp.bfloat16),
        window_strides=(1, 1), padding='SAME',
        dimension_numbers=('NHWC', 'HWIO', 'NHWC'),
        preferred_element_type=jnp.float32)
    y = jnp.maximum(y * s2 + b2, 0.0)
    y = jnp.einsum('nhwc,cd->nhwd', y.astype(jnp.bfloat16),
                   w3.astype(jnp.bfloat16),
                   preferred_element_type=jnp.float32)
    y = y * s3 + b3
    y = jnp.maximum(y + x, 0.0)
    return jnp.transpose(y, (0, 3, 1, 2))


if __name__ == "__main__":
    # Bottleneck(inplanes=32, outplanes=8, stride=1, downsample=None)
    # expansion=4 -> output channels = 32 == inplanes (identity residual).
    N, H, W = 2, 16, 16
    outplanes = 8
    inplanes = outplanes * 4      # 32

    key = jax.random.PRNGKey(0)
    keys = jax.random.split(key, 16)

    x = jax.random.normal(keys[0], (N, inplanes, H, W), jnp.float32)

    w1 = 0.1 * jax.random.normal(keys[1], (inplanes, outplanes), jnp.float32)
    w2 = 0.1 * jax.random.normal(keys[2], (3, 3, outplanes, outplanes), jnp.float32)
    w3 = 0.1 * jax.random.normal(keys[3], (outplanes, inplanes), jnp.float32)

    def bn_params(kg, kb, km, kv, c):
        gamma = 1.0 + 0.1 * jax.random.normal(kg, (c,), jnp.float32)
        beta = 0.1 * jax.random.normal(kb, (c,), jnp.float32)
        mean = 0.1 * jax.random.normal(km, (c,), jnp.float32)
        var = jnp.abs(1.0 + 0.1 * jax.random.normal(kv, (c,), jnp.float32))
        return fold_bn(gamma, beta, mean, var)

    s1, b1 = bn_params(keys[4], keys[5], keys[6], keys[7], outplanes)
    s2, b2 = bn_params(keys[8], keys[9], keys[10], keys[11], outplanes)
    s3, b3 = bn_params(keys[12], keys[13], keys[14], keys[15], inplanes)

    out = bottleneck_pallas(x, w1, s1, b1, w2, s2, b2, w3, s3, b3,
                            batch_tile=1)
    out = jax.block_until_ready(out)

    ref = reference(x, w1, s1, b1, w2, s2, b2, w3, s3, b3)
    assert out.shape == (N, inplanes, H, W)
    # bf16-MXU path on both sides; 1e-2 covers accumulation-order differences
    # while still catching any structural bug (those show up at O(0.1-1)).
    max_err = float(jnp.max(jnp.abs(out - ref)))
    assert jnp.allclose(out, ref, atol=1e-2, rtol=1e-2), max_err

    print("KERNEL_OK")
</pallas_src>

<mosaic_0001>
module attributes {stable_mosaic.version = 11 : i64} {
  func.func @bottleneck_kernel(%arg0: i32, %arg1: memref<1x16x16x32xf32, #tpu.memory_space<vmem>>, %arg2: memref<32x128xbf16, #tpu.memory_space<vmem>>, %arg3: memref<1x128xf32, #tpu.memory_space<vmem>>, %arg4: memref<1x128xf32, #tpu.memory_space<vmem>>, %arg5: memref<9x128x128xbf16, #tpu.memory_space<vmem>>, %arg6: memref<1x128xf32, #tpu.memory_space<vmem>>, %arg7: memref<1x128xf32, #tpu.memory_space<vmem>>, %arg8: memref<128x32xbf16, #tpu.memory_space<vmem>>, %arg9: memref<1x32xf32, #tpu.memory_space<vmem>>, %arg10: memref<1x32xf32, #tpu.memory_space<vmem>>, %arg11: memref<1x16x16x32xf32, #tpu.memory_space<vmem>>, %arg12: memref<1x18x48x128xbf16, #tpu.memory_space<vmem>>) attributes {dimension_semantics = [#tpu.dimension_semantics<parallel>], iteration_bounds = array<i64: 2>, scalar_prefetch = 0 : i64, scratch_operands = 1 : i64, tpu.core_type = #tpu.core_type<tc>, window_params = [{transform_indices = @transform_0, window_bounds = array<i64: 1, 16, 16, 32>}, {pipeline_mode = #tpu.pipeline_mode<synchronous>, transform_indices = @transform_1, window_bounds = array<i64: 32, 128>}, {pipeline_mode = #tpu.pipeline_mode<synchronous>, transform_indices = @transform_2, window_bounds = array<i64: 1, 128>}, {pipeline_mode = #tpu.pipeline_mode<synchronous>, transform_indices = @transform_3, window_bounds = array<i64: 1, 128>}, {pipeline_mode = #tpu.pipeline_mode<synchronous>, transform_indices = @transform_4, window_bounds = array<i64: 9, 128, 128>}, {pipeline_mode = #tpu.pipeline_mode<synchronous>, transform_indices = @transform_5, window_bounds = array<i64: 1, 128>}, {pipeline_mode = #tpu.pipeline_mode<synchronous>, transform_indices = @transform_6, window_bounds = array<i64: 1, 128>}, {pipeline_mode = #tpu.pipeline_mode<synchronous>, transform_indices = @transform_7, window_bounds = array<i64: 128, 32>}, {pipeline_mode = #tpu.pipeline_mode<synchronous>, transform_indices = @transform_8, window_bounds = array<i64: 1, 32>}, {pipeline_mode = #tpu.pipeline_mode<synchronous>, transform_indices = @transform_9, window_bounds = array<i64: 1, 32>}, {transform_indices = @transform_10, window_bounds = array<i64: 1, 16, 16, 32>}]} {
    %c0 = arith.constant 0 : index
    %c0_0 = arith.constant 0 : index
    %c0_1 = arith.constant 0 : index
    %c0_2 = arith.constant 0 : index
    %0 = vector.load %arg1[%c0, %c0_0, %c0_1, %c0_2] : memref<1x16x16x32xf32, #tpu.memory_space<vmem>>, vector<1x16x16x32xf32>
    %1 = vector.shape_cast %0 : vector<1x16x16x32xf32> to vector<256x32xf32>
    %c0_3 = arith.constant 0 : index
    %c0_4 = arith.constant 0 : index
    %2 = vector.load %arg3[%c0_3, %c0_4] : memref<1x128xf32, #tpu.memory_space<vmem>>, vector<1x128xf32>
    %c0_5 = arith.constant 0 : index
    %c0_6 = arith.constant 0 : index
    %3 = vector.load %arg4[%c0_5, %c0_6] : memref<1x128xf32, #tpu.memory_space<vmem>>, vector<1x128xf32>
    %c0_7 = arith.constant 0 : index
    %c0_8 = arith.constant 0 : index
    %4 = vector.load %arg6[%c0_7, %c0_8] : memref<1x128xf32, #tpu.memory_space<vmem>>, vector<1x128xf32>
    %c0_9 = arith.constant 0 : index
    %c0_10 = arith.constant 0 : index
    %5 = vector.load %arg7[%c0_9, %c0_10] : memref<1x128xf32, #tpu.memory_space<vmem>>, vector<1x128xf32>
    %c0_11 = arith.constant 0 : index
    %c0_12 = arith.constant 0 : index
    %6 = vector.load %arg9[%c0_11, %c0_12] : memref<1x32xf32, #tpu.memory_space<vmem>>, vector<1x32xf32>
    %c0_13 = arith.constant 0 : index
    %c0_14 = arith.constant 0 : index
    %7 = vector.load %arg10[%c0_13, %c0_14] : memref<1x32xf32, #tpu.memory_space<vmem>>, vector<1x32xf32>
    %8 = arith.truncf %1 : vector<256x32xf32> to vector<256x32xbf16>
    %c0_15 = arith.constant 0 : index
    %c0_16 = arith.constant 0 : index
    %9 = vector.load %arg2[%c0_15, %c0_16] : memref<32x128xbf16, #tpu.memory_space<vmem>>, vector<32x128xbf16>
    %cst = arith.constant dense<0.000000e+00> : vector<256x128xf32>
    %10 = tpu.matmul %8, %9, %cst {dimension_numbers = #tpu.dot_dimension_numbers<[1], [0], [0], [1], [0, 0, 1, 1], [], []>} : vector<256x32xbf16>, vector<32x128xbf16>, vector<256x128xf32> -> vector<256x128xf32>
    %11 = vector.broadcast %2 : vector<1x128xf32> to vector<256x128xf32>
    %12 = arith.mulf %10, %11 : vector<256x128xf32>
    %13 = vector.broadcast %3 : vector<1x128xf32> to vector<256x128xf32>
    %14 = arith.addf %12, %13 : vector<256x128xf32>
    %cst_17 = arith.constant 0.000000e+00 : f32
    %15 = vector.broadcast %cst_17 : f32 to vector<256x128xf32>
    %16 = arith.maximumf %14, %15 : vector<256x128xf32>
    %cst_18 = arith.constant 0.000000e+00 : bf16
    %17 = vector.broadcast %cst_18 : bf16 to vector<1x1x48x128xbf16>
    %cst_19 = arith.constant 0.000000e+00 : bf16
    %18 = vector.broadcast %cst_19 : bf16 to vector<1x16x16x128xbf16>
    %c0_20 = arith.constant 0 : index
    %c0_21 = arith.constant 0 : index
    %c0_22 = arith.constant 0 : index
    %c0_23 = arith.constant 0 : index
    %19 = vector.load %arg12[%c0_20, %c0_21, %c0_22, %c0_23] : memref<1x18x48x128xbf16, #tpu.memory_space<vmem>>, vector<1x1x48x128xbf16>
    tpu.vector_store %arg12[%c0_20, %c0_21, %c0_22, %c0_23], %17 {strides = array<i32>} : memref<1x18x48x128xbf16, #tpu.memory_space<vmem>>, vector<1x1x48x128xbf16>,
    %c0_24 = arith.constant 0 : index
    %c17 = arith.constant 17 : index
    %c0_25 = arith.constant 0 : index
    %c0_26 = arith.constant 0 : index
    %20 = vector.load %arg12[%c0_24, %c17, %c0_25, %c0_26] : memref<1x18x48x128xbf16, #tpu.memory_space<vmem>>, vector<1x1x48x128xbf16>
    tpu.vector_store %arg12[%c0_24, %c17, %c0_25, %c0_26], %17 {strides = array<i32>} : memref<1x18x48x128xbf16, #tpu.memory_space<vmem>>, vector<1x1x48x128xbf16>,
    %c0_27 = arith.constant 0 : index
    %c1 = arith.constant 1 : index
    %c0_28 = arith.constant 0 : index
    %c0_29 = arith.constant 0 : index
    %21 = vector.load %arg12[%c0_27, %c1, %c0_28, %c0_29] : memref<1x18x48x128xbf16, #tpu.memory_space<vmem>>, vector<1x16x16x128xbf16>
    tpu.vector_store %arg12[%c0_27, %c1, %c0_28, %c0_29], %18 {strides = array<i32>} : memref<1x18x48x128xbf16, #tpu.memory_space<vmem>>, vector<1x16x16x128xbf16>,
    %c0_30 = arith.constant 0 : index
    %c1_31 = arith.constant 1 : index
    %c32 = arith.constant 32 : index
    %c0_32 = arith.constant 0 : index
    %22 = vector.load %arg12[%c0_30, %c1_31, %c32, %c0_32] : memref<1x18x48x128xbf16, #tpu.memory_space<vmem>>, vector<1x16x16x128xbf16>
    tpu.vector_store %arg12[%c0_30, %c1_31, %c32, %c0_32], %18 {strides = array<i32>} : memref<1x18x48x128xbf16, #tpu.memory_space<vmem>>, vector<1x16x16x128xbf16>,
    %23 = vector.shape_cast %16 : vector<256x128xf32> to vector<1x16x16x128xf32>
    %24 = arith.truncf %23 : vector<1x16x16x128xf32> to vector<1x16x16x128xbf16>
    %c0_33 = arith.constant 0 : index
    %c1_34 = arith.constant 1 : index
    %c16 = arith.constant 16 : index
    %c0_35 = arith.constant 0 : index
    %25 = vector.load %arg12[%c0_33, %c1_34, %c16, %c0_35] : memref<1x18x48x128xbf16, #tpu.memory_space<vmem>>, vector<1x16x16x128xbf16>
    tpu.vector_store %arg12[%c0_33, %c1_34, %c16, %c0_35], %24 {strides = array<i32>} : memref<1x18x48x128xbf16, #tpu.memory_space<vmem>>, vector<1x16x16x128xbf16>,
    %cst_36 = arith.constant 0.000000e+00 : f32
    %26 = vector.broadcast %cst_36 : f32 to vector<256x128xf32>
    %c0_37 = arith.constant 0 : index
    %c0_38 = arith.constant 0 : index
    %c15 = arith.constant 15 : index
    %c0_39 = arith.constant 0 : index
    %27 = vector.load %arg12[%c0_37, %c0_38, %c15, %c0_39] : memref<1x18x48x128xbf16, #tpu.memory_space<vmem>>, vector<1x16x16x128xbf16>
    %28 = vector.shape_cast %27 : vector<1x16x16x128xbf16> to vector<256x128xbf16>
    %c0_40 = arith.constant 0 : index
    %c0_41 = arith.constant 0 : index
    %c0_42 = arith.constant 0 : index
    %29 = vector.load %arg5[%c0_40, %c0_41, %c0_42] : memref<9x128x128xbf16, #tpu.memory_space<vmem>>, vector<1x128x128xbf16>
    %30 = vector.shape_cast %29 : vector<1x128x128xbf16> to vector<128x128xbf16>
    %cst_43 = arith.constant dense<0.000000e+00> : vector<256x128xf32>
    %31 = tpu.matmul %28, %30, %cst_43 {dimension_numbers = #tpu.dot_dimension_numbers<[1], [0], [0], [1], [0, 0, 1, 1], [], []>} : vector<256x128xbf16>, vector<128x128xbf16>, vector<256x128xf32> -> vector<256x128xf32>
    %32 = arith.addf %26, %31 : vector<256x128xf32>
    %c0_44 = arith.constant 0 : index
    %c0_45 = arith.constant 0 : index
    %c16_46 = arith.constant 16 : index
    %c0_47 = arith.constant 0 : index
    %33 = vector.load %arg12[%c0_44, %c0_45, %c16_46, %c0_47] : memref<1x18x48x128xbf16, #tpu.memory_space<vmem>>, vector<1x16x16x128xbf16>
    %34 = vector.shape_cast %33 : vector<1x16x16x128xbf16> to vector<256x128xbf16>
    %c1_48 = arith.constant 1 : index
    %c0_49 = arith.constant 0 : index
    %c0_50 = arith.constant 0 : index
    %35 = vector.load %arg5[%c1_48, %c0_49, %c0_50] : memref<9x128x128xbf16, #tpu.memory_space<vmem>>, vector<1x128x128xbf16>
    %36 = vector.shape_cast %35 : vector<1x128x128xbf16> to vector<128x128xbf16>
    %cst_51 = arith.constant dense<0.000000e+00> : vector<256x128xf32>
    %37 = tpu.matmul %34, %36, %cst_51 {dimension_numbers = #tpu.dot_dimension_numbers<[1], [0], [0], [1], [0, 0, 1, 1], [], []>} : vector<256x128xbf16>, vector<128x128xbf16>, vector<256x128xf32> -> vector<256x128xf32>
    %38 = arith.addf %32, %37 : vector<256x128xf32>
    %c0_52 = arith.constant 0 : index
    %c0_53 = arith.constant 0 : index
    %c17_54 = arith.constant 17 : index
    %c0_55 = arith.constant 0 : index
    %39 = vector.load %arg12[%c0_52, %c0_53, %c17_54, %c0_55] : memref<1x18x48x128xbf16, #tpu.memory_space<vmem>>, vector<1x16x16x128xbf16>
    %40 = vector.shape_cast %39 : vector<1x16x16x128xbf16> to vector<256x128xbf16>
    %c2 = arith.constant 2 : index
    %c0_56 = arith.constant 0 : index
    %c0_57 = arith.constant 0 : index
    %41 = vector.load %arg5[%c2, %c0_56, %c0_57] : memref<9x128x128xbf16, #tpu.memory_space<vmem>>, vector<1x128x128xbf16>
    %42 = vector.shape_cast %41 : vector<1x128x128xbf16> to vector<128x128xbf16>
    %cst_58 = arith.constant dense<0.000000e+00> : vector<256x128xf32>
    %43 = tpu.matmul %40, %42, %cst_58 {dimension_numbers = #tpu.dot_dimension_numbers<[1], [0], [0], [1], [0, 0, 1, 1], [], []>} : vector<256x128xbf16>, vector<128x128xbf16>, vector<256x128xf32> -> vector<256x128xf32>
    %44 = arith.addf %38, %43 : vector<256x128xf32>
    %c0_59 = arith.constant 0 : index
    %c1_60 = arith.constant 1 : index
    %c15_61 = arith.constant 15 : index
    %c0_62 = arith.constant 0 : index
    %45 = vector.load %arg12[%c0_59, %c1_60, %c15_61, %c0_62] : memref<1x18x48x128xbf16, #tpu.memory_space<vmem>>, vector<1x16x16x128xbf16>
    %46 = vector.shape_cast %45 : vector<1x16x16x128xbf16> to vector<256x128xbf16>
    %c3 = arith.constant 3 : index
    %c0_63 = arith.constant 0 : index
    %c0_64 = arith.constant 0 : index
    %47 = vector.load %arg5[%c3, %c0_63, %c0_64] : memref<9x128x128xbf16, #tpu.memory_space<vmem>>, vector<1x128x128xbf16>
    %48 = vector.shape_cast %47 : vector<1x128x128xbf16> to vector<128x128xbf16>
    %cst_65 = arith.constant dense<0.000000e+00> : vector<256x128xf32>
    %49 = tpu.matmul %46, %48, %cst_65 {dimension_numbers = #tpu.dot_dimension_numbers<[1], [0], [0], [1], [0, 0, 1, 1], [], []>} : vector<256x128xbf16>, vector<128x128xbf16>, vector<256x128xf32> -> vector<256x128xf32>
    %50 = arith.addf %44, %49 : vector<256x128xf32>
    %c0_66 = arith.constant 0 : index
    %c1_67 = arith.constant 1 : index
    %c16_68 = arith.constant 16 : index
    %c0_69 = arith.constant 0 : index
    %51 = vector.load %arg12[%c0_66, %c1_67, %c16_68, %c0_69] : memref<1x18x48x128xbf16, #tpu.memory_space<vmem>>, vector<1x16x16x128xbf16>
    %52 = vector.shape_cast %51 : vector<1x16x16x128xbf16> to vector<256x128xbf16>
    %c4 = arith.constant 4 : index
    %c0_70 = arith.constant 0 : index
    %c0_71 = arith.constant 0 : index
    %53 = vector.load %arg5[%c4, %c0_70, %c0_71] : memref<9x128x128xbf16, #tpu.memory_space<vmem>>, vector<1x128x128xbf16>
    %54 = vector.shape_cast %53 : vector<1x128x128xbf16> to vector<128x128xbf16>
    %cst_72 = arith.constant dense<0.000000e+00> : vector<256x128xf32>
    %55 = tpu.matmul %52, %54, %cst_72 {dimension_numbers = #tpu.dot_dimension_numbers<[1], [0], [0], [1], [0, 0, 1, 1], [], []>} : vector<256x128xbf16>, vector<128x128xbf16>, vector<256x128xf32> -> vector<256x128xf32>
    %56 = arith.addf %50, %55 : vector<256x128xf32>
    %c0_73 = arith.constant 0 : index
    %c1_74 = arith.constant 1 : index
    %c17_75 = arith.constant 17 : index
    %c0_76 = arith.constant 0 : index
    %57 = vector.load %arg12[%c0_73, %c1_74, %c17_75, %c0_76] : memref<1x18x48x128xbf16, #tpu.memory_space<vmem>>, vector<1x16x16x128xbf16>
    %58 = vector.shape_cast %57 : vector<1x16x16x128xbf16> to vector<256x128xbf16>
    %c5 = arith.constant 5 : index
    %c0_77 = arith.constant 0 : index
    %c0_78 = arith.constant 0 : index
    %59 = vector.load %arg5[%c5, %c0_77, %c0_78] : memref<9x128x128xbf16, #tpu.memory_space<vmem>>, vector<1x128x128xbf16>
    %60 = vector.shape_cast %59 : vector<1x128x128xbf16> to vector<128x128xbf16>
    %cst_79 = arith.constant dense<0.000000e+00> : vector<256x128xf32>
    %61 = tpu.matmul %58, %60, %cst_79 {dimension_numbers = #tpu.dot_dimension_numbers<[1], [0], [0], [1], [0, 0, 1, 1], [], []>} : vector<256x128xbf16>, vector<128x128xbf16>, vector<256x128xf32> -> vector<256x128xf32>
    %62 = arith.addf %56, %61 : vector<256x128xf32>
    %c0_80 = arith.constant 0 : index
    %c2_81 = arith.constant 2 : index
    %c15_82 = arith.constant 15 : index
    %c0_83 = arith.constant 0 : index
    %63 = vector.load %arg12[%c0_80, %c2_81, %c15_82, %c0_83] : memref<1x18x48x128xbf16, #tpu.memory_space<vmem>>, vector<1x16x16x128xbf16>
    %64 = vector.shape_cast %63 : vector<1x16x16x128xbf16> to vector<256x128xbf16>
    %c6 = arith.constant 6 : index
    %c0_84 = arith.constant 0 : index
    %c0_85 = arith.constant 0 : index
    %65 = vector.load %arg5[%c6, %c0_84, %c0_85] : memref<9x128x128xbf16, #tpu.memory_space<vmem>>, vector<1x128x128xbf16>
    %66 = vector.shape_cast %65 : vector<1x128x128xbf16> to vector<128x128xbf16>
    %cst_86 = arith.constant dense<0.000000e+00> : vector<256x128xf32>
    %67 = tpu.matmul %64, %66, %cst_86 {dimension_numbers = #tpu.dot_dimension_numbers<[1], [0], [0], [1], [0, 0, 1, 1], [], []>} : vector<256x128xbf16>, vector<128x128xbf16>, vector<256x128xf32> -> vector<256x128xf32>
    %68 = arith.addf %62, %67 : vector<256x128xf32>
    %c0_87 = arith.constant 0 : index
    %c2_88 = arith.constant 2 : index
    %c16_89 = arith.constant 16 : index
    %c0_90 = arith.constant 0 : index
    %69 = vector.load %arg12[%c0_87, %c2_88, %c16_89, %c0_90] : memref<1x18x48x128xbf16, #tpu.memory_space<vmem>>, vector<1x16x16x128xbf16>
    %70 = vector.shape_cast %69 : vector<1x16x16x128xbf16> to vector<256x128xbf16>
    %c7 = arith.constant 7 : index
    %c0_91 = arith.constant 0 : index
    %c0_92 = arith.constant 0 : index
    %71 = vector.load %arg5[%c7, %c0_91, %c0_92] : memref<9x128x128xbf16, #tpu.memory_space<vmem>>, vector<1x128x128xbf16>
    %72 = vector.shape_cast %71 : vector<1x128x128xbf16> to vector<128x128xbf16>
    %cst_93 = arith.constant dense<0.000000e+00> : vector<256x128xf32>
    %73 = tpu.matmul %70, %72, %cst_93 {dimension_numbers = #tpu.dot_dimension_numbers<[1], [0], [0], [1], [0, 0, 1, 1], [], []>} : vector<256x128xbf16>, vector<128x128xbf16>, vector<256x128xf32> -> vector<256x128xf32>
    %74 = arith.addf %68, %73 : vector<256x128xf32>
    %c0_94 = arith.constant 0 : index
    %c2_95 = arith.constant 2 : index
    %c17_96 = arith.constant 17 : index
    %c0_97 = arith.constant 0 : index
    %75 = vector.load %arg12[%c0_94, %c2_95, %c17_96, %c0_97] : memref<1x18x48x128xbf16, #tpu.memory_space<vmem>>, vector<1x16x16x128xbf16>
    %76 = vector.shape_cast %75 : vector<1x16x16x128xbf16> to vector<256x128xbf16>
    %c8 = arith.constant 8 : index
    %c0_98 = arith.constant 0 : index
    %c0_99 = arith.constant 0 : index
    %77 = vector.load %arg5[%c8, %c0_98, %c0_99] : memref<9x128x128xbf16, #tpu.memory_space<vmem>>, vector<1x128x128xbf16>
    %78 = vector.shape_cast %77 : vector<1x128x128xbf16> to vector<128x128xbf16>
    %cst_100 = arith.constant dense<0.000000e+00> : vector<256x128xf32>
    %79 = tpu.matmul %76, %78, %cst_100 {dimension_numbers = #tpu.dot_dimension_numbers<[1], [0], [0], [1], [0, 0, 1, 1], [], []>} : vector<256x128xbf16>, vector<128x128xbf16>, vector<256x128xf32> -> vector<256x128xf32>
    %80 = arith.addf %74, %79 : vector<256x128xf32>
    %81 = vector.broadcast %4 : vector<1x128xf32> to vector<256x128xf32>
    %82 = arith.mulf %80, %81 : vector<256x128xf32>
    %83 = vector.broadcast %5 : vector<1x128xf32> to vector<256x128xf32>
    %84 = arith.addf %82, %83 : vector<256x128xf32>
    %cst_101 = arith.constant 0.000000e+00 : f32
    %85 = vector.broadcast %cst_101 : f32 to vector<256x128xf32>
    %86 = arith.maximumf %84, %85 : vector<256x128xf32>
    %87 = arith.truncf %86 : vector<256x128xf32> to vector<256x128xbf16>
    %c0_102 = arith.constant 0 : index
    %c0_103 = arith.constant 0 : index
    %88 = vector.load %arg8[%c0_102, %c0_103] : memref<128x32xbf16, #tpu.memory_space<vmem>>, vector<128x32xbf16>
    %cst_104 = arith.constant dense<0.000000e+00> : vector<256x32xf32>
    %89 = tpu.matmul %87, %88, %cst_104 {dimension_numbers = #tpu.dot_dimension_numbers<[1], [0], [0], [1], [0, 0, 1, 1], [], []>} : vector<256x128xbf16>, vector<128x32xbf16>, vector<256x32xf32> -> vector<256x32xf32>
    %90 = vector.broadcast %6 : vector<1x32xf32> to vector<256x32xf32>
    %91 = arith.mulf %89, %90 : vector<256x32xf32>
    %92 = vector.broadcast %7 : vector<1x32xf32> to vector<256x32xf32>
    %93 = arith.addf %91, %92 : vector<256x32xf32>
    %94 = arith.addf %93, %1 : vector<256x32xf32>
    %cst_105 = arith.constant 0.000000e+00 : f32
    %95 = vector.broadcast %cst_105 : f32 to vector<256x32xf32>
    %96 = arith.maximumf %94, %95 : vector<256x32xf32>
    %97 = vector.shape_cast %96 : vector<256x32xf32> to vector<1x16x16x32xf32>
    %c0_106 = arith.constant 0 : index
    %c0_107 = arith.constant 0 : index
    %c0_108 = arith.constant 0 : index
    %c0_109 = arith.constant 0 : index
    %98 = vector.load %arg11[%c0_106, %c0_107, %c0_108, %c0_109] : memref<1x16x16x32xf32, #tpu.memory_space<vmem>>, vector<1x16x16x32xf32>
    tpu.vector_store %arg11[%c0_106, %c0_107, %c0_108, %c0_109], %97 {strides = array<i32>} : memref<1x16x16x32xf32, #tpu.memory_space<vmem>>, vector<1x16x16x32xf32>,
    return
  }
  func.func @transform_0(%arg0: i32) -> (i32, i32, i32, i32) {
    %c0_i32 = arith.constant 0 : i32
    %c0_i32_0 = arith.constant 0 : i32
    %c0_i32_1 = arith.constant 0 : i32
    %c0_i32_2 = arith.constant 0 : i32
    return %arg0, %c0_i32, %c0_i32_0, %c0_i32_1 : i32, i32, i32, i32
  }
  func.func @transform_1(%arg0: i32) -> (i32, i32) {
    %c0_i32 = arith.constant 0 : i32
    %c0_i32_0 = arith.constant 0 : i32
    %c0_i32_1 = arith.constant 0 : i32
    return %c0_i32, %c0_i32_0 : i32, i32
  }
  func.func @transform_2(%arg0: i32) -> (i32, i32) {
    %c0_i32 = arith.constant 0 : i32
    %c0_i32_0 = arith.constant 0 : i32
    %c0_i32_1 = arith.constant 0 : i32
    return %c0_i32, %c0_i32_0 : i32, i32
  }
  func.func @transform_3(%arg0: i32) -> (i32, i32) {
    %c0_i32 = arith.constant 0 : i32
    %c0_i32_0 = arith.constant 0 : i32
    %c0_i32_1 = arith.constant 0 : i32
    return %c0_i32, %c0_i32_0 : i32, i32
  }
  func.func @transform_4(%arg0: i32) -> (i32, i32, i32) {
    %c0_i32 = arith.constant 0 : i32
    %c0_i32_0 = arith.constant 0 : i32
    %c0_i32_1 = arith.constant 0 : i32
    %c0_i32_2 = arith.constant 0 : i32
    return %c0_i32, %c0_i32_0, %c0_i32_1 : i32, i32, i32
  }
  func.func @transform_5(%arg0: i32) -> (i32, i32) {
    %c0_i32 = arith.constant 0 : i32
    %c0_i32_0 = arith.constant 0 : i32
    %c0_i32_1 = arith.constant 0 : i32
    return %c0_i32, %c0_i32_0 : i32, i32
  }
  func.func @transform_6(%arg0: i32) -> (i32, i32) {
    %c0_i32 = arith.constant 0 : i32
    %c0_i32_0 = arith.constant 0 : i32
    %c0_i32_1 = arith.constant 0 : i32
    return %c0_i32, %c0_i32_0 : i32, i32
  }
  func.func @transform_7(%arg0: i32) -> (i32, i32) {
    %c0_i32 = arith.constant 0 : i32
    %c0_i32_0 = arith.constant 0 : i32
    %c0_i32_1 = arith.constant 0 : i32
    return %c0_i32, %c0_i32_0 : i32, i32
  }
  func.func @transform_8(%arg0: i32) -> (i32, i32) {
    %c0_i32 = arith.constant 0 : i32
    %c0_i32_0 = arith.constant 0 : i32
    %c0_i32_1 = arith.constant 0 : i32
    return %c0_i32, %c0_i32_0 : i32, i32
  }
  func.func @transform_9(%arg0: i32) -> (i32, i32) {
    %c0_i32 = arith.constant 0 : i32
    %c0_i32_0 = arith.constant 0 : i32
    %c0_i32_1 = arith.constant 0 : i32
    return %c0_i32, %c0_i32_0 : i32, i32
  }
  func.func @transform_10(%arg0: i32) -> (i32, i32, i32, i32) {
    %c0_i32 = arith.constant 0 : i32
    %c0_i32_0 = arith.constant 0 : i32
    %c0_i32_1 = arith.constant 0 : i32
    %c0_i32_2 = arith.constant 0 : i32
    return %arg0, %c0_i32, %c0_i32_0, %c0_i32_1 : i32, i32, i32, i32
  }
}

</mosaic_0001>

<bundles_post_ra>
// kernel: bottleneck_pallas.1
= control target key start
LH: loop header
LB: loop body
LE: loop exit
PB: predicated region body
PF: predicated region fallthrough
CT: control target
= control target key end

     0   :  { %15 = vsyncpa [#allocation4], 0  ;;  %s9179_s0 = inlined_call_operand.vmem [shape: f32[2,16,16,32], index: 0, kind: input, shape index: {}]   ;;  %s9180_s1 = inlined_call_operand.vmem [shape: bf16[32,128], index: 1, kind: input, shape index: {}]   ;;  %s9181_s2 = inlined_call_operand.vmem [shape: f32[1,128], index: 2, kind: input, shape index: {}]   ;;  %s9182_s3 = inlined_call_operand.vmem [shape: f32[1,128], index: 3, kind: input, shape index: {}]   ;;  %s9183_s4 = inlined_call_operand.vmem [shape: bf16[9,128,128], index: 4, kind: input, shape index: {}]   ;;  %s9184_s5 = inlined_call_operand.vmem [shape: f32[1,128], index: 5, kind: input, shape index: {}]   ;;  %s9185_s6 = inlined_call_operand.vmem [shape: f32[1,128], index: 6, kind: input, shape index: {}]   ;;  %s9186_s7 = inlined_call_operand.vmem [shape: bf16[128,32], index: 7, kind: input, shape index: {}]   ;;  %s9187_s8 = inlined_call_operand.vmem [shape: f32[1,32], index: 8, kind: input, shape index: {}]   ;;  %s9188_s9 = inlined_call_operand.vmem [shape: f32[1,32], index: 9, kind: input, shape index: {}]   ;;  %s9189_s10 = inlined_call_operand.hbm [shape: f32[2,16,16,32], index: 10, kind: output, shape index: {}]  }
   0x1   :  { %17 = vsyncpa [#allocation4 + $0x1], 0  ;;  %s7286_s13 = smov 0   ;;  %s7288_s14 = smov 0  }
   0x2   :  { %s7290_s15 = smov 0   ;;  %s7292_s16 = smov 0  }
   0x3 LB: > { %s7307_s17 = sadd.s32 4294967295, %s7226_s16   ;;  %s6110_s18 = sadd.s32 4294967294, %s7226_s16   ;;  %s7226_s16 = sphi %s7292_s16, %s9389_s16   ;;  %s7222_s15 = sphi %s7290_s15, %s9388_s15   ;;  %s7218_s14 = sphi %s7288_s14, %s9387_s14   ;;  %s7214_s13 = sphi %s7286_s13, %s9386_s13  }
   0x4   : > { %s7311_s19 = sadd.s32 1, %s7226_s16   ;;  %s245_s20 = sadd.s32 1, %s7222_s15 }
   0x5   : > { %s242_s21 = ssub.s32 %s7226_s16, %s7311_s19  ;;  %p255_p0 = scmp.ne.s32.totalorder %s7222_s15, %s7218_s14 }
   0x6   : > { %p243_p1 = scmp.eq.s32.totalorder %s242_s21, 0  ;;  %p256_p2 = scmp.eq.s32.totalorder %s7307_s17, 1 }
   0x7   : > { %p261_p3 = scmp.ne.s32.totalorder %s7218_s14, %s7214_s13  ;;  %p262_p4 = scmp.eq.s32.totalorder %s6110_s18, 1 }
   0x8   : > { %s7322_s22 = scalar_select %p243_p1, %s7222_s15, %s245_s20  }
   0x9   : > { %p7324_p5 = por %p256_p2, %p255_p0  ;;  %p7328_p6 = por %p262_p4, %p261_p3 }
   0xa   : > { %p6113_p7 = scmp.ge.s32.totalorder %s7226_s16, 1  ;;  %p315_p8 = scmp.lt.s32.totalorder %s7226_s16, 3 }
   0xc   : > { %p316_p9 = pnand %p6113_p7, %p315_p8 }
   0xe   : > { %319 = sbr.rel (%p316_p9) target bundleno = 1285 (0x505), region = 60 }
  0x13   : > { %v6836_v0 = vld [vmem:[%s9180_s1 + $0x8] sm:$0xff]  ;;  %p353_p10 = scmp.lt.s32.totalorder %s7307_s17, 1  ;;  %v6835_v1 = vld [vmem:[%s9180_s1] sm:$0xff]  ;;  %vm429_vm0 = vcmask 261120   ;;  %v6868_v17 = vld [vmem:[%s9183_s4 + $0x78] sm:$0xff]  ;;  %v7228_v34 = vmov 0  }
  0x14   : > { %484 = vmatpush.bf16.msra.mxu0 %v6836_v0  ;;  %7062 = vmatpush.bf16.msra.mxu3 %v6836_v0  ;;  %v6867_v18 = vld [vmem:[%s9183_s4 + $0x70] sm:$0xff]  ;;  %v6866_v22 = vld [vmem:[%s9183_s4 + $0x68] sm:$0xff]  ;;  %v7377_v23 = vld [vmem:[%s9183_s4 + $0x38] sm:$0xff]  ;;  %671 = vst [vmem:[#allocation2 + $0x8] sm:$0xf] %v7228_v34  ;;  %s6965_s26 = sshll.u32 %s7307_s17, 8 }
  0x15   : > { %s354_s29 = scalar_select %p353_p10, %s7307_s17, 1  ;;  %1391 = vmatpush.bf16.msra.mxu1 %v6868_v17  ;;  %v6865_v24 = vld [vmem:[%s9183_s4 + $0x60] sm:$0xff]  ;;  %1592 = vmatpush.bf16.msra.mxu2 %v7377_v23  ;;  %v7386_v25 = vld [vmem:[%s9183_s4 + $0x30] sm:$0xff]  ;;  %v6864_v26 = vld [vmem:[%s9183_s4 + $0x58] sm:$0xff]  ;;  %672 = vst [vmem:[#allocation2 + $0xc] sm:$0xf] %v7228_v34 }
  0x16   : > { %v7395_v27 = vld [vmem:[%s9183_s4 + $0x28] sm:$0xff]  ;;  %v6863_v30 = vld [vmem:[%s9183_s4 + $0x50] sm:$0xff]  ;;  %v7406_v32 = vld [vmem:[%s9183_s4 + $0x20] sm:$0xff]  ;;  %670 = vst [vmem:[#allocation2 + $0x4] sm:$0xf] %v7228_v34  ;;  %s7184_s28 = scalar_lea.hbm %s9189_s10, 512 }
  0x17   : > { %s6834_s30 = sshll.u32 %s354_s29, 8  ;;  %v6862_v33 = vld [vmem:[%s9183_s4 + $0x48] sm:$0xff]  ;;  %v7418_v35 = vld [vmem:[%s9183_s4 + $0x18] sm:$0xff]  ;;  %v6861_v36 = vld [vmem:[%s9183_s4 + $0x40] sm:$0xff]  ;;  %673 = vst [vmem:[#allocation2 + $0x10] sm:$0xf] %v7228_v34 }
  0x18   : > { %s7345_s18 = scalar_lea.vmem %s9179_s0, %s6834_s30  ;;  %485 = vmatpush.bf16.msra.mxu0 %v6835_v1  ;;  %7063 = vmatpush.bf16.msra.mxu3 %v6835_v1  ;;  %v7429_v37 = vld [vmem:[%s9183_s4 + $0x10] sm:$0xff]  ;;  %677 = vst [vmem:[#allocation2 + $0x19c] sm:$0xf] %v7228_v34  ;;  %v7441_v45 = vld [vmem:[%s9183_s4 + $0x8] sm:$0xff]  ;;  %vm859_vm1 = vsmask.f32 256 }
  0x19   : > { %v359_v2 = vld [vmem:[%s7345_s18] sm:$0xff]  ;;  %v360_v3 = vld [vmem:[%s7345_s18 + $0x8] sm:$0xff]  ;;  %v361_v5 = vld [vmem:[%s7345_s18 + $0x10] sm:$0xff]  ;;  %1392 = vmatpush.bf16.msra.mxu1 %v6867_v18  ;;  %1593 = vmatpush.bf16.msra.mxu2 %v7386_v25  ;;  %678 = vst [vmem:[#allocation2 + $0x1a0] sm:$0xf] %v7228_v34  ;;  %s350_s29 = sand.u32 1, %s7218_s14  }
  0x1a   : > { %v397_v4 = vpack.c.bf16 %v360_v3, %v359_v2  ;;  %v362_v6 = vld [vmem:[%s7345_s18 + $0x18] sm:$0xff]  ;;  %v363_v8 = vld [vmem:[%s7345_s18 + $0x20] sm:$0xff]  ;;  %v364_v9 = vld [vmem:[%s7345_s18 + $0x28] sm:$0xff]  ;;  %679 = vst [vmem:[#allocation2 + $0x1a4] sm:$0xf] %v7228_v34  ;;  %s6114_s30 = sshll.u32 %s350_s29, 8 }
  0x1b   : > { %v398_v7 = vpack.c.bf16 %v362_v6, %v361_v5  ;;  %v399_v10 = vpack.c.bf16 %v364_v9, %v363_v8  ;;  %v365_v11 = vld [vmem:[%s7345_s18 + $0x30] sm:$0xff]  ;;  %v366_v12 = vld [vmem:[%s7345_s18 + $0x38] sm:$0xff]  ;;  %v367_v14 = vld [vmem:[%s7345_s18 + $0x40] sm:$0xff]  ;;  %680 = vst [vmem:[#allocation2 + $0x1a8] sm:$0xf] %v7228_v34  ;;  %s8911_s11 = scalar_lea.vmem [#allocation3], %s6114_s30  ;;  %s6044_s30 = scalar_lea.hbm %s9189_s10, %s6965_s26 }
  0x1c   : > { %6125 = vmatmul.msk.bf16.vlgmr.msra.gmra.mxu0 %vm429_vm0, %v397_v4  ;;  %v400_v13 = vpack.c.bf16 %v366_v12, %v365_v11  ;;  %v368_v15 = vld [vmem:[%s7345_s18 + $0x48] sm:$0xff]  ;;  %7064 = vmatpush.bf16.msrb.mxu3 %v6868_v17  ;;  %v369_v19 = vld [vmem:[%s7345_s18 + $0x50] sm:$0xff]  ;;  %v370_v20 = vld [vmem:[%s7345_s18 + $0x58] sm:$0xff]  ;;  %vm860_vm2 = vsmask.f32 4368  ;;  %s6045_s12 = sshll.u32 %s8911_s11, 4  ;;  %s6046_s12 = int_to_ptr.vmem [resolvable:$true] %s6045_s12 }
  0x1d   : > { %v401_v16 = vpack.c.bf16 %v368_v15, %v367_v14  ;;  %v402_v21 = vpack.c.bf16 %v370_v20, %v369_v19  ;;  %1393 = vmatpush.bf16.msra.mxu1 %v6866_v22  ;;  %v371_v28 = vld [vmem:[%s7345_s18 + $0x60] sm:$0xff]  ;;  %v372_v29 = vld [vmem:[%s7345_s18 + $0x68] sm:$0xff]  ;;  %1594 = vmatpush.bf16.msra.mxu2 %v7395_v27  ;;  %v373_v42 = vld [vmem:[%s7345_s18 + $0x70] sm:$0xff]  ;;  %684 = vst [vmem:[#allocation2 + $0x1c] sm:$0xf] %v7228_v34  ;;  %s6047_s20 = sshll.u32 %s6044_s30, 4  ;;  %s6048_s20 = int_to_ptr.hbm [resolvable:$true] %s6047_s20 }
  0x1e   : > { %v403_v31 = vpack.c.bf16 %v372_v29, %v371_v28  ;;  %v812_v38 = vld [vmem:[#allocation2 + $0x8] sm:$0xf]  ;;  %v813_v40 = vld [vmem:[#allocation2 + $0xc] sm:$0xf]  ;;  %v374_v43 = vld [vmem:[%s7345_s18 + $0x78] sm:$0xff]  ;;  %s6033_s17 = scalar_lea.sflag [#allocation4], %s350_s29 }
  0x1f   : > { %v6837_v39 = vld [vmem:[#allocation2 + $0x8] sm:$0xff]  ;;  %v868_v41 = vshrl.u32 %v812_v38, 16  ;;  %v877_v44 = vshrl.u32 %v813_v40, 16  ;;  %v811_v46 = vld [vmem:[#allocation2 + $0x4] sm:$0x8]  ;;  %v871_v49 = vshll.u32 %v812_v38, 16  ;;  %vm7445_vm3 = vmor %vm859_vm1, %vm860_vm2  ;;  %v404_v57 = vpack.c.bf16 %v374_v43, %v373_v42 }
  0x20   : > { %7065 = vmatpush.bf16.msrb.mxu3 %v6867_v18  ;;  %v863_v48 = vshrl.u32 %v811_v46, 16  ;;  %v880_v51 = vshll.u32 %v813_v40, 16  ;;  %v7452_v58 = vld [vmem:[%s9183_s4] sm:$0xff]  ;;  %686 = vst [vmem:[#allocation2 + $0x34] sm:$0xf] %v7228_v34  ;;  %v376_v1 = vld [vmem:[%s7345_s18 + $0x88] sm:$0xff] }
  0x21   : > { %1394 = vmatpush.bf16.msra.mxu1 %v6865_v24  ;;  %1595 = vmatpush.bf16.msra.mxu2 %v7406_v32  ;;  %v870_v47 = vrot.slane %v868_v41, 7  ;;  %v879_v50 = vrot.slane %v877_v44, 7  ;;  %688 = vst [vmem:[#allocation2 + $0x4c] sm:$0xf] %v7228_v34  ;;  %v375_v0 = vld [vmem:[%s7345_s18 + $0x80] sm:$0xff]  ;;  %v377_v11 = vld [vmem:[%s7345_s18 + $0x90] sm:$0xff] }
  0x22   : > { %v6141_v53 = vrot.slane %v863_v48, 11  ;;  %690 = vst [vmem:[#allocation2 + $0x64] sm:$0xf] %v7228_v34  ;;  %v405_v2 = vpack.c.bf16 %v376_v1, %v375_v0  ;;  %v7474_v4 = vld [vmem:[%s9181_s2] ss:$0 sm:$0xff]  ;;  %v378_v12 = vld [vmem:[%s7345_s18 + $0x98] sm:$0xff] }
  0x23   : > { %v873_v54 = vor.u32 %v871_v49, %v870_v47  ;;  %v875_v55 = vrot.slane %v870_v47, 4  ;;  %v882_v56 = vor.u32 %v880_v51, %v879_v50  ;;  %692 = vst [vmem:[#allocation2 + $0x7c] sm:$0xf] %v7228_v34  ;;  %v7483_v6 = vld [vmem:[%s9182_s3] ss:$0 sm:$0xff]  ;;  %v6900_v47 = vld [vmem:[%s9183_s4 + $0xf8] sm:$0xff] }
  0x24   : > { %7066 = vmatpush.bf16.msrb.mxu3 %v6866_v22  ;;  %694 = vst [vmem:[#allocation2 + $0x94] sm:$0xf] %v7228_v34  ;;  %v814_v18 = vld [vmem:[#allocation2 + $0x1c] sm:$0x8]  ;;  %2895 = vmatpush.bf16.msrb.mxu0 %v6900_v47  ;;  %vm1729_vm4 = vsmask.f32 3328 }
  0x25   : > { %1395 = vmatpush.bf16.msra.mxu1 %v6864_v26  ;;  %1596 = vmatpush.bf16.msra.mxu2 %v7418_v35  ;;  %v874_v59 = vsel %vm7445_vm3, %v6141_v53, %v873_v54  ;;  %v883_v60 = vsel %vm7445_vm3, %v875_v55, %v882_v56  ;;  %696 = vst [vmem:[#allocation2 + $0xac] sm:$0xf] %v7228_v34  ;;  %v885_v19 = vshrl.u32 %v814_v18, 16  ;;  %v6899_v54 = vld [vmem:[%s9183_s4 + $0xf0] sm:$0xff]  ;;  %v386_v1 = vld [vmem:[%s7345_s18 + $0xd8] sm:$0xff]  ;;  %s7178_s21 = sshra.s32 %s6048_s20, 4  ;;  %s7179_s21 = int_to_ptr.hbm [resolvable:$true] %s7178_s21 }
  0x26   : > { %v1480_v61 = vunpack.c.l.b16 %v874_v59  ;;  %v1481_v62 = vunpack.c.l.b16 %v883_v60  ;;  %698 = vst [vmem:[#allocation2 + $0xc4] sm:$0xf] %v7228_v34  ;;  %vm1730_vm5 = vsmask.f32 7440  ;;  %s7180_s25 = scalar_lea.hbm %s7179_s21, 256  ;;  %p7185_p0 = scmp.lt.s32.totalorder %s7179_s21, %s9189_s10 }
  0x27   : > { %700 = vst [vmem:[#allocation2 + $0xdc] sm:$0xf] %v7228_v34  ;;  %v6142_v29 = vrot.slane %v885_v19, 11  ;;  %v817_v18 = vld [vmem:[#allocation2 + $0x34] sm:$0x8]  ;;  %vm7792_vm6 = vmor %vm1729_vm4, %vm1730_vm5  ;;  %p7181_p11 = scmp.ne.s32.totalorder %s7179_s21, %s7180_s25  ;;  %p7186_p1 = scmp.lt.s32.totalorder %s7184_s28, %s7180_s25 }
  0x28   : > { %7067 = vmatpush.bf16.msrb.mxu3 %v6865_v24  ;;  %v1512_v63 = vpack.c.b16 %v1481_v62, %v1480_v61  ;;  %702 = vst [vmem:[#allocation2 + $0xf4] sm:$0xf] %v7228_v34  ;;  %2896 = vmatpush.bf16.msrb.mxu0 %v6899_v54  ;;  %v6898_v61 = vld [vmem:[%s9183_s4 + $0xe8] sm:$0xff]  ;;  %v385_v62 = vld [vmem:[%s7345_s18 + $0xd0] sm:$0xff] }
  0x29   : > { %1396 = vmatpush.bf16.msra.mxu1 %v6863_v30  ;;  %1597 = vmatpush.bf16.msra.mxu2 %v7429_v37  ;;  %704 = vst [vmem:[#allocation2 + $0x10c] sm:$0xf] %v7228_v34  ;;  %p7182_p12 = pnand %p7181_p11, %p7324_p5  ;;  %p7187_p2 = por %p7186_p1, %p7185_p0 }
  0x2a   : > { %706 = vst [vmem:[#allocation2 + $0x124] sm:$0xf] %v7228_v34 }
  0x2b   : > { %708 = vst [vmem:[#allocation2 + $0x13c] sm:$0xf] %v7228_v34  ;;  %p7183_p13 = pneg %p7182_p12 }
  0x2c   : > { %6126 = vmatmul.msk.bf16.gmra.mxu0 %vm429_vm0, %v398_v7  ;;  %7068 = vmatpush.bf16.msrb.mxu3 %v6864_v26  ;;  %710 = vst [vmem:[#allocation2 + $0x154] sm:$0xf] %v7228_v34 }
  0x2d   : > { %1397 = vmatpush.bf16.msra.mxu1 %v6862_v33  ;;  %1598 = vmatpush.bf16.msra.mxu2 %v7441_v45  ;;  %712 = vst [vmem:[#allocation2 + $0x16c] sm:$0xf] %v7228_v34  ;;  %p7188_p3 = pnand %p7187_p2, %p7183_p13 }
  0x2e   : > { %714 = vst [vmem:[#allocation2 + $0x184] sm:$0xf] %v7228_v34  ;;  %2897 = vmatpush.bf16.msrb.mxu0 %v6898_v61  ;;  %v383_v61 = vld [vmem:[%s7345_s18 + $0xc0] sm:$0xff] }
  0x2f   : > { %715 = vst [vmem:[#allocation2 + $0x28] sm:$0xf] %v7228_v34 }
  0x30   : > { %7069 = vmatpush.bf16.msrb.mxu3 %v6863_v30  ;;  %717 = vst [vmem:[#allocation2 + $0x40] sm:$0xf] %v7228_v34 }
  0x31   : > { %1398 = vmatpush.bf16.msra.mxu1 %v6861_v36  ;;  %1599 = vmatpush.bf16.msra.mxu2 %v7452_v58  ;;  %719 = vst [vmem:[#allocation2 + $0x58] sm:$0xf] %v7228_v34 }
  0x32   : > { %721 = vst [vmem:[#allocation2 + $0x70] sm:$0xf] %v7228_v34 }
  0x33   : > { %723 = vst [vmem:[#allocation2 + $0x88] sm:$0xf] %v7228_v34 }
  0x34   : > { %7070 = vmatpush.bf16.msrb.mxu3 %v6862_v33  ;;  %1399 = vmatmul.bf16.vlgmr.msra.gmra.mxu1 %v6837_v39  ;;  %725 = vst [vmem:[#allocation2 + $0xa0] sm:$0xf] %v7228_v34  ;;  %v379_v33 = vld [vmem:[%s7345_s18 + $0xa0] sm:$0xff] }
  0x35   : > { %1600 = vmatmul.bf16.vlgmr.msra.gmra.mxu2 %v1512_v63  ;;  %727 = vst [vmem:[#allocation2 + $0xb8] sm:$0xf] %v7228_v34 }
  0x36   : > { %729 = vst [vmem:[#allocation2 + $0xd0] sm:$0xf] %v7228_v34 }
  0x37   : > { %731 = vst [vmem:[#allocation2 + $0xe8] sm:$0xf] %v7228_v34 }
  0x38   : > { %7071 = vmatpush.bf16.msrb.mxu3 %v6861_v36  ;;  %v380_v36 = vld [vmem:[%s7345_s18 + $0xa8] sm:$0xff]  ;;  %733 = vst [vmem:[#allocation2 + $0x100] sm:$0xf] %v7228_v34 }
  0x39   : > { %v407_v44 = vpack.c.bf16 %v380_v36, %v379_v33  ;;  %735 = vst [vmem:[#allocation2 + $0x118] sm:$0xf] %v7228_v34 }
  0x3a   : > { %737 = vst [vmem:[#allocation2 + $0x130] sm:$0xf] %v7228_v34 }
  0x3b   : > { %739 = vst [vmem:[#allocation2 + $0x148] sm:$0xf] %v7228_v34 }
  0x3c   : > { %6127 = vmatmul.msk.bf16.gmra.mxu0 %vm429_vm0, %v399_v10  ;;  %741 = vst [vmem:[#allocation2 + $0x160] sm:$0xf] %v7228_v34 }
  0x3d   : > { %743 = vst [vmem:[#allocation2 + $0x178] sm:$0xf] %v7228_v34 }
  0x3e   : > { %745 = vst [vmem:[#allocation2 + $0x190] sm:$0xf] %v7228_v34  ;;  %v907_v34 = vshrl.u32 %v817_v18, 16 }
  0x4c   : > { %6128 = vmatmul.msk.bf16.gmra.mxu0 %vm429_vm0, %v400_v13 }
  0x5c   : > { %6129 = vmatmul.msk.bf16.gmra.mxu0 %vm429_vm0, %v401_v16  ;;  %v406_v16 = vpack.c.bf16 %v378_v12, %v377_v11  ;;  %v382_v11 = vld [vmem:[%s7345_s18 + $0xb8] sm:$0xff] }
  0x6c   : > { %6130 = vmatmul.msk.bf16.gmra.mxu0 %vm429_vm0, %v402_v21 }
  0x7c   : > { %6131 = vmatmul.msk.bf16.gmra.mxu0 %vm429_vm0, %v403_v31 }
  0x8c   : > { %6132 = vmatmul.msk.bf16.gmra.mxu0 %vm429_vm0, %v404_v57 }
  0x99   : > { %v487_v3 = vpop.f32.mrf.mxu0 }
  0x9a   : > { %v570_v5 = vmul.f32 %v7474_v4, %v487_v3 }
  0x9c   : > { %6133 = vmatmul.msk.bf16.gmra.mxu0 %vm429_vm0, %v405_v2  ;;  %v605_v8 = vadd.f32 %v7483_v6, %v570_v5  ;;  %v6897_v5 = vld [vmem:[%s9183_s4 + $0xe0] sm:$0xff] }
  0x9d   : > { %2898 = vmatpush.bf16.msrb.mxu0 %v6897_v5  ;;  %v2366_v5 = vld [vmem:[#allocation2 + $0x1c] sm:$0x8] }
  0x9e   : > { %v637_v13 = vmax.f32 %v605_v8, 0.0 }
  0xa1   : > { %v489_v7 = vpop.f32.mrf.mxu0 }
  0xa2   : > { %v571_v9 = vmul.f32 %v7474_v4, %v489_v7  ;;  %v410_v7 = vpack.c.bf16 %v386_v1, %v385_v62  ;;  %v384_v62 = vld [vmem:[%s7345_s18 + $0xc8] sm:$0xff] }
  0xa4   : > { %v606_v10 = vadd.f32 %v7483_v6, %v571_v9  ;;  %6138 = vmatmul.msk.bf16.vlgmr.msra.gmra.mxu3 %vm429_vm0, %v410_v7 }
  0xa5   : > { %7072 = vmatpush.bf16.msra.mxu3 %v7377_v23  ;;  %v6895_v23 = vld [vmem:[%s9183_s4 + $0xd0] sm:$0xff] }
  0xa6   : > { %v638_v14 = vmax.f32 %v606_v10, 0.0  ;;  %v381_v10 = vld [vmem:[%s7345_s18 + $0xb0] sm:$0xff] }
  0xa8   : > { %v6969_v15 = vpack.c.bf16 %v638_v14, %v637_v13 }
  0xa9   : > { %v492_v17 = vpop.f32.mrf.mxu0  ;;  %7073 = vmatpush.bf16.msra.mxu3 %v7386_v25 }
  0xaa   : > { %7046 = vst [vmem:[#allocation2 + $0x20] sm:$0xff] %v6969_v15   ;;  %v572_v48 = vmul.f32 %v7474_v4, %v492_v17  ;;  %v408_v15 = vpack.c.bf16 %v382_v11, %v381_v10  ;;  %v409_v10 = vpack.c.bf16 %v384_v62, %v383_v61 }
  0xac   : > { %6134 = vmatmul.msk.bf16.gmra.mxu0 %vm429_vm0, %v406_v16  ;;  %v607_v57 = vadd.f32 %v7483_v6, %v572_v48  ;;  %v6896_v16 = vld [vmem:[%s9183_s4 + $0xd8] sm:$0xff]  ;;  %v6893_v48 = vld [vmem:[%s9183_s4 + $0xc0] sm:$0xff] }
  0xad   : > { %2899 = vmatpush.bf16.msrb.mxu0 %v6896_v16  ;;  %7074 = vmatpush.bf16.msra.mxu3 %v7395_v27 }
  0xae   : > { %v639_v63 = vmax.f32 %v607_v57, 0.0 }
  0xb1   : > { %v494_v20 = vpop.f32.mrf.mxu0  ;;  %v6838_v21 = vld [vmem:[#allocation2 + $0x20] sm:$0xff]  ;;  %2900 = vmatpush.bf16.msrb.mxu0 %v6895_v23  ;;  %7075 = vmatpush.bf16.msra.mxu3 %v7406_v32 }
  0xb2   : > { %v815_v22 = vld [vmem:[#allocation2 + $0x20] sm:$0xf]  ;;  %v816_v24 = vld [vmem:[#allocation2 + $0x24] sm:$0xf]  ;;  %1404 = vmatmul.bf16.gmra.mxu1 %v6838_v21  ;;  %v573_v42 = vmul.f32 %v7474_v4, %v494_v20 }
  0xb3   : > { %v890_v26 = vshrl.u32 %v815_v22, 16  ;;  %v899_v28 = vshrl.u32 %v816_v24, 16  ;;  %v893_v31 = vshll.u32 %v815_v22, 16  ;;  %v902_v39 = vshll.u32 %v816_v24, 16  ;;  %v2368_v33 = vld [vmem:[#allocation2 + $0x24] sm:$0xf] }
  0xb4   : > { %v608_v55 = vadd.f32 %v7483_v6, %v573_v42  ;;  %v388_v42 = vld [vmem:[%s7345_s18 + $0xe8] sm:$0xff] }
  0xb5   : > { %v892_v30 = vrot.slane %v890_v26, 7  ;;  %v901_v38 = vrot.slane %v899_v28, 7  ;;  %v7554_v26 = vld [vmem:[#allocation2 + $0x20] sm:$0xf]  ;;  %v6143_v28 = vrot.slane %v907_v34, 11  ;;  %7076 = vmatpush.bf16.msra.mxu3 %v7418_v35 }
  0xb6   : > { %v640_v60 = vmax.f32 %v608_v55, 0.0  ;;  %v2420_v32 = vshrl.u32 %v7554_v26, 16  ;;  %v2423_v34 = vshll.u32 %v7554_v26, 16 }
  0xb7   : > { %v895_v40 = vor.u32 %v893_v31, %v892_v30  ;;  %v897_v41 = vrot.slane %v892_v30, 4  ;;  %v904_v43 = vor.u32 %v902_v39, %v901_v38  ;;  %v6894_v30 = vld [vmem:[%s9183_s4 + $0xc8] sm:$0xff]  ;;  %v387_v31 = vld [vmem:[%s7345_s18 + $0xe0] sm:$0xff] }
  0xb8   : > { %v6974_v8 = vpack.c.bf16 %v640_v60, %v639_v63  ;;  %2901 = vmatpush.bf16.msrb.mxu0 %v6894_v30 }
  0xb9   : > { %v896_v46 = vsel %vm7445_vm3, %v6142_v29, %v895_v40  ;;  %v497_v49 = vpop.f32.mrf.mxu0  ;;  %v905_v50 = vsel %vm7445_vm3, %v897_v41, %v904_v43  ;;  %7077 = vmatpush.bf16.msra.mxu3 %v7429_v37 }
  0xba   : > { %v1482_v51 = vunpack.c.l.b16 %v896_v46  ;;  %v1483_v53 = vunpack.c.l.b16 %v905_v50  ;;  %v574_v59 = vmul.f32 %v7474_v4, %v497_v49  ;;  %7047 = vst [vmem:[#allocation2 + $0x38] sm:$0xff] %v6974_v8   ;;  %v411_v49 = vpack.c.bf16 %v388_v42, %v387_v31 }
  0xbc   : > { %6135 = vmatmul.msk.bf16.gmra.mxu0 %vm429_vm0, %v407_v44  ;;  %v1513_v56 = vpack.c.b16 %v1483_v53, %v1482_v51  ;;  %v609_v2 = vadd.f32 %v7483_v6, %v574_v59  ;;  %v820_v44 = vld [vmem:[#allocation2 + $0x4c] sm:$0x8]  ;;  %6139 = vmatmul.msk.bf16.gmra.mxu3 %vm429_vm0, %v411_v49 }
  0xbd   : > { %v929_v63 = vshrl.u32 %v820_v44, 16  ;;  %2902 = vmatpush.bf16.msrb.mxu0 %v6893_v48  ;;  %7078 = vmatpush.bf16.msra.mxu3 %v7441_v45 }
  0xbe   : > { %1605 = vmatmul.bf16.gmra.mxu2 %v1513_v56  ;;  %v641_v12 = vmax.f32 %v609_v2, 0.0  ;;  %v2429_v56 = vshrl.u32 %v2368_v33, 16 }
  0xbf   : > { %v6144_v35 = vrot.slane %v929_v63, 11 }
  0xc0   : > { %v2431_v16 = vrot.slane %v2429_v56, 7 }
  0xc1   : > { %v499_v0 = vpop.f32.mrf.mxu0  ;;  %v6839_v20 = vld [vmem:[#allocation2 + $0x38] sm:$0xff]  ;;  %7079 = vmatpush.bf16.msra.mxu3 %v7452_v58 }
  0xc2   : > { %v575_v3 = vmul.f32 %v7474_v4, %v499_v0  ;;  %v818_v21 = vld [vmem:[#allocation2 + $0x38] sm:$0xf]  ;;  %v819_v22 = vld [vmem:[#allocation2 + $0x3c] sm:$0xf]  ;;  %1409 = vmatmul.bf16.gmra.mxu1 %v6839_v20 }
  0xc3   : > { %v912_v25 = vshrl.u32 %v818_v21, 16  ;;  %v921_v24 = vshrl.u32 %v819_v22, 16  ;;  %v915_v29 = vshll.u32 %v818_v21, 16  ;;  %v924_v39 = vshll.u32 %v819_v22, 16  ;;  %v2370_v45 = vld [vmem:[#allocation2 + $0x38] sm:$0xf] }
  0xc4   : > { %v610_v9 = vadd.f32 %v7483_v6, %v575_v3 }
  0xc5   : > { %v914_v36 = vrot.slane %v912_v25, 7  ;;  %v923_v38 = vrot.slane %v921_v24, 7 }
  0xc6   : > { %v642_v13 = vmax.f32 %v610_v9, 0.0 }
  0xc7   : > { %v917_v50 = vor.u32 %v915_v29, %v914_v36  ;;  %v919_v51 = vrot.slane %v914_v36, 4  ;;  %v926_v53 = vor.u32 %v924_v39, %v923_v38 }
  0xc8   : > { %v6979_v14 = vpack.c.bf16 %v642_v13, %v641_v12 }
  0xc9   : > { %v502_v17 = vpop.f32.mrf.mxu0  ;;  %v918_v59 = vsel %vm7445_vm3, %v6143_v28, %v917_v50  ;;  %v927_v60 = vsel %vm7445_vm3, %v919_v51, %v926_v53  ;;  %v2442_v50 = vshrl.u32 %v2370_v45, 16 }
  0xca   : > { %7048 = vst [vmem:[#allocation2 + $0x50] sm:$0xff] %v6979_v14   ;;  %v576_v19 = vmul.f32 %v7474_v4, %v502_v17  ;;  %v1484_v0 = vunpack.c.l.b16 %v918_v59  ;;  %v1485_v1 = vunpack.c.l.b16 %v927_v60  ;;  %v2415_v14 = vshrl.u32 %v2366_v5, 16 }
  0xcb   : > { %v2444_v63 = vrot.slane %v2442_v50, 7 }
  0xcc   : > { %6136 = vmatmul.msk.bf16.gmra.mxu0 %vm429_vm0, %v408_v15  ;;  %v611_v27 = vadd.f32 %v7483_v6, %v576_v19  ;;  %v1514_v8 = vpack.c.b16 %v1485_v1, %v1484_v0  ;;  %v2422_v15 = vrot.slane %v2420_v32, 7  ;;  %v2432_v19 = vshll.u32 %v2368_v33, 16  ;;  %v2369_v32 = vld [vmem:[#allocation2 + $0x34] sm:$0x8] }
  0xcd   : > { %v6349_v21 = vrot.slane %v2415_v14, 11  ;;  %v2437_v62 = vshrl.u32 %v2369_v32, 16 }
  0xce   : > { %v643_v57 = vmax.f32 %v611_v27, 0.0  ;;  %1610 = vmatmul.bf16.gmra.mxu2 %v1514_v8  ;;  %v2425_v22 = vor.u32 %v2423_v34, %v2422_v15  ;;  %v2427_v25 = vrot.slane %v2422_v15, 4  ;;  %v2434_v24 = vor.u32 %v2432_v19, %v2431_v16 }
  0xcf   : > { %v2445_v8 = vshll.u32 %v2370_v45, 16 }
  0xd0   : > { %v2426_v31 = vsel %vm7445_vm3, %v6349_v21, %v2425_v22  ;;  %v2435_v33 = vsel %vm7445_vm3, %v2427_v25, %v2434_v24 }
  0xd1   : > { %v504_v40 = vpop.f32.mrf.mxu0  ;;  %v821_v41 = vld [vmem:[#allocation2 + $0x50] sm:$0xf]  ;;  %v822_v46 = vld [vmem:[#allocation2 + $0x54] sm:$0xf]  ;;  %v2784_v48 = vunpack.c.l.b16 %v2435_v33 }
  0xd2   : > { %v577_v43 = vmul.f32 %v7474_v4, %v504_v40  ;;  %v934_v47 = vshrl.u32 %v821_v41, 16  ;;  %v943_v54 = vshrl.u32 %v822_v46, 16  ;;  %v937_v11 = vshll.u32 %v821_v41, 16  ;;  %v6840_v20 = vld [vmem:[#allocation2 + $0x50] sm:$0xff]  ;;  %v823_v41 = vld [vmem:[#allocation2 + $0x64] sm:$0x8] }
  0xd3   : > { %v946_v13 = vshll.u32 %v822_v46, 16  ;;  %1414 = vmatmul.bf16.gmra.mxu1 %v6840_v20  ;;  %v951_v49 = vshrl.u32 %v823_v41, 16  ;;  %v2373_v21 = vld [vmem:[#allocation2 + $0x50] sm:$0xf] }
  0xd4   : > { %v612_v55 = vadd.f32 %v7483_v6, %v577_v43  ;;  %v936_v3 = vrot.slane %v934_v47, 7  ;;  %v945_v7 = vrot.slane %v943_v54, 7  ;;  %v2371_v43 = vld [vmem:[#allocation2 + $0x3c] sm:$0xf]  ;;  %v2783_v47 = vunpack.c.l.b16 %v2426_v31 }
  0xd5   : > { %v2451_v51 = vshrl.u32 %v2371_v43, 16 }
  0xd6   : > { %v644_v2 = vmax.f32 %v612_v55, 0.0  ;;  %v939_v17 = vor.u32 %v937_v11, %v936_v3  ;;  %v941_v18 = vrot.slane %v936_v3, 4  ;;  %v948_v23 = vor.u32 %v946_v13, %v945_v7 }
  0xd7   : > { %v2453_v0 = vrot.slane %v2451_v51, 7  ;;  %v2815_v1 = vpack.c.b16 %v2784_v48, %v2783_v47  ;;  %v6350_v11 = vrot.slane %v2437_v62, 11  ;;  %v2449_v13 = vrot.slane %v2444_v63, 4 }
  0xd8   : > { %v6984_v9 = vpack.c.bf16 %v644_v2, %v643_v57  ;;  %v940_v28 = vsel %vm7445_vm3, %v6144_v35, %v939_v17  ;;  %v949_v29 = vsel %vm7445_vm3, %v941_v18, %v948_v23  ;;  %v6145_v2 = vrot.slane %v951_v49, 11 }
  0xd9   : > { %v507_v12 = vpop.f32.mrf.mxu0  ;;  %v1486_v26 = vunpack.c.l.b16 %v940_v28  ;;  %v1487_v39 = vunpack.c.l.b16 %v949_v29  ;;  %v2374_v29 = vld [vmem:[#allocation2 + $0x54] sm:$0xf] }
  0xda   : > { %7049 = vst [vmem:[#allocation2 + $0x68] sm:$0xff] %v6984_v9   ;;  %v578_v37 = vmul.f32 %v7474_v4, %v507_v12  ;;  %v2454_v9 = vshll.u32 %v2371_v43, 16  ;;  %v2447_v12 = vor.u32 %v2445_v8, %v2444_v63  ;;  %v2473_v45 = vshrl.u32 %v2374_v29, 16 }
  0xdb   : > { %v1515_v54 = vpack.c.b16 %v1487_v39, %v1486_v26 }
  0xdc   : > { %6137 = vmatmul.msk.bf16.gmra.mxu0 %vm429_vm0, %v409_v10  ;;  %v613_v38 = vadd.f32 %v7483_v6, %v578_v37  ;;  %v2456_v14 = vor.u32 %v2454_v9, %v2453_v0  ;;  %v2448_v23 = vsel %vm7445_vm3, %v6350_v11, %v2447_v12  ;;  %v826_v37 = vld [vmem:[#allocation2 + $0x7c] sm:$0x8]  ;;  %v2475_v51 = vrot.slane %v2473_v45, 7 }
  0xdd   : > { %v2785_v31 = vunpack.c.l.b16 %v2448_v23 }
  0xde   : > { %v645_v53 = vmax.f32 %v613_v38, 0.0  ;;  %1615 = vmatmul.bf16.gmra.mxu2 %v1515_v54  ;;  %v2457_v34 = vsel %vm7445_vm3, %v2449_v13, %v2456_v14 }
  0xdf   : > { %v2786_v33 = vunpack.c.l.b16 %v2457_v34 }
  0xe1   : > { %v509_v30 = vpop.f32.mrf.mxu0  ;;  %v824_v27 = vld [vmem:[#allocation2 + $0x68] sm:$0xf]  ;;  %v825_v36 = vld [vmem:[#allocation2 + $0x6c] sm:$0xf] }
  0xe2   : > { %v579_v40 = vmul.f32 %v7474_v4, %v509_v30  ;;  %v956_v42 = vshrl.u32 %v824_v27, 16  ;;  %v965_v44 = vshrl.u32 %v825_v36, 16  ;;  %v959_v59 = vshll.u32 %v824_v27, 16  ;;  %v6841_v10 = vld [vmem:[#allocation2 + $0x68] sm:$0xff] }
  0xe3   : > { %v968_v61 = vshll.u32 %v825_v36, 16  ;;  %1419 = vmatmul.bf16.gmra.mxu1 %v6841_v10  ;;  %v973_v27 = vshrl.u32 %v826_v37, 16  ;;  %v2464_v36 = vshrl.u32 %v2373_v21, 16  ;;  %v2376_v11 = vld [vmem:[#allocation2 + $0x68] sm:$0xf] }
  0xe4   : > { %v614_v46 = vadd.f32 %v7483_v6, %v579_v40  ;;  %v958_v58 = vrot.slane %v956_v42, 7  ;;  %v967_v56 = vrot.slane %v965_v44, 7  ;;  %v2372_v42 = vld [vmem:[#allocation2 + $0x4c] sm:$0x8] }
  0xe5   : > { %v2459_v49 = vshrl.u32 %v2372_v42, 16  ;;  %v2466_v50 = vrot.slane %v2464_v36, 7  ;;  %v6146_v54 = vrot.slane %v973_v27, 11 }
  0xe6   : > { %v646_v55 = vmax.f32 %v614_v46, 0.0  ;;  %v961_v3 = vor.u32 %v959_v59, %v958_v58  ;;  %v963_v5 = vrot.slane %v958_v58, 4  ;;  %v970_v7 = vor.u32 %v968_v61, %v967_v56 }
  0xe7   : > { %v2467_v56 = vshll.u32 %v2373_v21, 16  ;;  %v2471_v62 = vrot.slane %v2466_v50, 4 }
  0xe8   : > { %v6989_v57 = vpack.c.bf16 %v646_v55, %v645_v53  ;;  %v962_v16 = vsel %vm7445_vm3, %v6145_v2, %v961_v3  ;;  %v971_v35 = vsel %vm7445_vm3, %v963_v5, %v970_v7  ;;  %v2816_v53 = vpack.c.b16 %v2786_v33, %v2785_v31 }
  0xe9   : > { %v512_v60 = vpop.f32.mrf.mxu0  ;;  %v1488_v17 = vunpack.c.l.b16 %v962_v16  ;;  %v1489_v25 = vunpack.c.l.b16 %v971_v35  ;;  %v2469_v61 = vor.u32 %v2467_v56, %v2466_v50  ;;  %v2377_v35 = vld [vmem:[#allocation2 + $0x6c] sm:$0xf] }
  0xea   : > { %7050 = vst [vmem:[#allocation2 + $0x80] sm:$0xff] %v6989_v57   ;;  %v580_v15 = vmul.f32 %v7474_v4, %v512_v60  ;;  %v2476_v57 = vshll.u32 %v2374_v29, 16  ;;  %v6351_v60 = vrot.slane %v2459_v49, 11  ;;  %v2495_v21 = vshrl.u32 %v2377_v35, 16 }
  0xeb   : > { %v1516_v39 = vpack.c.b16 %v1489_v25, %v1488_v17 }
  0xec   : > { %2903 = vmatmul.bf16.vlgmr.msrb.gmra.mxu0 %v2815_v1  ;;  %v615_v22 = vadd.f32 %v7483_v6, %v580_v15  ;;  %v2478_v63 = vor.u32 %v2476_v57, %v2475_v51  ;;  %v2470_v7 = vsel %vm7445_vm3, %v6351_v60, %v2469_v61  ;;  %v829_v15 = vld [vmem:[#allocation2 + $0x94] sm:$0x8]  ;;  %v2497_v45 = vrot.slane %v2495_v21, 7 }
  0xed   : > { %v2787_v23 = vunpack.c.l.b16 %v2470_v7 }
  0xee   : > { %v647_v38 = vmax.f32 %v615_v22, 0.0  ;;  %1620 = vmatmul.bf16.gmra.mxu2 %v1516_v39  ;;  %v2479_v8 = vsel %vm7445_vm3, %v2471_v62, %v2478_v63 }
  0xef   : > { %v2788_v34 = vunpack.c.l.b16 %v2479_v8 }
  0xf1   : > { %v514_v18 = vpop.f32.mrf.mxu0  ;;  %v827_v19 = vld [vmem:[#allocation2 + $0x80] sm:$0xf]  ;;  %v828_v20 = vld [vmem:[#allocation2 + $0x84] sm:$0xf] }
  0xf2   : > { %v581_v24 = vmul.f32 %v7474_v4, %v514_v18  ;;  %v978_v28 = vshrl.u32 %v827_v19, 16  ;;  %v987_v26 = vshrl.u32 %v828_v20, 16  ;;  %v981_v46 = vshll.u32 %v827_v19, 16  ;;  %v6842_v59 = vld [vmem:[#allocation2 + $0x80] sm:$0xff] }
  0xf3   : > { %v990_v48 = vshll.u32 %v828_v20, 16  ;;  %1424 = vmatmul.bf16.gmra.mxu1 %v6842_v59  ;;  %v995_v19 = vshrl.u32 %v829_v15, 16  ;;  %v2486_v20 = vshrl.u32 %v2376_v11, 16  ;;  %v2379_v60 = vld [vmem:[#allocation2 + $0x80] sm:$0xf] }
  0xf4   : > { %v616_v30 = vadd.f32 %v7483_v6, %v581_v24  ;;  %v980_v41 = vrot.slane %v978_v28, 7  ;;  %v989_v43 = vrot.slane %v987_v26, 7  ;;  %v2375_v28 = vld [vmem:[#allocation2 + $0x64] sm:$0x8] }
  0xf5   : > { %v2481_v27 = vshrl.u32 %v2375_v28, 16  ;;  %v2488_v36 = vrot.slane %v2486_v20, 7  ;;  %v6147_v39 = vrot.slane %v995_v19, 11  ;;  %v2511_v28 = vshll.u32 %v2379_v60, 16 }
  0xf6   : > { %v648_v40 = vmax.f32 %v616_v30, 0.0  ;;  %v983_v55 = vor.u32 %v981_v46, %v980_v41  ;;  %v985_v58 = vrot.slane %v980_v41, 4  ;;  %v992_v32 = vor.u32 %v990_v48, %v989_v43 }
  0xf7   : > { %v2489_v43 = vshll.u32 %v2376_v11, 16  ;;  %v2493_v49 = vrot.slane %v2488_v36, 4 }
  0xf8   : > { %v6994_v44 = vpack.c.bf16 %v648_v40, %v647_v38  ;;  %v984_v1 = vsel %vm7445_vm3, %v6146_v54, %v983_v55  ;;  %v993_v2 = vsel %vm7445_vm3, %v985_v58, %v992_v32  ;;  %v2817_v38 = vpack.c.b16 %v2788_v34, %v2787_v23 }
  0xf9   : > { %v517_v47 = vpop.f32.mrf.mxu0  ;;  %v1490_v3 = vunpack.c.l.b16 %v984_v1  ;;  %v1491_v13 = vunpack.c.l.b16 %v993_v2  ;;  %v2491_v48 = vor.u32 %v2489_v43, %v2488_v36  ;;  %v2380_v2 = vld [vmem:[#allocation2 + $0x84] sm:$0xf] }
  0xfa   : > { %7051 = vst [vmem:[#allocation2 + $0x98] sm:$0xff] %v6994_v44   ;;  %v582_v0 = vmul.f32 %v7474_v4, %v517_v47  ;;  %v2498_v44 = vshll.u32 %v2377_v35, 16  ;;  %v6352_v47 = vrot.slane %v2481_v27, 11  ;;  %v2517_v11 = vshrl.u32 %v2380_v2, 16 }
  0xfb   : > { %v1517_v25 = vpack.c.b16 %v1491_v13, %v1490_v3 }
  0xfc   : > { %2908 = vmatmul.bf16.gmra.mxu0 %v2816_v53  ;;  %v617_v12 = vadd.f32 %v7483_v6, %v582_v0  ;;  %v2500_v50 = vor.u32 %v2498_v44, %v2497_v45  ;;  %v2492_v32 = vsel %vm7445_vm3, %v6352_v47, %v2491_v48  ;;  %v832_v0 = vld [vmem:[#allocation2 + $0xac] sm:$0x8]  ;;  %v2519_v21 = vrot.slane %v2517_v11, 7  ;;  %v389_v44 = vld [vmem:[%s7345_s18 + $0xf0] sm:$0xff] }
  0xfd   : > { %v2789_v7 = vunpack.c.l.b16 %v2492_v32 }
  0xfe   : > { %v649_v22 = vmax.f32 %v617_v12, 0.0  ;;  %1625 = vmatmul.bf16.gmra.mxu2 %v1517_v25  ;;  %v2501_v56 = vsel %vm7445_vm3, %v2493_v49, %v2500_v50 }
  0xff   : > { %v2790_v8 = vunpack.c.l.b16 %v2501_v56 }
 0x101   : > { %v519_v5 = vpop.f32.mrf.mxu0  ;;  %v830_v9 = vld [vmem:[#allocation2 + $0x98] sm:$0xf]  ;;  %v831_v10 = vld [vmem:[#allocation2 + $0x9c] sm:$0xf] }
 0x102   : > { %v583_v14 = vmul.f32 %v7474_v4, %v519_v5  ;;  %v1000_v16 = vshrl.u32 %v830_v9, 16  ;;  %v1009_v17 = vshrl.u32 %v831_v10, 16  ;;  %v1003_v30 = vshll.u32 %v830_v9, 16  ;;  %v6843_v46 = vld [vmem:[#allocation2 + $0x98] sm:$0xff] }
 0x103   : > { %v1012_v33 = vshll.u32 %v831_v10, 16  ;;  %1429 = vmatmul.bf16.gmra.mxu1 %v6843_v46  ;;  %v1017_v9 = vshrl.u32 %v832_v0, 16  ;;  %v2508_v10 = vshrl.u32 %v2379_v60, 16  ;;  %v390_v46 = vld [vmem:[%s7345_s18 + $0xf8] sm:$0xff] }
 0x104   : > { %v618_v18 = vadd.f32 %v7483_v6, %v583_v14  ;;  %v1002_v37 = vrot.slane %v1000_v16, 7  ;;  %v1011_v29 = vrot.slane %v1009_v17, 7  ;;  %v2378_v16 = vld [vmem:[#allocation2 + $0x7c] sm:$0x8] }
 0x105   : > { %v2503_v19 = vshrl.u32 %v2378_v16, 16  ;;  %v2510_v20 = vrot.slane %v2508_v10, 7  ;;  %v6148_v25 = vrot.slane %v1017_v9, 11  ;;  %v2383_v60 = vld [vmem:[#allocation2 + $0x9c] sm:$0xf] }
 0x106   : > { %v650_v24 = vmax.f32 %v618_v18, 0.0  ;;  %v1005_v40 = vor.u32 %v1003_v30, %v1002_v37  ;;  %v1007_v41 = vrot.slane %v1002_v37, 4  ;;  %v1014_v42 = vor.u32 %v1012_v33, %v1011_v29  ;;  %v1400_v37 = vpop.f32.mrf.mxu1  ;;  %v6908_v29 = vld [vmem:[%s9183_s4 + $0x138] sm:$0xff]  ;;  %v2381_v10 = vld [vmem:[#allocation2 + $0x94] sm:$0x8] }
 0x107   : > { %v2520_v33 = vshll.u32 %v2380_v2, 16  ;;  %3177 = vmatpush.bf16.msrb.mxu1 %v6908_v29  ;;  %v6353_v45 = vrot.slane %v2503_v19, 11  ;;  %v2525_v16 = vshrl.u32 %v2381_v10, 16 }
 0x108   : > { %v6999_v26 = vpack.c.bf16 %v650_v24, %v649_v22  ;;  %v1006_v53 = vsel %vm7445_vm3, %v6147_v39, %v1005_v40  ;;  %v1015_v54 = vsel %vm7445_vm3, %v1007_v41, %v1014_v42  ;;  %v2818_v22 = vpack.c.b16 %v2790_v8, %v2789_v7 }
 0x109   : > { %v522_v31 = vpop.f32.mrf.mxu0  ;;  %v1492_v55 = vunpack.c.l.b16 %v1006_v53  ;;  %v1493_v62 = vunpack.c.l.b16 %v1015_v54  ;;  %v2515_v39 = vrot.slane %v2510_v20, 4  ;;  %v2522_v40 = vor.u32 %v2520_v33, %v2519_v21 }
 0x10a   : > { %7052 = vst [vmem:[#allocation2 + $0xb0] sm:$0xff] %v6999_v26   ;;  %v584_v51 = vmul.f32 %v7474_v4, %v522_v31  ;;  %v1601_v26 = vpop.f32.mrf.mxu2  ;;  %v412_v54 = vpack.c.bf16 %v390_v46, %v389_v44 }
 0x10b   : > { %v1518_v13 = vpack.c.b16 %v1493_v62, %v1492_v55  ;;  %v7633_v27 = vadd.f32 %v1601_v26, %v1400_v37  ;;  %v2523_v50 = vsel %vm7445_vm3, %v2515_v39, %v2522_v40  ;;  %v2382_v55 = vld [vmem:[#allocation2 + $0x98] sm:$0xf] }
 0x10c   : > { %2913 = vmatmul.bf16.gmra.mxu0 %v2817_v38  ;;  %v619_v61 = vadd.f32 %v7483_v6, %v584_v51  ;;  %v2513_v38 = vor.u32 %v2511_v28, %v2510_v20  ;;  %6140 = vmatmul.msk.bf16.gmra.mxu3 %vm429_vm0, %v412_v54  ;;  %v2792_v0 = vunpack.c.l.b16 %v2523_v50  ;;  %v2530_v2 = vshrl.u32 %v2382_v55, 16 }
 0x10d   : > { %v2533_v21 = vshll.u32 %v2382_v55, 16 }
 0x10e   : > { %v651_v12 = vmax.f32 %v619_v61, 0.0  ;;  %1630 = vmatmul.bf16.gmra.mxu2 %v1518_v13  ;;  %v2514_v49 = vsel %vm7445_vm3, %v6353_v45, %v2513_v38 }
 0x111   : > { %v524_v58 = vpop.f32.mrf.mxu0  ;;  %v833_v57 = vld [vmem:[#allocation2 + $0xb0] sm:$0xf]  ;;  %v834_v59 = vld [vmem:[#allocation2 + $0xb4] sm:$0xf] }
 0x112   : > { %v585_v63 = vmul.f32 %v7474_v4, %v524_v58  ;;  %v1022_v1 = vshrl.u32 %v833_v57, 16  ;;  %v1031_v3 = vshrl.u32 %v834_v59, 16  ;;  %v1025_v18 = vshll.u32 %v833_v57, 16  ;;  %v6844_v36 = vld [vmem:[#allocation2 + $0xb0] sm:$0xff]  ;;  %v835_v57 = vld [vmem:[#allocation2 + $0xc4] sm:$0x8] }
 0x113   : > { %v1034_v34 = vshll.u32 %v834_v59, 16  ;;  %1434 = vmatmul.bf16.gmra.mxu1 %v6844_v36  ;;  %v6907_v36 = vld [vmem:[%s9183_s4 + $0x130] sm:$0xff] }
 0x114   : > { %v620_v5 = vadd.f32 %v7483_v6, %v585_v63  ;;  %v1024_v15 = vrot.slane %v1022_v1, 7  ;;  %v1033_v35 = vrot.slane %v1031_v3, 7  ;;  %v2791_v63 = vunpack.c.l.b16 %v2514_v49  ;;  %3178 = vmatpush.bf16.msrb.mxu1 %v6907_v36  ;;  %v2386_v50 = vld [vmem:[#allocation2 + $0xb4] sm:$0xf] }
 0x115   : > { %v1039_v1 = vshrl.u32 %v835_v57, 16  ;;  %v2539_v3 = vshrl.u32 %v2383_v60, 16 }
 0x116   : > { %v652_v14 = vmax.f32 %v620_v5, 0.0  ;;  %v1027_v24 = vor.u32 %v1025_v18, %v1024_v15  ;;  %v1029_v30 = vrot.slane %v1024_v15, 4  ;;  %v1036_v31 = vor.u32 %v1034_v34, %v1033_v35 }
 0x117   : > { %v2532_v35 = vrot.slane %v2530_v2, 7  ;;  %v2819_v18 = vpack.c.b16 %v2792_v0, %v2791_v63  ;;  %v7667_v63 = vpop.f32.mrf.mxu2 }
 0x118   : > { %v7004_v17 = vpack.c.bf16 %v652_v14, %v651_v12  ;;  %v1028_v42 = vsel %vm7445_vm3, %v6148_v25, %v1027_v24  ;;  %v1037_v43 = vsel %vm7445_vm3, %v1029_v30, %v1036_v31  ;;  %v6354_v24 = vrot.slane %v2525_v16, 11  ;;  %v7653_v31 = vpop.f32.mrf.mxu1  ;;  %9195 = vst [vmem:[#allocation7_spill] sm:$0xff] %v7667_v63 }
 0x119   : > { %v527_v23 = vpop.f32.mrf.mxu0  ;;  %v1494_v47 = vunpack.c.l.b16 %v1028_v42  ;;  %v1495_v32 = vunpack.c.l.b16 %v1037_v43  ;;  %v2535_v37 = vor.u32 %v2533_v21, %v2532_v35  ;;  %v2537_v28 = vrot.slane %v2532_v35, 4  ;;  %9194 = vst [vmem:[#allocation6_spill] sm:$0xff] %v7653_v31  ;;  %v2385_v43 = vld [vmem:[#allocation2 + $0xb0] sm:$0xf]  ;;  %v3339_v31 = vld [vmem:[#allocation2 + $0x160] sm:$0x1] }
 0x11a   : > { %7053 = vst [vmem:[#allocation2 + $0xc8] sm:$0xff] %v7004_v17   ;;  %v586_v41 = vmul.f32 %v7474_v4, %v527_v23  ;;  %v2541_v17 = vrot.slane %v2539_v3, 7  ;;  %v6149_v23 = vrot.slane %v1039_v1, 11  ;;  %v2555_v16 = vshll.u32 %v2385_v43, 16 }
 0x11b   : > { %v1519_v7 = vpack.c.b16 %v1495_v32, %v1494_v47  ;;  %v2536_v39 = vsel %vm7445_vm3, %v6354_v24, %v2535_v37  ;;  %v2552_v32 = vshrl.u32 %v2385_v43, 16  ;;  %v2564_v35 = vshll.u32 %v2386_v50, 16  ;;  %v6915_v24 = vld [vmem:[%s9183_s4 + $0x170] sm:$0xff] }
 0x11c   : > { %2918 = vmatmul.bf16.gmra.mxu0 %v2818_v22  ;;  %v621_v58 = vadd.f32 %v7483_v6, %v586_v41  ;;  %v2542_v22 = vshll.u32 %v2383_v60, 16  ;;  %v2793_v54 = vunpack.c.l.b16 %v2536_v39  ;;  %v6914_v39 = vld [vmem:[%s9183_s4 + $0x168] sm:$0xff] }
 0x11e   : > { %v653_v5 = vmax.f32 %v621_v58, 0.0  ;;  %1635 = vmatmul.bf16.gmra.mxu2 %v1519_v7  ;;  %v2544_v29 = vor.u32 %v2542_v22, %v2541_v17 }
 0x120   : > { %v2545_v40 = vsel %vm7445_vm3, %v2537_v28, %v2544_v29  ;;  %v6904_v28 = vld [vmem:[%s9183_s4 + $0x118] sm:$0xff] }
 0x121   : > { %v529_v48 = vpop.f32.mrf.mxu0  ;;  %v836_v51 = vld [vmem:[#allocation2 + $0xc8] sm:$0xf]  ;;  %v837_v53 = vld [vmem:[#allocation2 + $0xcc] sm:$0xf]  ;;  %v2794_v55 = vunpack.c.l.b16 %v2545_v40  ;;  %v7704_v40 = vld [vmem:[%s9182_s3] ss:$0 sm:$0xff] }
 0x122   : > { %v587_v56 = vmul.f32 %v7474_v4, %v529_v48  ;;  %v1044_v59 = vshrl.u32 %v836_v51, 16  ;;  %v1053_v61 = vshrl.u32 %v837_v53, 16  ;;  %v1047_v13 = vshll.u32 %v836_v51, 16  ;;  %v6845_v25 = vld [vmem:[#allocation2 + $0xc8] sm:$0xff]  ;;  %v838_v48 = vld [vmem:[#allocation2 + $0xdc] sm:$0x8] }
 0x123   : > { %v1056_v15 = vshll.u32 %v837_v53, 16  ;;  %1439 = vmatmul.bf16.gmra.mxu1 %v6845_v25  ;;  %v1061_v58 = vshrl.u32 %v838_v48, 16  ;;  %v6905_v25 = vld [vmem:[%s9183_s4 + $0x120] sm:$0xff] }
 0x124   : > { %v622_v62 = vadd.f32 %v7483_v6, %v587_v56  ;;  %v1046_v9 = vrot.slane %v1044_v59, 7  ;;  %v1055_v11 = vrot.slane %v1053_v61, 7  ;;  %v2561_v56 = vshrl.u32 %v2386_v50, 16 }
 0x125   : > { %v6150_v10 = vrot.slane %v1061_v58, 11  ;;  %v2387_v58 = vld [vmem:[#allocation2 + $0xc4] sm:$0x8] }
 0x126   : > { %v654_v8 = vmax.f32 %v622_v62, 0.0  ;;  %v1049_v34 = vor.u32 %v1047_v13, %v1046_v9  ;;  %v1051_v19 = vrot.slane %v1046_v9, 4  ;;  %v1058_v20 = vor.u32 %v1056_v15, %v1055_v11  ;;  %v2384_v62 = vld [vmem:[#allocation2 + $0xac] sm:$0x8]  ;;  %v6916_v13 = vld [vmem:[%s9183_s4 + $0x178] sm:$0xff] }
 0x127   : > { %v2547_v7 = vshrl.u32 %v2384_v62, 16  ;;  %v2820_v9 = vpack.c.b16 %v2794_v55, %v2793_v54  ;;  %3859 = vmatpush.bf16.msrb.mxu2 %v6916_v13  ;;  %v6903_v62 = vld [vmem:[%s9183_s4 + $0x110] sm:$0xff] }
 0x128   : > { %v7009_v12 = vpack.c.bf16 %v654_v8, %v653_v5  ;;  %v1050_v30 = vsel %vm7445_vm3, %v6149_v23, %v1049_v34  ;;  %v1059_v33 = vsel %vm7445_vm3, %v1051_v19, %v1058_v20  ;;  %v2563_v8 = vrot.slane %v2561_v56, 7  ;;  %v7678_v20 = vld [vmem:[%s9181_s2] ss:$0 sm:$0xff] }
 0x129   : > { %v532_v14 = vpop.f32.mrf.mxu0  ;;  %v1496_v45 = vunpack.c.l.b16 %v1050_v30  ;;  %v1497_v46 = vunpack.c.l.b16 %v1059_v33 }
 0x12a   : > { %7054 = vst [vmem:[#allocation2 + $0xe0] sm:$0xff] %v7009_v12   ;;  %v588_v26 = vmul.f32 %v7474_v4, %v532_v14  ;;  %v6906_v12 = vld [vmem:[%s9183_s4 + $0x128] sm:$0xff]  ;;  %v2566_v19 = vor.u32 %v2564_v35, %v2563_v8 }
 0x12b   : > { %v1520_v59 = vpack.c.b16 %v1497_v46, %v1496_v45  ;;  %3179 = vmatpush.bf16.msrb.mxu1 %v6906_v12  ;;  %3860 = vmatpush.bf16.msrb.mxu2 %v6915_v24  ;;  %v2388_v46 = vld [vmem:[#allocation2 + $0xc8] sm:$0xf] }
 0x12c   : > { %2923 = vmatmul.bf16.gmra.mxu0 %v2819_v18  ;;  %v623_v44 = vadd.f32 %v7483_v6, %v588_v26  ;;  %v6355_v18 = vrot.slane %v2547_v7, 11  ;;  %v2569_v7 = vshrl.u32 %v2387_v58, 16  ;;  %v6902_v35 = vld [vmem:[%s9183_s4 + $0x108] sm:$0xff] }
 0x12e   : > { %v655_v57 = vmax.f32 %v623_v44, 0.0  ;;  %1640 = vmatmul.bf16.gmra.mxu2 %v1520_v59 }
 0x12f   : > { %v1405_v2 = vpop.f32.mrf.mxu1  ;;  %3180 = vmatpush.bf16.msrb.mxu1 %v6905_v25  ;;  %3861 = vmatpush.bf16.msrb.mxu2 %v6914_v39  ;;  %v6356_v25 = vrot.slane %v2569_v7, 11 }
 0x131   : > { %v534_v38 = vpop.f32.mrf.mxu0  ;;  %v839_v41 = vld [vmem:[#allocation2 + $0xe0] sm:$0xf]  ;;  %v840_v42 = vld [vmem:[#allocation2 + $0xe4] sm:$0xf] }
 0x132   : > { %v589_v47 = vmul.f32 %v7474_v4, %v534_v38  ;;  %v1066_v49 = vshrl.u32 %v839_v41, 16  ;;  %v1075_v51 = vshrl.u32 %v840_v42, 16  ;;  %v1069_v1 = vshll.u32 %v839_v41, 16  ;;  %v6846_v17 = vld [vmem:[#allocation2 + $0xe0] sm:$0xff] }
 0x133   : > { %v1078_v5 = vshll.u32 %v840_v42, 16  ;;  %1444 = vmatmul.bf16.gmra.mxu1 %v6846_v17  ;;  %v6912_v17 = vld [vmem:[%s9183_s4 + $0x158] sm:$0xff] }
 0x134   : > { %v624_v53 = vadd.f32 %v7483_v6, %v589_v47  ;;  %v1068_v61 = vrot.slane %v1066_v49, 7  ;;  %v1077_v4 = vrot.slane %v1075_v51, 7  ;;  %v2554_v6 = vrot.slane %v2552_v32, 7  ;;  %v2389_v47 = vld [vmem:[#allocation2 + $0xcc] sm:$0xf]  ;;  %3181 = vmatpush.bf16.msrb.mxu1 %v6904_v28 }
 0x135   : > { %v841_v49 = vld [vmem:[#allocation2 + $0xf4] sm:$0x8]  ;;  %v2574_v32 = vshrl.u32 %v2388_v46, 16  ;;  %v2583_v56 = vshrl.u32 %v2389_v47, 16 }
 0x136   : > { %v656_v60 = vmax.f32 %v624_v53, 0.0  ;;  %v1071_v11 = vor.u32 %v1069_v1, %v1068_v61  ;;  %v1073_v14 = vrot.slane %v1068_v61, 4  ;;  %v1080_v15 = vor.u32 %v1078_v5, %v1077_v4  ;;  %v6913_v4 = vld [vmem:[%s9183_s4 + $0x160] sm:$0xff] }
 0x137   : > { %v2557_v23 = vor.u32 %v2555_v16, %v2554_v6  ;;  %v2559_v34 = vrot.slane %v2554_v6, 4  ;;  %v1407_v48 = vpop.f32.mrf.mxu1  ;;  %v1083_v61 = vshrl.u32 %v841_v49, 16  ;;  %3862 = vmatpush.bf16.msrb.mxu2 %v6913_v4  ;;  %v2585_v12 = vrot.slane %v2583_v56, 7 }
 0x138   : > { %v7014_v0 = vpack.c.bf16 %v656_v60, %v655_v57  ;;  %v1072_v22 = vsel %vm7445_vm3, %v6150_v10, %v1071_v11  ;;  %v1081_v37 = vsel %vm7445_vm3, %v1073_v14, %v1080_v15  ;;  %3182 = vmatpush.bf16.msrb.mxu1 %v6903_v62  ;;  %v2576_v11 = vrot.slane %v2574_v32, 7  ;;  %v844_v32 = vld [vmem:[#allocation2 + $0x10c] sm:$0x8] }
 0x139   : > { %v537_v3 = vpop.f32.mrf.mxu0  ;;  %v1498_v29 = vunpack.c.l.b16 %v1072_v22  ;;  %v2558_v33 = vsel %vm7445_vm3, %v6355_v18, %v2557_v23  ;;  %v2567_v36 = vsel %vm7445_vm3, %v2559_v34, %v2566_v19  ;;  %v1499_v42 = vunpack.c.l.b16 %v1081_v37 }
 0x13a   : > { %7055 = vst [vmem:[#allocation2 + $0xf8] sm:$0xff] %v7014_v0   ;;  %v590_v21 = vmul.f32 %v7678_v20, %v537_v3  ;;  %v2795_v54 = vunpack.c.l.b16 %v2558_v33  ;;  %v2796_v55 = vunpack.c.l.b16 %v2567_v36  ;;  %v6151_v14 = vrot.slane %v1083_v61, 11 }
 0x13b   : > { %v1521_v59 = vpack.c.b16 %v1499_v42, %v1498_v29  ;;  %v2577_v15 = vshll.u32 %v2388_v46, 16  ;;  %v2586_v16 = vshll.u32 %v2389_v47, 16  ;;  %v2581_v37 = vrot.slane %v2576_v11, 4  ;;  %3863 = vmatpush.bf16.msrb.mxu2 %v6912_v17 }
 0x13c   : > { %2928 = vmatmul.bf16.gmra.mxu0 %v2820_v9  ;;  %v625_v41 = vadd.f32 %v7704_v40, %v590_v21  ;;  %v2821_v5 = vpack.c.b16 %v2796_v55, %v2795_v54  ;;  %3183 = vmatpush.bf16.msrb.mxu1 %v6902_v35  ;;  %v2391_v54 = vld [vmem:[#allocation2 + $0xe0] sm:$0xf]  ;;  %v2392_v55 = vld [vmem:[#allocation2 + $0xe4] sm:$0xf] }
 0x13d   : > { %v2579_v24 = vor.u32 %v2577_v15, %v2576_v11  ;;  %v2588_v28 = vor.u32 %v2586_v16, %v2585_v12 }
 0x13e   : > { %v657_v57 = vmax.f32 %v625_v41, 0.0  ;;  %1645 = vmatmul.bf16.gmra.mxu2 %v1521_v59 }
 0x13f   : > { %v7726_v22 = vpop.f32.mrf.mxu1  ;;  %v2580_v41 = vsel %vm7445_vm3, %v6356_v25, %v2579_v24  ;;  %v2589_v42 = vsel %vm7445_vm3, %v2581_v37, %v2588_v28  ;;  %v2599_v25 = vshll.u32 %v2391_v54, 16  ;;  %v2608_v24 = vshll.u32 %v2392_v55, 16 }
 0x140   : > { %v2797_v61 = vunpack.c.l.b16 %v2580_v41  ;;  %v2798_v4 = vunpack.c.l.b16 %v2589_v42 }
 0x141   : > { %v1606_v26 = vpop.f32.mrf.mxu2  ;;  %v539_v30 = vpop.f32.mrf.mxu0  ;;  %v842_v45 = vld [vmem:[#allocation2 + $0xf8] sm:$0xf]  ;;  %v843_v38 = vld [vmem:[#allocation2 + $0xfc] sm:$0xf] }
 0x142   : > { %v7707_v43 = vadd.f32 %v1606_v26, %v1405_v2  ;;  %v591_v44 = vmul.f32 %v7678_v20, %v539_v30  ;;  %v1088_v50 = vshrl.u32 %v842_v45, 16  ;;  %v1097_v51 = vshrl.u32 %v843_v38, 16  ;;  %v552_v2 = vpop.f32.mrf.mxu3  ;;  %v6847_v21 = vld [vmem:[#allocation2 + $0xf8] sm:$0xff]  ;;  %v6901_v26 = vld [vmem:[%s9183_s4 + $0x100] sm:$0xff]  ;;  %v6911_v30 = vld [vmem:[%s9183_s4 + $0x150] sm:$0xff] }
 0x143   : > { %v1091_v9 = vshll.u32 %v842_v45, 16  ;;  %v1100_v10 = vshll.u32 %v843_v38, 16  ;;  %v596_v19 = vmul.f32 %v7678_v20, %v552_v2  ;;  %1449 = vmatmul.bf16.gmra.mxu1 %v6847_v21  ;;  %3864 = vmatpush.bf16.msrb.mxu2 %v6911_v30  ;;  %v2596_v2 = vshrl.u32 %v2391_v54, 16 }
 0x144   : > { %v626_v53 = vadd.f32 %v7704_v40, %v591_v44  ;;  %v1090_v0 = vrot.slane %v1088_v50, 7  ;;  %v1099_v1 = vrot.slane %v1097_v51, 7  ;;  %3184 = vmatpush.bf16.msrb.mxu1 %v6901_v26 }
 0x145   : > { %v631_v45 = vadd.f32 %v7704_v40, %v596_v19  ;;  %v2822_v19 = vpack.c.b16 %v2798_v4, %v2797_v61 }
 0x146   : > { %v658_v60 = vmax.f32 %v626_v53, 0.0  ;;  %v1093_v18 = vor.u32 %v1091_v9, %v1090_v0  ;;  %v1095_v23 = vrot.slane %v1090_v0, 4  ;;  %v1102_v34 = vor.u32 %v1100_v10, %v1099_v1  ;;  %v2390_v1 = vld [vmem:[#allocation2 + $0xdc] sm:$0x8]  ;;  %v6909_v9 = vld [vmem:[%s9183_s4 + $0x140] sm:$0xff] }
 0x147   : > { %v663_v58 = vmax.f32 %v631_v45, 0.0  ;;  %v7752_v62 = vpop.f32.mrf.mxu1  ;;  %v2591_v15 = vshrl.u32 %v2390_v1, 16 }
 0x148   : > { %v7019_v3 = vpack.c.bf16 %v658_v60, %v657_v57  ;;  %v1094_v33 = vsel %vm7445_vm3, %v6151_v14, %v1093_v18  ;;  %v1103_v36 = vsel %vm7445_vm3, %v1095_v23, %v1102_v34  ;;  %v2598_v23 = vrot.slane %v2596_v2, 7 }
 0x149   : > { %v1608_v6 = vpop.f32.mrf.mxu2  ;;  %v542_v8 = vpop.f32.mrf.mxu0  ;;  %v1500_v50 = vunpack.c.l.b16 %v1094_v33  ;;  %v1501_v51 = vunpack.c.l.b16 %v1103_v36  ;;  %v3298_v33 = vld [vmem:[#allocation2 + $0x20] sm:$0xf] }
 0x14a   : > { %7056 = vst [vmem:[#allocation2 + $0x110] sm:$0xff] %v7019_v3   ;;  %v7717_v13 = vadd.f32 %v1608_v6, %v1407_v48  ;;  %v592_v29 = vmul.f32 %v7678_v20, %v542_v8  ;;  %v554_v38 = vpop.f32.mrf.mxu3  ;;  %v6910_v48 = vld [vmem:[%s9183_s4 + $0x148] sm:$0xff]  ;;  %v2605_v3 = vshrl.u32 %v2392_v55, 16  ;;  %v1105_v8 = vshrl.u32 %v844_v32, 16 }
 0x14b   : > { %v597_v47 = vmul.f32 %v7678_v20, %v554_v38  ;;  %3865 = vmatpush.bf16.msrb.mxu2 %v6910_v48  ;;  %v1522_v7 = vpack.c.b16 %v1501_v51, %v1500_v50  ;;  %v6357_v38 = vrot.slane %v2591_v15, 11  ;;  %v2603_v41 = vrot.slane %v2598_v23, 4  ;;  %v3300_v15 = vld [vmem:[#allocation2 + $0x28] sm:$0x1] }
 0x14c   : > { %2933 = vmatmul.bf16.gmra.mxu0 %v2821_v5  ;;  %v627_v49 = vadd.f32 %v7704_v40, %v592_v29  ;;  %v2607_v34 = vrot.slane %v2605_v3, 7  ;;  %v6152_v21 = vrot.slane %v1105_v8, 11  ;;  %v3347_v51 = vshrl.u32 %v3298_v33, 16  ;;  %v2394_v8 = vld [vmem:[#allocation2 + $0xf8] sm:$0xf] }
 0x14d   : > { %v632_v59 = vadd.f32 %v7704_v40, %v597_v47 }
 0x14e   : > { %v659_v5 = vmax.f32 %v627_v49, 0.0  ;;  %1650 = vmatmul.bf16.gmra.mxu2 %v1522_v7  ;;  %v2610_v42 = vor.u32 %v2608_v24, %v2607_v34  ;;  %v3349_v2 = vrot.slane %v3347_v51, 4 }
 0x14f   : > { %v664_v0 = vmax.f32 %v632_v59, 0.0  ;;  %3866 = vmatpush.bf16.msrb.mxu2 %v6909_v9  ;;  %v2395_v9 = vld [vmem:[#allocation2 + $0xfc] sm:$0xf] }
 0x150   : > { %v7758_v45 = vpop.f32.mrf.mxu1 }
 0x151   : > { %v544_v39 = vpop.f32.mrf.mxu0  ;;  %v845_v44 = vld [vmem:[#allocation2 + $0x110] sm:$0xf]  ;;  %v846_v46 = vld [vmem:[#allocation2 + $0x114] sm:$0xf]  ;;  %v7034_v12 = vpack.c.bf16 %v664_v0, %v663_v58  ;;  %v1611_v36 = vpop.f32.mrf.mxu2 }
 0x152   : > { %v593_v53 = vmul.f32 %v7678_v20, %v544_v39  ;;  %v1110_v56 = vshrl.u32 %v845_v44, 16  ;;  %v1119_v57 = vshrl.u32 %v846_v46, 16  ;;  %v557_v16 = vpop.f32.mrf.mxu3  ;;  %v1113_v17 = vshll.u32 %v845_v44, 16  ;;  %v6848_v30 = vld [vmem:[#allocation2 + $0x110] sm:$0xff]  ;;  %v3299_v44 = vld [vmem:[#allocation2 + $0x24] sm:$0xf] }
 0x153   : > { %v1122_v18 = vshll.u32 %v846_v46, 16  ;;  %7059 = vst [vmem:[#allocation2 + $0x158] sm:$0xff] %v7034_v12   ;;  %v598_v26 = vmul.f32 %v7678_v20, %v557_v16  ;;  %v2601_v39 = vor.u32 %v2599_v25, %v2598_v23  ;;  %v7761_v46 = vadd.f32 %v1611_v36, %v7726_v22  ;;  %1454 = vmatmul.bf16.gmra.mxu1 %v6848_v30 }
 0x154   : > { %v628_v60 = vadd.f32 %v7704_v40, %v593_v53  ;;  %v1112_v10 = vrot.slane %v1110_v56, 7  ;;  %v1121_v11 = vrot.slane %v1119_v57, 7  ;;  %v3350_v53 = vshll.u32 %v3298_v33, 16 }
 0x155   : > { %v633_v50 = vadd.f32 %v7704_v40, %v598_v26  ;;  %v3356_v54 = vshll.u32 %v3299_v44, 16  ;;  %v2602_v22 = vsel %vm7445_vm3, %v6357_v38, %v2601_v39  ;;  %v2611_v56 = vsel %vm7445_vm3, %v2603_v41, %v2610_v42 }
 0x156   : > { %v660_v6 = vmax.f32 %v628_v60, 0.0  ;;  %v1115_v37 = vor.u32 %v1113_v17, %v1112_v10  ;;  %v1117_v28 = vrot.slane %v1112_v10, 4  ;;  %v1124_v29 = vor.u32 %v1122_v18, %v1121_v11 }
 0x157   : > { %v3360_v57 = vshrl.u32 %v3299_v44, 16  ;;  %v665_v1 = vmax.f32 %v633_v50, 0.0  ;;  %v3352_v7 = vrot.slane %v3350_v53, 5  ;;  %v2799_v12 = vunpack.c.l.b16 %v2602_v22  ;;  %v3301_v50 = vld [vmem:[#allocation2 + $0x38] sm:$0xf]  ;;  %v6877_v53 = vld [vmem:[#allocation2 + $0x20] sm:$0xff] }
 0x158   : > { %v7024_v14 = vpack.c.bf16 %v660_v6, %v659_v5  ;;  %v1116_v48 = vsel %vm7445_vm3, %v6152_v21, %v1115_v37  ;;  %v1125_v49 = vsel %vm7445_vm3, %v1117_v28, %v1124_v29  ;;  %v3358_v6 = vrot.slane %v3356_v54, 5  ;;  %v7778_v11 = vpop.f32.mrf.mxu1  ;;  %v2393_v28 = vld [vmem:[#allocation2 + $0xf4] sm:$0x8] }
 0x159   : > { %v547_v35 = vpop.f32.mrf.mxu0  ;;  %v1502_v61 = vunpack.c.l.b16 %v1116_v48  ;;  %v1503_v4 = vunpack.c.l.b16 %v1125_v49  ;;  %v1613_v10 = vpop.f32.mrf.mxu2  ;;  %v3362_v16 = vrot.slane %v3360_v57, 4  ;;  %v2618_v21 = vshrl.u32 %v2394_v8, 16 }
 0x15a   : > { %7057 = vst [vmem:[#allocation2 + $0x128] sm:$0xff] %v7024_v14   ;;  %v594_v47 = vmul.f32 %v7678_v20, %v547_v35  ;;  %v559_v55 = vpop.f32.mrf.mxu3  ;;  %v2800_v14 = vunpack.c.l.b16 %v2611_v56  ;;  %v7781_v17 = vadd.f32 %v1613_v10, %v7752_v62  ;;  %v2627_v25 = vshrl.u32 %v2395_v9, 16  ;;  %v2398_v10 = vld [vmem:[#allocation2 + $0x114] sm:$0xf] }
 0x15b   : > { %v599_v59 = vmul.f32 %v7678_v20, %v559_v55  ;;  %v1523_v23 = vpack.c.b16 %v1503_v4, %v1502_v61  ;;  %v3366_v37 = vshll.u32 %v3300_v15, 16  ;;  %v3353_v26 = vor.u32 %v3352_v7, %v3349_v2  ;;  %v3302_v55 = vld [vmem:[#allocation2 + $0x3c] sm:$0xf] }
 0x15c   : > { %2938 = vmatmul.bf16.gmra.mxu0 %v2822_v19  ;;  %v629_v60 = vadd.f32 %v7704_v40, %v594_v47  ;;  %v3363_v30 = vor.u32 %v3362_v16, %v3358_v6  ;;  %v2823_v33 = vpack.c.b16 %v2800_v14, %v2799_v12  ;;  %v2613_v62 = vshrl.u32 %v2393_v28, 16 }
 0x15d   : > { %v634_v3 = vadd.f32 %v7704_v40, %v599_v59  ;;  %v2620_v36 = vrot.slane %v2618_v21, 7  ;;  %v2629_v38 = vrot.slane %v2627_v25, 7  ;;  %v3368_v39 = vrot.slane %v3366_v37, 5  ;;  %v2396_v37 = vld [vmem:[#allocation2 + $0x10c] sm:$0x8] }
 0x15e   : > { %v661_v18 = vmax.f32 %v629_v60, 0.0  ;;  %1655 = vmatmul.bf16.gmra.mxu2 %v1523_v23  ;;  %v3354_v44 = vrot.slane %v3353_v26, 4  ;;  %v3364_v47 = vrot.slane %v3363_v30, 4  ;;  %v2621_v48 = vshll.u32 %v2394_v8, 16 }
 0x15f   : > { %v666_v35 = vmax.f32 %v634_v3, 0.0  ;;  %v2630_v49 = vshll.u32 %v2395_v9, 16  ;;  %v2625_v22 = vrot.slane %v2620_v36, 4  ;;  %v3371_v57 = vshrl.u32 %v3301_v50, 16 }
 0x160   : > { %v7785_v42 = vpop.f32.mrf.mxu1  ;;  %v3374_v59 = vshll.u32 %v3301_v50, 16  ;;  %v3359_v60 = vsel %vm7792_vm6, %v3354_v44, %v3358_v6  ;;  %v2397_v6 = vld [vmem:[#allocation2 + $0x110] sm:$0xf]  ;;  %v2649_v21 = vshrl.u32 %v2398_v10, 16  ;;  %v2652_v50 = vshll.u32 %v2398_v10, 16 }
 0x161   : > { %v549_v58 = vpop.f32.mrf.mxu0  ;;  %v6849_v32 = vld [vmem:[#allocation2 + $0x128] sm:$0xff]  ;;  %v7039_v19 = vpack.c.bf16 %v666_v35, %v665_v1  ;;  %v1616_v41 = vpop.f32.mrf.mxu2  ;;  %v2632_v56 = vor.u32 %v2630_v49, %v2629_v38  ;;  %v3384_v1 = vshrl.u32 %v3302_v55, 16  ;;  %v3373_v8 = vrot.slane %v3371_v57, 4 }
 0x162   : > { %v595_v0 = vmul.f32 %v7678_v20, %v549_v58  ;;  %1459 = vmatmul.bf16.vlgmr.msrb.gmra.mxu3 %v6849_v32  ;;  %v7788_v51 = vadd.f32 %v1616_v41, %v7758_v45  ;;  %v6358_v58 = vrot.slane %v2613_v62, 11  ;;  %v2623_v32 = vor.u32 %v2621_v48, %v2620_v36 }
 0x163   : > { %7060 = vst [vmem:[#allocation2 + $0x170] sm:$0xff] %v7039_v19   ;;  %3185 = vmatmul.bf16.vlgmr.msrb.gmra.mxu1 %v6877_v53  ;;  %v3369_v45 = vsel %vm7792_vm6, %v3364_v47, %v3368_v39  ;;  %v2633_v3 = vsel %vm7445_vm3, %v2625_v22, %v2632_v56  ;;  %v3376_v9 = vrot.slane %v3374_v59, 5  ;;  %v3386_v16 = vrot.slane %v3384_v1, 4  ;;  %v3304_v39 = vld [vmem:[#allocation2 + $0x50] sm:$0xf] }
 0x164   : > { %v630_v5 = vadd.f32 %v7704_v40, %v595_v0  ;;  %v3380_v0 = vshll.u32 %v3302_v55, 16  ;;  %v2624_v2 = vsel %vm7445_vm3, %v6358_v58, %v2623_v32  ;;  %v3748_v7 = vunpack.c.l.b16 %v3369_v45  ;;  %v3305_v53 = vld [vmem:[#allocation2 + $0x54] sm:$0xf]  ;;  %v6878_v58 = vld [vmem:[#allocation2 + $0x38] sm:$0xff] }
 0x165   : > { %v2802_v23 = vunpack.c.l.b16 %v2633_v3  ;;  %v2640_v19 = vshrl.u32 %v2397_v6, 16  ;;  %v2635_v62 = vshrl.u32 %v2396_v37, 16  ;;  %v2651_v38 = vrot.slane %v2649_v21, 7 }
 0x166   : > { %v662_v34 = vmax.f32 %v630_v5, 0.0  ;;  %v3747_v5 = vunpack.c.l.b16 %v3359_v60  ;;  %v3382_v15 = vrot.slane %v3380_v0, 5  ;;  %v2643_v49 = vshll.u32 %v2397_v6, 16 }
 0x167   : > { %v2642_v36 = vrot.slane %v2640_v19, 7  ;;  %v3395_v32 = vshrl.u32 %v3304_v39, 16  ;;  %v3398_v22 = vshll.u32 %v3304_v39, 16  ;;  %v6359_v56 = vrot.slane %v2635_v62, 11 }
 0x168   : > { %v7029_v24 = vpack.c.bf16 %v662_v34, %v661_v18  ;;  %v1422_v14 = vpop.f32.mrf.mxu1  ;;  %v2801_v18 = vunpack.c.l.b16 %v2624_v2  ;;  %v3303_v34 = vld [vmem:[#allocation2 + $0x40] sm:$0x1]  ;;  %v3779_v25 = vpack.c.b16 %v3748_v7, %v3747_v5  ;;  %v3387_v26 = vor.u32 %v3386_v16, %v3382_v15  ;;  %v2401_v16 = vld [vmem:[#allocation2 + $0x12c] sm:$0xf] }
 0x169   : > { %v7783_v29 = vpop.f32.mrf.mxu0  ;;  %v1618_v12 = vpop.f32.mrf.mxu2  ;;  %v3390_v30 = vshll.u32 %v3303_v34, 16  ;;  %v2645_v57 = vor.u32 %v2643_v49, %v2642_v36  ;;  %v2647_v59 = vrot.slane %v2642_v36, 4  ;;  %v2654_v60 = vor.u32 %v2652_v50, %v2651_v38  ;;  %v3306_v34 = vld [vmem:[#allocation2 + $0x58] sm:$0x1]  ;;  %v2399_v36 = vld [vmem:[#allocation2 + $0x124] sm:$0x8] }
 0x16a   : > { %9196 = vst [vmem:[#allocation8_spill] sm:$0xff] %v7783_v29  ;;  %v7807_v35 = vadd.f32 %v1618_v12, %v7778_v11  ;;  %v3388_v47 = vrot.slane %v3387_v26, 4  ;;  %v3404_v45 = vshll.u32 %v3305_v53, 16  ;;  %v3397_v7 = vrot.slane %v3395_v32, 4  ;;  %v3307_v49 = vld [vmem:[#allocation2 + $0x68] sm:$0xf] }
 0x16b   : > { %7058 = vst [vmem:[#allocation2 + $0x140] sm:$0xff] %v7029_v24   ;;  %v3377_v24 = vor.u32 %v3376_v9, %v3373_v8  ;;  %v3392_v48 = vrot.slane %v3390_v30, 5  ;;  %v2646_v3 = vsel %vm7445_vm3, %v6359_v56, %v2645_v57  ;;  %v2655_v5 = vsel %vm7445_vm3, %v2647_v59, %v2654_v60  ;;  %v3308_v59 = vld [vmem:[#allocation2 + $0x6c] sm:$0xf] }
 0x16c   : > { %2943 = vmatmul.bf16.gmra.mxu0 %v2823_v33  ;;  %v2824_v33 = vpack.c.b16 %v2802_v23, %v2801_v18  ;;  %v3400_v8 = vrot.slane %v3398_v22, 5  ;;  %v7826_v10 = vrot.slane %v3404_v45, 5  ;;  %v2803_v21 = vunpack.c.l.b16 %v2646_v3  ;;  %v847_v3 = vld [vmem:[#allocation2 + $0x124] sm:$0x8] }
 0x16d   : > { %v3378_v11 = vrot.slane %v3377_v24, 4  ;;  %v3393_v1 = vsel %vm7792_vm6, %v3388_v47, %v3392_v48  ;;  %v2671_v37 = vshrl.u32 %v2401_v16, 16  ;;  %v3414_v62 = vshll.u32 %v3306_v34, 16  ;;  %v6852_v34 = vld [vmem:[#allocation2 + $0x170] sm:$0xff] }
 0x16e   : > { %3867 = vmatmul.bf16.vlgmr.msrb.gmra.mxu2 %v3779_v25  ;;  %v3750_v6 = vunpack.c.l.b16 %v3393_v1  ;;  %v2804_v25 = vunpack.c.l.b16 %v2655_v5  ;;  %v3401_v30 = vor.u32 %v3400_v8, %v3397_v7  ;;  %v2657_v47 = vshrl.u32 %v2399_v36, 16  ;;  %v6876_v5 = vld [vmem:[%s9183_s4 + $0xb8] sm:$0xff] }
 0x16f   : > { %v3383_v0 = vsel %vm7792_vm6, %v3378_v11, %v3382_v15  ;;  %v2400_v15 = vld [vmem:[#allocation2 + $0x128] sm:$0xf]  ;;  %v2674_v57 = vshll.u32 %v2401_v16, 16  ;;  %v3419_v1 = vshrl.u32 %v3307_v49, 16  ;;  %2245 = vmatpush.bf16.msrb.mxu3 %v6876_v5 }
 0x170   : > { %v7811_v44 = vpop.f32.mrf.mxu1  ;;  %v3749_v9 = vunpack.c.l.b16 %v3383_v0  ;;  %v2662_v24 = vshrl.u32 %v2400_v15, 16  ;;  %v2825_v39 = vpack.c.b16 %v2804_v25, %v2803_v21  ;;  %v848_v11 = vld [vmem:[#allocation2 + $0x128] sm:$0xf]  ;;  %v3402_v50 = vrot.slane %v3401_v30, 4  ;;  %v6879_v0 = vld [vmem:[#allocation2 + $0x50] sm:$0xff] }
 0x171   : > { %v7800_v61 = vpop.f32.mrf.mxu0  ;;  %v1621_v41 = vpop.f32.mrf.mxu2  ;;  %v2665_v56 = vshll.u32 %v2400_v15, 16  ;;  %v1132_v60 = vshrl.u32 %v848_v11, 16  ;;  %v6360_v7 = vrot.slane %v2657_v47, 11  ;;  %v3428_v15 = vshll.u32 %v3308_v59, 16 }
 0x172   : > { %9199 = vst [vmem:[#allocation9_spill] sm:$0xff] %v7800_v61  ;;  %v6850_v4 = vld [vmem:[#allocation2 + $0x140] sm:$0xff]  ;;  %v7814_v55 = vadd.f32 %v1621_v41, %v7785_v42  ;;  %v6851_v42 = vld [vmem:[#allocation2 + $0x158] sm:$0xff]  ;;  %v3780_v26 = vpack.c.b16 %v3750_v6, %v3749_v9  ;;  %v849_v41 = vld [vmem:[#allocation2 + $0x12c] sm:$0xf]  ;;  %v2664_v48 = vrot.slane %v2662_v24, 7 }
 0x173   : > { %1464 = vmatmul.bf16.gmra.mxu3 %v6850_v4  ;;  %3190 = vmatmul.bf16.gmra.mxu1 %v6878_v58  ;;  %v3408_v4 = vshrl.u32 %v3305_v53, 16  ;;  %v3416_v58 = vrot.slane %v3414_v62, 5  ;;  %v1141_v45 = vshrl.u32 %v849_v41, 16  ;;  %v1127_v21 = vshrl.u32 %v847_v3, 16  ;;  %v3330_v61 = vld [vmem:[#allocation2 + $0x118] sm:$0x1] }
 0x174   : > { %v2667_v8 = vor.u32 %v2665_v56, %v2664_v48  ;;  %v2669_v9 = vrot.slane %v2664_v48, 4  ;;  %v1134_v25 = vrot.slane %v1132_v60, 7  ;;  %v1144_v62 = vshll.u32 %v849_v41, 16 }
 0x175   : > { %v3410_v12 = vrot.slane %v3408_v4, 4  ;;  %v1143_v24 = vrot.slane %v1141_v45, 7  ;;  %v7854_v47 = vrot.slane %v3428_v15, 5 }
 0x176   : > { %v2668_v30 = vsel %vm7445_vm3, %v6360_v7, %v2667_v8  ;;  %v2402_v8 = vld [vmem:[#allocation2 + $0x13c] sm:$0x8] }
 0x178   : > { %v7828_v23 = vpop.f32.mrf.mxu1 }
 0x179   : > { %v7809_v28 = vpop.f32.mrf.mxu0  ;;  %v1623_v18 = vpop.f32.mrf.mxu2 }
 0x17a   : > { %9200 = vst [vmem:[#allocation10_spill] sm:$0xff] %v7809_v28  ;;  %v7830_v19 = vadd.f32 %v1623_v18, %v1422_v14  ;;  %v2673_v14 = vrot.slane %v2671_v37, 7  ;;  %v3421_v37 = vrot.slane %v3419_v1, 4  ;;  %v1693_v28 = vld [vmem:[#allocation2 + $0x68] sm:$0xf] }
 0x17c   : > { %2948 = vmatmul.bf16.gmra.mxu0 %v2824_v33  ;;  %v3411_v33 = vor.u32 %v3410_v12, %v7826_v10  ;;  %v2676_v6 = vor.u32 %v2674_v57, %v2673_v14  ;;  %v3407_v12 = vsel %vm7792_vm6, %v3402_v50, %v7826_v10  ;;  %v2403_v14 = vld [vmem:[#allocation2 + $0x140] sm:$0xf]  ;;  %v1139_v57 = vrot.slane %v1134_v25, 4 }
 0x17d   : > { %v3751_v36 = vunpack.c.l.b16 %v3407_v12  ;;  %v2684_v1 = vshrl.u32 %v2403_v14, 16 }
 0x17e   : > { %3872 = vmatmul.bf16.gmra.mxu2 %v3780_v26  ;;  %v3412_v53 = vrot.slane %v3411_v33, 4  ;;  %v2677_v10 = vsel %vm7445_vm3, %v2669_v9, %v2676_v6  ;;  %v1135_v33 = vshll.u32 %v848_v11, 16  ;;  %v2805_v11 = vunpack.c.l.b16 %v2668_v30 }
 0x17f   : > { %v2806_v41 = vunpack.c.l.b16 %v2677_v10 }
 0x180   : > { %v7835_v22 = vpop.f32.mrf.mxu1  ;;  %v3417_v16 = vsel %vm7792_vm6, %v3412_v53, %v3416_v58  ;;  %v3309_v58 = vld [vmem:[#allocation2 + $0x70] sm:$0x1]  ;;  %v1137_v56 = vor.u32 %v1135_v33, %v1134_v25 }
 0x181   : > { %v7820_v2 = vpop.f32.mrf.mxu0  ;;  %v1626_v32 = vpop.f32.mrf.mxu2  ;;  %v3438_v7 = vshll.u32 %v3309_v58, 16  ;;  %v2826_v12 = vpack.c.b16 %v2806_v41, %v2805_v11  ;;  %v850_v11 = vld [vmem:[#allocation2 + $0x13c] sm:$0x8]  ;;  %v6874_v41 = vld [vmem:[%s9183_s4 + $0xa8] sm:$0xff] }
 0x182   : > { %9201 = vst [vmem:[#allocation11_spill] sm:$0xff] %v7820_v2  ;;  %v7838_v4 = vadd.f32 %v1626_v32, %v7811_v44  ;;  %v3432_v44 = vshrl.u32 %v3308_v59, 16  ;;  %v6153_v32 = vrot.slane %v1127_v21, 11  ;;  %v1146_v59 = vor.u32 %v1144_v62, %v1143_v24  ;;  %v3310_v24 = vld [vmem:[#allocation2 + $0x80] sm:$0xf] }
 0x183   : > { %1469 = vmatmul.bf16.gmra.mxu3 %v6851_v42  ;;  %v3422_v42 = vshll.u32 %v3307_v49, 16  ;;  %3195 = vmatmul.bf16.gmra.mxu1 %v6879_v0  ;;  %v2404_v49 = vld [vmem:[#allocation2 + $0x144] sm:$0xf]  ;;  %v6875_v0 = vld [vmem:[%s9183_s4 + $0xb0] sm:$0xff]  ;;  %v2686_v21 = vrot.slane %v2684_v1, 7  ;;  %v3446_v1 = vshll.u32 %v3310_v24, 16 }
 0x184   : > { %v3434_v48 = vrot.slane %v3432_v44, 4  ;;  %2246 = vmatpush.bf16.msrb.mxu3 %v6875_v0  ;;  %v1147_v6 = vsel %vm7445_vm3, %v1139_v57, %v1146_v59  ;;  %v851_v44 = vld [vmem:[#allocation2 + $0x140] sm:$0xf]  ;;  %v3443_v59 = vshrl.u32 %v3310_v24, 16 }
 0x185   : > { %v3424_v26 = vrot.slane %v3422_v42, 5  ;;  %v2693_v42 = vshrl.u32 %v2404_v49, 16  ;;  %v1505_v10 = vunpack.c.l.b16 %v1147_v6 }
 0x186   : > { %v3435_v5 = vor.u32 %v3434_v48, %v7854_v47  ;;  %v3311_v48 = vld [vmem:[#allocation2 + $0x84] sm:$0xf] }
 0x187   : > { %v3425_v45 = vor.u32 %v3424_v26, %v3421_v37  ;;  %v2695_v25 = vrot.slane %v2693_v42, 7  ;;  %v3440_v26 = vrot.slane %v3438_v7, 5  ;;  %v3452_v42 = vshll.u32 %v3311_v48, 16 }
 0x188   : > { %v7856_v53 = vpop.f32.mrf.mxu1  ;;  %v3436_v37 = vrot.slane %v3435_v5, 4  ;;  %2247 = vmatpush.bf16.msrb.mxu3 %v6874_v41  ;;  %v1149_v7 = vshrl.u32 %v850_v11, 16  ;;  %v6873_v41 = vld [vmem:[%s9183_s4 + $0xa0] sm:$0xff] }
 0x189   : > { %v7833_v38 = vpop.f32.mrf.mxu0  ;;  %v1628_v50 = vpop.f32.mrf.mxu2  ;;  %v3426_v15 = vrot.slane %v3425_v45, 4 }
 0x18a   : > { %9202 = vst [vmem:[#allocation12_spill] sm:$0xff] %v7833_v38  ;;  %v7859_v60 = vadd.f32 %v1628_v50, %v7828_v23  ;;  %v1138_v23 = vsel %vm7445_vm3, %v6153_v32, %v1137_v56  ;;  %v1154_v50 = vshrl.u32 %v851_v44, 16  ;;  %v6880_v56 = vld [vmem:[#allocation2 + $0x68] sm:$0xff] }
 0x18b   : > { %v1504_v30 = vunpack.c.l.b16 %v1138_v23  ;;  %v3431_v57 = vsel %vm7792_vm6, %v3426_v15, %v7854_v47 }
 0x18c   : > { %2953 = vmatmul.bf16.gmra.mxu0 %v2825_v39  ;;  %v3752_v39 = vunpack.c.l.b16 %v3417_v16  ;;  %v852_v16 = vld [vmem:[#allocation2 + $0x144] sm:$0xf]  ;;  %v3753_v6 = vunpack.c.l.b16 %v3431_v57  ;;  %2248 = vmatpush.bf16.msrb.mxu3 %v6873_v41 }
 0x18d   : > { %v1163_v58 = vshrl.u32 %v852_v16, 16  ;;  %v1524_v47 = vpack.c.b16 %v1505_v10, %v1504_v30  ;;  %v1166_v24 = vshll.u32 %v852_v16, 16  ;;  %v2407_v10 = vld [vmem:[#allocation2 + $0x15c] sm:$0xf] }
 0x18e   : > { %v3781_v3 = vpack.c.b16 %v3752_v39, %v3751_v36  ;;  %v2687_v36 = vshll.u32 %v2403_v14, 16  ;;  %v2696_v39 = vshll.u32 %v2404_v49, 16  ;;  %v2691_v49 = vrot.slane %v2686_v21, 4 }
 0x18f   : > { %v1165_v23 = vrot.slane %v1163_v58, 7  ;;  %v562_v16 = vpop.f32.mrf.mxu3 }
 0x190   : > { %3877 = vmatmul.bf16.gmra.mxu2 %v3781_v3  ;;  %v7871_v62 = vpop.f32.mrf.mxu1  ;;  %v2689_v14 = vor.u32 %v2687_v36, %v2686_v21  ;;  %v2698_v0 = vor.u32 %v2696_v39, %v2695_v25  ;;  %v3456_v3 = vshrl.u32 %v3311_v48, 16  ;;  %v3312_v21 = vld [vmem:[#allocation2 + $0x88] sm:$0x1]  ;;  %v1157_v25 = vshll.u32 %v851_v44, 16 }
 0x191   : > { %v7848_v18 = vpop.f32.mrf.mxu0  ;;  %v1631_v33 = vpop.f32.mrf.mxu2  ;;  %v7890_v36 = vrot.slane %v3452_v42, 5  ;;  %v1168_v57 = vor.u32 %v1166_v24, %v1165_v23 }
 0x192   : > { %9203 = vst [vmem:[#allocation13_spill] sm:$0xff] %v7848_v18  ;;  %v7874_v32 = vadd.f32 %v1631_v33, %v7835_v22  ;;  %v3441_v22 = vsel %vm7792_vm6, %v3436_v37, %v3440_v26  ;;  %v2406_v37 = vld [vmem:[#allocation2 + $0x158] sm:$0xf]  ;;  %v3448_v33 = vrot.slane %v3446_v1, 5  ;;  %v3458_v30 = vrot.slane %v3456_v3, 4 }
 0x193   : > { %1474 = vmatmul.bf16.gmra.mxu3 %v6852_v34  ;;  %v2679_v34 = vshrl.u32 %v2402_v8, 16  ;;  %3200 = vmatmul.bf16.gmra.mxu1 %v6880_v56  ;;  %v1156_v8 = vrot.slane %v1154_v50, 7  ;;  %v3754_v26 = vunpack.c.l.b16 %v3441_v22  ;;  %v6154_v50 = vrot.slane %v1149_v7, 11  ;;  %v3313_v3 = vld [vmem:[#allocation2 + $0x98] sm:$0xf] }
 0x194   : > { %v3459_v42 = vor.u32 %v3458_v30, %v7890_v36  ;;  %v600_v7 = vmul.f32 %v7678_v20, %v562_v16  ;;  %v855_v30 = vld [vmem:[#allocation2 + $0x15c] sm:$0xf] }
 0x195   : > { %v6361_v45 = vrot.slane %v2679_v34, 11  ;;  %v2699_v34 = vsel %vm7445_vm3, %v2691_v49, %v2698_v0  ;;  %v1159_v58 = vor.u32 %v1157_v25, %v1156_v8  ;;  %v1161_v56 = vrot.slane %v1156_v8, 4  ;;  %v2405_v49 = vld [vmem:[#allocation2 + $0x154] sm:$0x8]  ;;  %v3314_v8 = vld [vmem:[#allocation2 + $0x9c] sm:$0xf] }
 0x196   : > { %v2808_v44 = vunpack.c.l.b16 %v2699_v34  ;;  %v2715_v0 = vshrl.u32 %v2407_v10, 16  ;;  %v3782_v22 = vpack.c.b16 %v3754_v26, %v3753_v6  ;;  %v2701_v34 = vshrl.u32 %v2405_v49, 16 }
 0x197   : > { %v2690_v15 = vsel %vm7445_vm3, %v6361_v45, %v2689_v14  ;;  %v2706_v45 = vshrl.u32 %v2406_v37, 16  ;;  %v3462_v14 = vshll.u32 %v3312_v21, 16  ;;  %v854_v21 = vld [vmem:[#allocation2 + $0x158] sm:$0xf]  ;;  %v2718_v26 = vshll.u32 %v2407_v10, 16  ;;  %v6881_v10 = vld [vmem:[#allocation2 + $0x80] sm:$0xff] }
 0x198   : > { %v7892_v48 = vpop.f32.mrf.mxu1  ;;  %v2807_v11 = vunpack.c.l.b16 %v2690_v15  ;;  %v2717_v24 = vrot.slane %v2715_v0, 7  ;;  %v635_v41 = vadd.f32 %v7704_v40, %v600_v7  ;;  %v6362_v49 = vrot.slane %v2701_v34, 11 }
 0x199   : > { %v7865_v9 = vpop.f32.mrf.mxu0  ;;  %v1633_v39 = vpop.f32.mrf.mxu2  ;;  %v2708_v6 = vrot.slane %v2706_v45, 7  ;;  %v3464_v25 = vrot.slane %v3462_v14, 5  ;;  %v853_v45 = vld [vmem:[#allocation2 + $0x154] sm:$0x8] }
 0x19a   : > { %9204 = vst [vmem:[#allocation14_spill] sm:$0xff] %v7865_v9  ;;  %v2827_v15 = vpack.c.b16 %v2808_v44, %v2807_v11  ;;  %v3470_v11 = vshll.u32 %v3313_v3, 16  ;;  %v3476_v44 = vshll.u32 %v3314_v8, 16 }
 0x19c   : > { %2958 = vmatmul.bf16.gmra.mxu0 %v2826_v12  ;;  %v3445_v12 = vrot.slane %v3443_v59, 4  ;;  %v7895_v59 = vadd.f32 %v1633_v39, %v7856_v53  ;;  %v1160_v53 = vsel %vm7445_vm3, %v6154_v50, %v1159_v58  ;;  %v3460_v50 = vrot.slane %v3459_v42, 4  ;;  %v6872_v42 = vld [vmem:[%s9183_s4 + $0x98] sm:$0xff] }
 0x19d   : > { %v1506_v58 = vunpack.c.l.b16 %v1160_v53  ;;  %v2713_v53 = vrot.slane %v2708_v6, 4  ;;  %2249 = vmatpush.bf16.msrb.mxu3 %v6872_v42 }
 0x19e   : > { %v3449_v1 = vor.u32 %v3448_v33, %v3445_v12  ;;  %v2709_v12 = vshll.u32 %v2406_v37, 16  ;;  %v3467_v33 = vshrl.u32 %v3313_v3, 16  ;;  %v1176_v37 = vshrl.u32 %v854_v21, 16 }
 0x19f   : > { %v3465_v7 = vsel %vm7792_vm6, %v3460_v50, %v3464_v25 }
 0x1a0   : > { %3882 = vmatmul.bf16.gmra.mxu2 %v3782_v22  ;;  %v3450_v39 = vrot.slane %v3449_v1, 4  ;;  %v7908_v16 = vpop.f32.mrf.mxu1  ;;  %v2711_v0 = vor.u32 %v2709_v12, %v2708_v6  ;;  %v564_v22 = vpop.f32.mrf.mxu3  ;;  %v1185_v1 = vshrl.u32 %v855_v30, 16  ;;  %v1171_v12 = vshrl.u32 %v853_v45, 16  ;;  %v2410_v45 = vld [vmem:[#allocation2 + $0x174] sm:$0xf] }
 0x1a1   : > { %v7884_v5 = vpop.f32.mrf.mxu0  ;;  %v601_v3 = vmul.f32 %v7678_v20, %v564_v22  ;;  %v1179_v6 = vshll.u32 %v854_v21, 16  ;;  %v2409_v21 = vld [vmem:[#allocation2 + $0x170] sm:$0xf] }
 0x1a2   : > { %9205 = vst [vmem:[#allocation15_spill] sm:$0xff] %v7884_v5  ;;  %v1178_v5 = vrot.slane %v1176_v37, 7  ;;  %v1187_v20 = vrot.slane %v1185_v1, 7  ;;  %v6155_v22 = vrot.slane %v1171_v12, 11  ;;  %v3316_v12 = vld [vmem:[#allocation2 + $0xb0] sm:$0xf] }
 0x1a3   : > { %1660 = vmatmul.bf16.vlgmr.msra.gmra.mxu3 %v1524_v47  ;;  %v1169_v47 = vsel %vm7445_vm3, %v1161_v56, %v1168_v57  ;;  %v1636_v57 = vpop.f32.mrf.mxu2  ;;  %3205 = vmatmul.bf16.gmra.mxu1 %v6881_v10 }
 0x1a4   : > { %v1507_v56 = vunpack.c.l.b16 %v1169_v47  ;;  %v7912_v14 = vadd.f32 %v1636_v57, %v7871_v62  ;;  %v2720_v47 = vor.u32 %v2718_v26, %v2717_v24  ;;  %v3455_v62 = vsel %vm7792_vm6, %v3450_v39, %v7890_v36 }
 0x1a5   : > { %v667_v57 = vmax.f32 %v635_v41, 0.0  ;;  %v1188_v24 = vshll.u32 %v855_v30, 16  ;;  %v3469_v26 = vrot.slane %v3467_v33, 4  ;;  %v3472_v39 = vrot.slane %v3470_v11, 5 }
 0x1a6   : > { %v1525_v34 = vpack.c.b16 %v1507_v56, %v1506_v58  ;;  %v2721_v36 = vsel %vm7445_vm3, %v2713_v53, %v2720_v47  ;;  %v3755_v50 = vunpack.c.l.b16 %v3455_v62  ;;  %v3756_v58 = vunpack.c.l.b16 %v3465_v7  ;;  %v2408_v53 = vld [vmem:[#allocation2 + $0x16c] sm:$0x8] }
 0x1a7   : > { %v7930_v41 = vrot.slane %v3476_v44, 5  ;;  %v1181_v1 = vor.u32 %v1179_v6, %v1178_v5  ;;  %v1183_v11 = vrot.slane %v1178_v5, 4  ;;  %v1190_v42 = vor.u32 %v1188_v24, %v1187_v20  ;;  %v6871_v44 = vld [vmem:[%s9183_s4 + $0x90] sm:$0xff]  ;;  %v6948_v20 = vld [vmem:[%s9183_s4 + $0x1f8] sm:$0xff] }
 0x1a8   : > { %v7932_v10 = vpop.f32.mrf.mxu1  ;;  %v2728_v47 = vshrl.u32 %v2409_v21, 16  ;;  %v3473_v62 = vor.u32 %v3472_v39, %v3469_v26  ;;  %2250 = vmatpush.bf16.msrb.mxu3 %v6871_v44  ;;  %v858_v24 = vld [vmem:[#allocation2 + $0x174] sm:$0xf]  ;;  %v2731_v26 = vshll.u32 %v2409_v21, 16  ;;  %4792 = vmatpush.bf16.msra.mxu0 %v6948_v20  ;;  %v6882_v21 = vld [vmem:[#allocation2 + $0x98] sm:$0xff] }
 0x1a9   : > { %v7906_v23 = vpop.f32.mrf.mxu0  ;;  %v1182_v5 = vsel %vm7445_vm3, %v6155_v22, %v1181_v1  ;;  %v1191_v6 = vsel %vm7445_vm3, %v1183_v11, %v1190_v42  ;;  %v856_v11 = vld [vmem:[#allocation2 + $0x16c] sm:$0x8]  ;;  %v1207_v42 = vshrl.u32 %v858_v24, 16 }
 0x1aa   : > { %9206 = vst [vmem:[#allocation16_spill] sm:$0xff] %v7906_v23  ;;  %v636_v23 = vadd.f32 %v7704_v40, %v601_v3  ;;  %v3783_v3 = vpack.c.b16 %v3756_v58, %v3755_v50  ;;  %v3317_v50 = vld [vmem:[#allocation2 + $0xb4] sm:$0xf]  ;;  %v3474_v58 = vrot.slane %v3473_v62, 4  ;;  %v1508_v1 = vunpack.c.l.b16 %v1182_v5  ;;  %v6870_v62 = vld [vmem:[%s9183_s4 + $0x88] sm:$0xff] }
 0x1ab   : > { %v1638_v37 = vpop.f32.mrf.mxu2 }
 0x1ac   : > { %2963 = vmatmul.bf16.gmra.mxu0 %v2827_v15  ;;  %v3480_v15 = vshrl.u32 %v3314_v8, 16  ;;  %v2712_v8 = vsel %vm7445_vm3, %v6362_v49, %v2711_v0  ;;  %v668_v25 = vmax.f32 %v636_v23, 0.0  ;;  %v3315_v49 = vld [vmem:[#allocation2 + $0xa0] sm:$0x1]  ;;  %v7935_v33 = vadd.f32 %v1638_v37, %v7892_v48  ;;  %v857_v48 = vld [vmem:[#allocation2 + $0x170] sm:$0xf]  ;;  %2251 = vmatpush.bf16.msrb.mxu3 %v6870_v62 }
 0x1ad   : > { %v2809_v30 = vunpack.c.l.b16 %v2712_v8  ;;  %v2810_v23 = vunpack.c.l.b16 %v2721_v36  ;;  %v3486_v7 = vshll.u32 %v3315_v49, 16  ;;  %v2723_v8 = vshrl.u32 %v2408_v53, 16 }
 0x1ae   : > { %v3482_v40 = vrot.slane %v3480_v15, 4  ;;  %v7044_v0 = vpack.c.bf16 %v668_v25, %v667_v57  ;;  %v2737_v15 = vshrl.u32 %v2410_v45, 16  ;;  %v2730_v36 = vrot.slane %v2728_v47, 7 }
 0x1af   : > { %v2828_v57 = vpack.c.b16 %v2810_v23, %v2809_v30  ;;  %v2740_v25 = vshll.u32 %v2410_v45, 16  ;;  %v3491_v37 = vshrl.u32 %v3316_v12, 16  ;;  %v1198_v30 = vshrl.u32 %v857_v48, 16 }
 0x1b0   : > { %7061 = vst [vmem:[#allocation2 + $0x188] sm:$0xff] %v7044_v0   ;;  %3887 = vmatmul.bf16.gmra.mxu2 %v3783_v3  ;;  %v2739_v39 = vrot.slane %v2737_v15, 7  ;;  %v7948_v0 = vpop.f32.mrf.mxu1  ;;  %v1509_v23 = vunpack.c.l.b16 %v1191_v6  ;;  %v3494_v53 = vshll.u32 %v3316_v12, 16  ;;  %v3500_v47 = vshll.u32 %v3317_v50, 16  ;;  %v6947_v3 = vld [vmem:[%s9183_s4 + $0x1f0] sm:$0xff] }
 0x1b1   : > { %v7928_v56 = vpop.f32.mrf.mxu0  ;;  %v3504_v15 = vshrl.u32 %v3317_v50, 16  ;;  %v1193_v12 = vshrl.u32 %v856_v11, 16  ;;  %v1200_v6 = vrot.slane %v1198_v30, 7  ;;  %v1201_v20 = vshll.u32 %v857_v48, 16  ;;  %4793 = vmatpush.bf16.msra.mxu0 %v6947_v3  ;;  %v3318_v30 = vld [vmem:[#allocation2 + $0xb8] sm:$0x1] }
 0x1b2   : > { %9207 = vst [vmem:[#allocation17_spill] sm:$0xff] %v7928_v56  ;;  %v2742_v5 = vor.u32 %v2740_v25, %v2739_v39  ;;  %v1210_v56 = vshll.u32 %v858_v24, 16  ;;  %v7973_v39 = vrot.slane %v3500_v47, 5  ;;  %v6945_v47 = vld [vmem:[%s9183_s4 + $0x1e0] sm:$0xff] }
 0x1b3   : > { %1665 = vmatmul.bf16.gmra.mxu3 %v1525_v34  ;;  %v3483_v34 = vor.u32 %v3482_v40, %v7930_v41  ;;  %v3488_v40 = vrot.slane %v3486_v7, 5  ;;  %v1641_v49 = vpop.f32.mrf.mxu2  ;;  %v6363_v7 = vrot.slane %v2723_v8, 11  ;;  %3210 = vmatmul.bf16.gmra.mxu1 %v6882_v21  ;;  %v6946_v8 = vld [vmem:[%s9183_s4 + $0x1e8] sm:$0xff]  ;;  %v3506_v25 = vrot.slane %v3504_v15, 4  ;;  %v6869_v15 = vld [vmem:[%s9183_s4 + $0x80] sm:$0xff] }
 0x1b4   : > { %v7951_v44 = vadd.f32 %v1641_v49, %v7908_v16  ;;  %v3479_v16 = vsel %vm7792_vm6, %v3474_v58, %v7930_v41  ;;  %v1526_v49 = vpack.c.b16 %v1509_v23, %v1508_v1  ;;  %v6156_v24 = vrot.slane %v1193_v12, 11  ;;  %v2411_v3 = vld [vmem:[#allocation2 + $0x184] sm:$0x8]  ;;  %2252 = vmatpush.bf16.msrb.mxu3 %v6869_v15 }
 0x1b5   : > { %v3484_v22 = vrot.slane %v3483_v34, 4  ;;  %v2733_v34 = vor.u32 %v2731_v26, %v2730_v36  ;;  %v3496_v26 = vrot.slane %v3494_v53, 5  ;;  %v3757_v58 = vunpack.c.l.b16 %v3479_v16  ;;  %4794 = vmatpush.bf16.msra.mxu0 %v6946_v8 }
 0x1b7   : > { %v3489_v50 = vsel %vm7792_vm6, %v3484_v22, %v3488_v40  ;;  %v2734_v41 = vsel %vm7445_vm3, %v6363_v7, %v2733_v34  ;;  %v1203_v22 = vor.u32 %v1201_v20, %v1200_v6  ;;  %v3507_v7 = vor.u32 %v3506_v25, %v7973_v39  ;;  %v6944_v25 = vld [vmem:[%s9183_s4 + $0x1d8] sm:$0xff] }
 0x1b8   : > { %v3758_v40 = vunpack.c.l.b16 %v3489_v50  ;;  %v7975_v23 = vpop.f32.mrf.mxu1  ;;  %v2811_v21 = vunpack.c.l.b16 %v2734_v41  ;;  %v3510_v34 = vshll.u32 %v3318_v30, 16  ;;  %v2745_v50 = vshrl.u32 %v2411_v3, 16 }
 0x1b9   : > { %v7953_v45 = vpop.f32.mrf.mxu0  ;;  %4795 = vmatpush.bf16.msra.mxu0 %v6945_v47 }
 0x1ba   : > { %9208 = vst [vmem:[#allocation18_spill] sm:$0xff] %v7953_v45  ;;  %v1209_v45 = vrot.slane %v1207_v42, 7  ;;  %v3512_v30 = vrot.slane %v3510_v34, 5  ;;  %v6364_v15 = vrot.slane %v2745_v50, 11  ;;  %v6943_v34 = vld [vmem:[%s9183_s4 + $0x1d0] sm:$0xff] }
 0x1bb   : > { %v1643_v1 = vpop.f32.mrf.mxu2 }
 0x1bc   : > { %2968 = vmatmul.bf16.gmra.mxu0 %v2828_v57  ;;  %v2735_v57 = vrot.slane %v2730_v36, 4  ;;  %v3493_v36 = vrot.slane %v3491_v37, 4  ;;  %v1205_v37 = vrot.slane %v1200_v6, 4  ;;  %v1212_v11 = vor.u32 %v1210_v56, %v1209_v45  ;;  %v2412_v56 = vld [vmem:[#allocation2 + $0x188] sm:$0xf] }
 0x1bd   : > { %v7978_v42 = vadd.f32 %v1643_v1, %v7932_v10  ;;  %v2413_v45 = vld [vmem:[#allocation2 + $0x18c] sm:$0xf]  ;;  %v2750_v16 = vshrl.u32 %v2412_v56, 16  ;;  %v7991_v6 = vld [vmem:[#allocation2 + $0xc8] sm:$0xf]  ;;  %4796 = vmatpush.bf16.msra.mxu0 %v6944_v25 }
 0x1be   : > { %v2743_v48 = vsel %vm7445_vm3, %v2735_v57, %v2742_v5  ;;  %v3497_v62 = vor.u32 %v3496_v26, %v3493_v36  ;;  %v3784_v57 = vpack.c.b16 %v3758_v40, %v3757_v58  ;;  %v1204_v5 = vsel %vm7445_vm3, %v6156_v24, %v1203_v22  ;;  %v7995_v36 = vld [vmem:[#allocation2 + $0xcc] sm:$0xf] }
 0x1bf   : > { %v2812_v53 = vunpack.c.l.b16 %v2743_v48  ;;  %v2759_v12 = vshrl.u32 %v2413_v45, 16  ;;  %v1213_v20 = vsel %vm7445_vm3, %v1205_v37, %v1212_v11  ;;  %v2762_v8 = vshll.u32 %v2413_v45, 16 }
 0x1c0   : > { %3892 = vmatmul.bf16.gmra.mxu2 %v3784_v57  ;;  %v2752_v41 = vrot.slane %v2750_v16, 7  ;;  %v3498_v58 = vrot.slane %v3497_v62, 4  ;;  %v3508_v40 = vrot.slane %v3507_v7, 4  ;;  %v3515_v24 = vshrl.u32 %v7991_v6, 16  ;;  %v1681_v57 = vld [vmem:[#allocation2 + $0x8] sm:$0xf] }
 0x1c1   : > { %v7987_v10 = vpop.f32.mrf.mxu0  ;;  %v2829_v26 = vpack.c.b16 %v2812_v53, %v2811_v21  ;;  %v2761_v48 = vrot.slane %v2759_v12, 7  ;;  %v1510_v22 = vunpack.c.l.b16 %v1204_v5  ;;  %v1511_v1 = vunpack.c.l.b16 %v1213_v20  ;;  %v8003_v21 = vpop.f32.mrf.mxu1  ;;  %v6883_v53 = vld [vmem:[#allocation2 + $0xb0] sm:$0xff]  ;;  %v1682_v5 = vld [vmem:[#allocation2 + $0xc] sm:$0xf]  ;;  %4797 = vmatpush.bf16.msra.mxu0 %v6943_v34 }
 0x1c2   : > { %9209 = vst [vmem:[#allocation19_spill] sm:$0xff] %v7987_v10  ;;  %v3518_v37 = vshll.u32 %v7991_v6, 16  ;;  %v3524_v11 = vshll.u32 %v7995_v36, 16  ;;  %v3528_v7 = vshrl.u32 %v7995_v36, 16  ;;  %v3503_v16 = vsel %vm7792_vm6, %v3498_v58, %v7973_v39  ;;  %v1683_v6 = vld [vmem:[#allocation2 + $0x10] sm:$0x1] }
 0x1c3   : > { %1670 = vmatmul.bf16.gmra.mxu3 %v1526_v49  ;;  %v2753_v49 = vshll.u32 %v2412_v56, 16  ;;  %v1646_v47 = vpop.f32.mrf.mxu2  ;;  %v2757_v56 = vrot.slane %v2752_v41, 4  ;;  %v2764_v45 = vor.u32 %v2762_v8, %v2761_v48  ;;  %v3513_v12 = vsel %vm7792_vm6, %v3508_v40, %v3512_v30  ;;  %3215 = vmatmul.bf16.gmra.mxu1 %v6883_v53  ;;  %v6942_v58 = vld [vmem:[%s9183_s4 + $0x1c8] sm:$0xff] }
 0x1c4   : > { %v8006_v62 = vadd.f32 %v1646_v47, %v7948_v0  ;;  %v1733_v20 = vshrl.u32 %v1681_v57, 16  ;;  %v1736_v50 = vshll.u32 %v1681_v57, 16  ;;  %v1527_v0 = vpack.c.b16 %v1511_v1, %v1510_v22 }
 0x1c5   : > { %v2755_v3 = vor.u32 %v2753_v49, %v2752_v41  ;;  %v1742_v49 = vshll.u32 %v1682_v5, 16  ;;  %v1746_v8 = vshrl.u32 %v1682_v5, 16  ;;  %v1752_v36 = vshll.u32 %v1683_v6, 16  ;;  %v1685_v5 = vld [vmem:[#allocation2 + $0x24] sm:$0xf]  ;;  %4798 = vmatpush.bf16.msra.mxu0 %v6942_v58  ;;  %v6956_v58 = vld [vmem:[%s9183_s4 + $0x238] sm:$0xff] }
 0x1c6   : > { %v2765_v39 = vsel %vm7445_vm3, %v2757_v56, %v2764_v45  ;;  %v1735_v48 = vrot.slane %v1733_v20, 4  ;;  %v1738_v25 = vrot.slane %v1736_v50, 5  ;;  %v3759_v1 = vunpack.c.l.b16 %v3503_v16  ;;  %5474 = vmatpush.bf16.msra.mxu1 %v6956_v58 }
 0x1c7   : > { %v2756_v41 = vsel %vm7445_vm3, %v6364_v15, %v2755_v3  ;;  %v1744_v30 = vrot.slane %v1742_v49, 5  ;;  %v1748_v22 = vrot.slane %v1746_v8, 4  ;;  %v3760_v47 = vunpack.c.l.b16 %v3513_v12  ;;  %v1684_v3 = vld [vmem:[#allocation2 + $0x20] sm:$0xf]  ;;  %v3321_v12 = vld [vmem:[#allocation2 + $0xd0] sm:$0x1] }
 0x1c8   : > { %v3517_v53 = vrot.slane %v3515_v24, 4  ;;  %v1739_v15 = vor.u32 %v1738_v25, %v1735_v48  ;;  %v2813_v57 = vunpack.c.l.b16 %v2756_v41  ;;  %v2814_v56 = vunpack.c.l.b16 %v2765_v39 }
 0x1c9   : > { %v8027_v40 = vpop.f32.mrf.mxu0  ;;  %v1749_v45 = vor.u32 %v1748_v22, %v1744_v30  ;;  %v1754_v34 = vrot.slane %v1752_v36, 5  ;;  %v8029_v20 = vpop.f32.mrf.mxu1  ;;  %v3520_v50 = vrot.slane %v3518_v37, 5  ;;  %v3526_v10 = vrot.slane %v3524_v11, 5 }
 0x1ca   : > { %9210 = vst [vmem:[#allocation20_spill] sm:$0xff] %v8027_v40  ;;  %v3530_v40 = vrot.slane %v3528_v7, 4  ;;  %v1740_v49 = vrot.slane %v1739_v15, 4  ;;  %v1757_v8 = vshrl.u32 %v1684_v3, 16  ;;  %v1760_v36 = vshll.u32 %v1684_v3, 16 }
 0x1cb   : > { %v1648_v6 = vpop.f32.mrf.mxu2  ;;  %v1750_v24 = vrot.slane %v1749_v45, 4  ;;  %v1770_v41 = vshrl.u32 %v1685_v5, 16  ;;  %v3785_v39 = vpack.c.b16 %v3760_v47, %v3759_v1  ;;  %v2830_v48 = vpack.c.b16 %v2814_v56, %v2813_v57 }
 0x1cc   : > { %2973 = vmatmul.bf16.gmra.mxu0 %v2829_v26  ;;  %v6940_v26 = vld [vmem:[%s9183_s4 + $0x1b8] sm:$0xff]  ;;  %v8032_v16 = vadd.f32 %v1648_v6, %v7975_v23  ;;  %v1745_v37 = vsel %vm7792_vm6, %v1740_v49, %v1744_v30  ;;  %v3521_v23 = vor.u32 %v3520_v50, %v3517_v53  ;;  %v3531_v7 = vor.u32 %v3530_v40, %v3526_v10  ;;  %v1686_v30 = vld [vmem:[#allocation2 + $0x28] sm:$0x1]  ;;  %v3322_v6 = vld [vmem:[#allocation2 + $0xe0] sm:$0xf] }
 0x1cd   : > { %4510 = vmatpush.bf16.msra.mxu3 %v6940_v26  ;;  %v1766_v26 = vshll.u32 %v1685_v5, 16  ;;  %v1755_v11 = vsel %vm7792_vm6, %v1750_v24, %v1754_v34  ;;  %v3534_v25 = vshll.u32 %v3321_v12, 16  ;;  %v1759_v22 = vrot.slane %v1757_v8, 4  ;;  %v6884_v49 = vld [vmem:[#allocation2 + $0xc8] sm:$0xff]  ;;  %v3323_v12 = vld [vmem:[#allocation2 + $0xe4] sm:$0xf] }
 0x1ce   : > { %v1762_v15 = vrot.slane %v1760_v36, 5  ;;  %v2133_v3 = vunpack.c.l.b16 %v1745_v37  ;;  %v2134_v1 = vunpack.c.l.b16 %v1755_v11  ;;  %v1772_v57 = vrot.slane %v1770_v41, 4 }
 0x1cf   : > { %v1768_v47 = vrot.slane %v1766_v26, 5  ;;  %v3522_v45 = vrot.slane %v3521_v23, 4  ;;  %v3532_v34 = vrot.slane %v3531_v7, 4  ;;  %v3536_v5 = vrot.slane %v3534_v25, 5 }
 0x1d0   : > { %3897 = vmatmul.bf16.gmra.mxu2 %v3785_v39  ;;  %v2165_v24 = vpack.c.b16 %v2134_v1, %v2133_v3  ;;  %v1776_v36 = vshll.u32 %v1686_v30, 16  ;;  %v3539_v26 = vshrl.u32 %v3322_v6, 16  ;;  %v3542_v41 = vshll.u32 %v3322_v6, 16  ;;  %v1688_v6 = vld [vmem:[#allocation2 + $0x3c] sm:$0xf] }
 0x1d1   : > { %v8044_v56 = vpop.f32.mrf.mxu0  ;;  %v1455_v40 = vpop.f32.mrf.mxu1  ;;  %v1773_v8 = vor.u32 %v1772_v57, %v1768_v47  ;;  %v3527_v39 = vsel %vm7792_vm6, %v3522_v45, %v3526_v10  ;;  %v3548_v37 = vshll.u32 %v3323_v12, 16  ;;  %v3552_v11 = vshrl.u32 %v3323_v12, 16 }
 0x1d2   : > { %9211 = vst [vmem:[#allocation21_spill] sm:$0xff] %v8044_v56  ;;  %v1778_v7 = vrot.slane %v1776_v36, 5  ;;  %v3761_v25 = vunpack.c.l.b16 %v3527_v39  ;;  %v1790_v39 = vshll.u32 %v1688_v6, 16 }
 0x1d3   : > { %1675 = vmatmul.bf16.gmra.mxu3 %v1527_v0  ;;  %v6941_v0 = vld [vmem:[%s9183_s4 + $0x1c0] sm:$0xff]  ;;  %v1651_v53 = vpop.f32.mrf.mxu2  ;;  %3220 = vmatmul.bf16.gmra.mxu1 %v6884_v49  ;;  %v1774_v23 = vrot.slane %v1773_v8, 4  ;;  %v3550_v57 = vrot.slane %v3548_v37, 5  ;;  %v3554_v30 = vrot.slane %v3552_v11, 4 }
 0x1d4   : > { %4799 = vmatpush.bf16.msra.mxu0 %v6941_v0  ;;  %v8047_v50 = vadd.f32 %v1651_v53, %v8003_v21  ;;  %v1763_v0 = vor.u32 %v1762_v15, %v1759_v22  ;;  %v3541_v22 = vrot.slane %v3539_v26, 4  ;;  %v3544_v15 = vrot.slane %v3542_v41, 5  ;;  %v6917_v41 = vld [vmem:[#allocation2 + $0x38] sm:$0xff] }
 0x1d5   : > { %v3555_v8 = vor.u32 %v3554_v30, %v3550_v57  ;;  %v6885_v30 = vld [vmem:[#allocation2 + $0xe0] sm:$0xff] }
 0x1d6   : > { %v1764_v21 = vrot.slane %v1763_v0, 4  ;;  %v3545_v12 = vor.u32 %v3544_v15, %v3541_v22  ;;  %v1779_v0 = vsel %vm7792_vm6, %v1774_v23, %v1778_v7 }
 0x1d7   : > { %v3556_v22 = vrot.slane %v3555_v8, 4 }
 0x1d8   : > { %v3546_v37 = vrot.slane %v3545_v12, 4 }
 0x1d9   : > { %v8053_v1 = vpop.f32.mrf.mxu1  ;;  %v8058_v53 = vpop.f32.mrf.mxu0 }
 0x1da   : > { %9212 = vst [vmem:[#allocation22_spill] sm:$0xff] %v8058_v53 }
 0x1db   : > { %v1653_v3 = vpop.f32.mrf.mxu2 }
 0x1dc   : > { %2978 = vmatmul.bf16.gmra.mxu0 %v2830_v48  ;;  %v3537_v48 = vsel %vm7792_vm6, %v3532_v34, %v3536_v5  ;;  %v8056_v10 = vadd.f32 %v1653_v3, %v8029_v20  ;;  %v3324_v34 = vld [vmem:[#allocation2 + $0xe8] sm:$0x1]  ;;  %v1687_v5 = vld [vmem:[#allocation2 + $0x38] sm:$0xf]  ;;  %v2136_v3 = vunpack.c.l.b16 %v1779_v0 }
 0x1dd   : > { %v3762_v58 = vunpack.c.l.b16 %v3537_v48  ;;  %v3558_v36 = vshll.u32 %v3324_v34, 16  ;;  %v1781_v26 = vshrl.u32 %v1687_v5, 16  ;;  %v1784_v20 = vshll.u32 %v1687_v5, 16  ;;  %v3326_v5 = vld [vmem:[#allocation2 + $0xfc] sm:$0xf] }
 0x1de   : > { %v1794_v48 = vshrl.u32 %v1688_v6, 16 }
 0x1df   : > { %v3786_v49 = vpack.c.b16 %v3762_v58, %v3761_v25  ;;  %v1783_v15 = vrot.slane %v1781_v26, 4  ;;  %v1786_v23 = vrot.slane %v1784_v20, 5  ;;  %v3572_v20 = vshll.u32 %v3326_v5, 16 }
 0x1e0   : > { %v1796_v6 = vrot.slane %v1794_v48, 4 }
 0x1e1   : > { %3902 = vmatmul.bf16.gmra.mxu2 %v3786_v49  ;;  %v8066_v58 = vpop.f32.mrf.mxu1  ;;  %v1792_v49 = vrot.slane %v1790_v39, 5  ;;  %v8072_v12 = vpop.f32.mrf.mxu0  ;;  %v3576_v39 = vshrl.u32 %v3326_v5, 16  ;;  %v1787_v48 = vor.u32 %v1786_v23, %v1783_v15  ;;  %v1690_v5 = vld [vmem:[#allocation2 + $0x50] sm:$0xf] }
 0x1e2   : > { %9213 = vst [vmem:[#allocation23_spill] sm:$0xff] %v8066_v58 }
 0x1e3   : > { %2253 = vmatmul.bf16.vlgmr.msrb.gmra.mxu3 %v2165_v24  ;;  %v1769_v24 = vsel %vm7792_vm6, %v1764_v21, %v1768_v47  ;;  %v1656_v25 = vpop.f32.mrf.mxu2  ;;  %v3560_v47 = vrot.slane %v3558_v36, 5  ;;  %v3325_v21 = vld [vmem:[#allocation2 + $0xf8] sm:$0xf]  ;;  %9214 = vst [vmem:[#allocation24_spill] sm:$0xff] %v8072_v12  ;;  %3225 = vmatmul.bf16.gmra.mxu1 %v6885_v30  ;;  %v3578_v56 = vrot.slane %v3576_v39, 4  ;;  %v1788_v9 = vrot.slane %v1787_v48, 4 }
 0x1e4   : > { %v2135_v11 = vunpack.c.l.b16 %v1769_v24  ;;  %v8068_v7 = vadd.f32 %v1656_v25, %v1455_v40  ;;  %v3551_v24 = vsel %vm7792_vm6, %v3546_v37, %v3550_v57  ;;  %v3563_v8 = vshrl.u32 %v3325_v21, 16  ;;  %v6939_v40 = vld [vmem:[%s9183_s4 + $0x1b0] sm:$0xff] }
 0x1e5   : > { %v8060_v45 = vpop.f32.mrf.mxu3  ;;  %v3566_v36 = vshll.u32 %v3325_v21, 16  ;;  %v3561_v26 = vsel %vm7792_vm6, %v3556_v22, %v3560_v47  ;;  %v1797_v25 = vor.u32 %v1796_v6, %v1792_v49  ;;  %4511 = vmatpush.bf16.msra.mxu3 %v6939_v40  ;;  %v3763_v30 = vunpack.c.l.b16 %v3551_v24  ;;  %v3327_v47 = vld [vmem:[#allocation2 + $0x100] sm:$0x1]  ;;  %v1691_v6 = vld [vmem:[#allocation2 + $0x54] sm:$0xf] }
 0x1e6   : > { %v2166_v0 = vpack.c.b16 %v2136_v3, %v2135_v11  ;;  %v3764_v12 = vunpack.c.l.b16 %v3561_v26  ;;  %v3565_v57 = vrot.slane %v3563_v8, 4  ;;  %v3574_v21 = vrot.slane %v3572_v20, 5 }
 0x1e7   : > { %v3568_v37 = vrot.slane %v3566_v36, 5  ;;  %v1798_v15 = vrot.slane %v1797_v25, 4  ;;  %v3582_v8 = vshll.u32 %v3327_v47, 16  ;;  %v1793_v36 = vsel %vm7792_vm6, %v1788_v9, %v1792_v49  ;;  %v3328_v25 = vld [vmem:[#allocation2 + $0x110] sm:$0xf]  ;;  %v6886_v49 = vld [vmem:[#allocation2 + $0xf8] sm:$0xff] }
 0x1e8   : > { %v1805_v40 = vshrl.u32 %v1690_v5, 16  ;;  %v1808_v39 = vshll.u32 %v1690_v5, 16  ;;  %v1818_v48 = vshrl.u32 %v1691_v6, 16 }
 0x1e9   : > { %v8081_v3 = vpop.f32.mrf.mxu1  ;;  %v3569_v24 = vor.u32 %v3568_v37, %v3565_v57  ;;  %v8090_v26 = vpop.f32.mrf.mxu0  ;;  %v3584_v37 = vrot.slane %v3582_v8, 5 }
 0x1ea   : > { %9215 = vst [vmem:[#allocation25_spill] sm:$0xff] %v8081_v3  ;;  %v1820_v38 = vrot.slane %v1818_v48, 4 }
 0x1eb   : > { %v1658_v11 = vpop.f32.mrf.mxu2  ;;  %9216 = vst [vmem:[#allocation26_spill] sm:$0xff] %v8090_v26  ;;  %v1810_v26 = vrot.slane %v1808_v39, 5 }
 0x1ec   : > { %4800 = vmatmul.bf16.vlgmr.msra.gmra.mxu0 %v6917_v41  ;;  %v1689_v41 = vld [vmem:[#allocation2 + $0x40] sm:$0x1]  ;;  %v8084_v18 = vadd.f32 %v1658_v11, %v8053_v1  ;;  %v6918_v1 = vld [vmem:[#allocation2 + $0x50] sm:$0xff]  ;;  %v2137_v11 = vunpack.c.l.b16 %v1793_v36 }
 0x1ed   : > { %v8070_v34 = vpop.f32.mrf.mxu3  ;;  %v1800_v53 = vshll.u32 %v1689_v41, 16  ;;  %v3787_v41 = vpack.c.b16 %v3764_v12, %v3763_v30  ;;  %v1814_v12 = vshll.u32 %v1691_v6, 16  ;;  %v3329_v30 = vld [vmem:[#allocation2 + $0x114] sm:$0xf]  ;;  %v3587_v6 = vshrl.u32 %v3328_v25, 16 }
 0x1ee   : > { %v3600_v2 = vshrl.u32 %v3329_v30, 16 }
 0x1ef   : > { %v1802_v23 = vrot.slane %v1800_v53, 5  ;;  %v6955_v53 = vld [vmem:[%s9183_s4 + $0x230] sm:$0xff]  ;;  %v1816_v5 = vrot.slane %v1814_v12, 5 }
 0x1f0   : > { %5475 = vmatpush.bf16.msra.mxu1 %v6955_v53  ;;  %v3602_v48 = vrot.slane %v3600_v2, 4 }
 0x1f1   : > { %3907 = vmatmul.bf16.gmra.mxu2 %v3787_v41  ;;  %v1803_v20 = vsel %vm7792_vm6, %v1798_v15, %v1802_v23  ;;  %v8097_v9 = vpop.f32.mrf.mxu1  ;;  %v1692_v23 = vld [vmem:[#allocation2 + $0x58] sm:$0x1]  ;;  %v1807_v41 = vrot.slane %v1805_v40, 4  ;;  %v3589_v40 = vrot.slane %v3587_v6, 4  ;;  %v8105_v3 = vpop.f32.mrf.mxu0  ;;  %v3606_v6 = vshll.u32 %v3330_v61, 16 }
 0x1f2   : > { %9217 = vst [vmem:[#allocation27_spill] sm:$0xff] %v8097_v9  ;;  %v2138_v47 = vunpack.c.l.b16 %v1803_v20  ;;  %v1824_v36 = vshll.u32 %v1692_v23, 16  ;;  %v1821_v9 = vor.u32 %v1820_v38, %v1816_v5 }
 0x1f3   : > { %2258 = vmatmul.bf16.gmra.mxu3 %v2166_v0  ;;  %v3579_v0 = vor.u32 %v3578_v56, %v3574_v21  ;;  %v3570_v56 = vrot.slane %v3569_v24, 4  ;;  %v3596_v24 = vshll.u32 %v3329_v30, 16  ;;  %3230 = vmatmul.bf16.gmra.mxu1 %v6886_v49  ;;  %v1811_v20 = vor.u32 %v1810_v26, %v1807_v41  ;;  %9218 = vst [vmem:[#allocation28_spill] sm:$0xff] %v8105_v3 }
 0x1f4   : > { %v2167_v8 = vpack.c.b16 %v2138_v47, %v2137_v11  ;;  %v1822_v38 = vrot.slane %v1821_v9, 4  ;;  %v1832_v11 = vshll.u32 %v1693_v28, 16 }
 0x1f5   : > { %v3580_v57 = vrot.slane %v3579_v0, 4  ;;  %v3575_v53 = vsel %vm7792_vm6, %v3570_v56, %v3574_v21  ;;  %v3598_v12 = vrot.slane %v3596_v24, 5  ;;  %v1826_v56 = vrot.slane %v1824_v36, 5 }
 0x1f6   : > { %v8086_v22 = vpop.f32.mrf.mxu3  ;;  %v3765_v30 = vunpack.c.l.b16 %v3575_v53  ;;  %v1812_v26 = vrot.slane %v1811_v20, 4  ;;  %v6919_v53 = vld [vmem:[#allocation2 + $0x68] sm:$0xff]  ;;  %v1834_v36 = vrot.slane %v1832_v11, 5 }
 0x1f7   : > { %v3585_v0 = vsel %vm7792_vm6, %v3580_v57, %v3584_v37  ;;  %v1829_v57 = vshrl.u32 %v1693_v28, 16  ;;  %v3603_v41 = vor.u32 %v3602_v48, %v3598_v12  ;;  %v3608_v28 = vrot.slane %v3606_v6, 5 }
 0x1f8   : > { %v3766_v49 = vunpack.c.l.b16 %v3585_v0  ;;  %v1817_v0 = vsel %vm7792_vm6, %v1812_v26, %v1816_v5  ;;  %v6887_v5 = vld [vmem:[#allocation2 + $0x110] sm:$0xff] }
 0x1f9   : > { %v8107_v21 = vpop.f32.mrf.mxu1  ;;  %v1831_v24 = vrot.slane %v1829_v57, 4  ;;  %v3604_v9 = vrot.slane %v3603_v41, 4 }
 0x1fa   : > { %9219 = vst [vmem:[#allocation29_spill] sm:$0xff] %v8107_v21 }
 0x1fc   : > { %4805 = vmatmul.bf16.gmra.mxu0 %v6918_v1  ;;  %v3590_v1 = vshll.u32 %v3328_v25, 16  ;;  %v1694_v25 = vld [vmem:[#allocation2 + $0x6c] sm:$0xf] }
 0x1fd   : > { %v1838_v47 = vshll.u32 %v1694_v25, 16  ;;  %v1842_v2 = vshrl.u32 %v1694_v25, 16  ;;  %v3331_v25 = vld [vmem:[#allocation2 + $0x128] sm:$0xf] }
 0x1fe   : > { %v8099_v15 = vpop.f32.mrf.mxu3  ;;  %v3592_v39 = vrot.slane %v3590_v1, 5  ;;  %v3788_v1 = vpack.c.b16 %v3766_v49, %v3765_v30  ;;  %v3332_v30 = vld [vmem:[#allocation2 + $0x12c] sm:$0xf]  ;;  %v8117_v49 = vpop.f32.mrf.mxu0  ;;  %v3614_v41 = vshll.u32 %v3331_v25, 16 }
 0x1ff   : > { %v1840_v3 = vrot.slane %v1838_v47, 5  ;;  %v1844_v21 = vrot.slane %v1842_v2, 4  ;;  %9221 = vst [vmem:[#allocation31_spill] sm:$0xff] %v8117_v49  ;;  %v3620_v6 = vshll.u32 %v3332_v30, 16  ;;  %v3624_v2 = vshrl.u32 %v3332_v30, 16 }
 0x200   : > { %v3593_v23 = vor.u32 %v3592_v39, %v3589_v40  ;;  %v1695_v40 = vld [vmem:[#allocation2 + $0x70] sm:$0x1]  ;;  %v2139_v39 = vunpack.c.l.b16 %v1817_v0 }
 0x201   : > { %3912 = vmatmul.bf16.gmra.mxu2 %v3788_v1  ;;  %v8115_v61 = vpop.f32.mrf.mxu1  ;;  %v1845_v11 = vor.u32 %v1844_v21, %v1840_v3  ;;  %v1848_v47 = vshll.u32 %v1695_v40, 16  ;;  %v6938_v1 = vld [vmem:[%s9183_s4 + $0x1a8] sm:$0xff]  ;;  %v3626_v40 = vrot.slane %v3624_v2, 4  ;;  %v3333_v30 = vld [vmem:[#allocation2 + $0x130] sm:$0x1]  ;;  %v6920_v2 = vld [vmem:[#allocation2 + $0x80] sm:$0xff] }
 0x202   : > { %v3594_v20 = vrot.slane %v3593_v23, 4  ;;  %9220 = vst [vmem:[#allocation30_spill] sm:$0xff] %v8115_v61  ;;  %v3611_v23 = vshrl.u32 %v3331_v25, 16  ;;  %4512 = vmatpush.bf16.msra.mxu3 %v6938_v1  ;;  %v1697_v25 = vld [vmem:[#allocation2 + $0x84] sm:$0xf]  ;;  %v6954_v1 = vld [vmem:[%s9183_s4 + $0x228] sm:$0xff] }
 0x203   : > { %2263 = vmatmul.bf16.gmra.mxu3 %v2167_v8  ;;  %v1827_v8 = vsel %vm7792_vm6, %v1822_v38, %v1826_v56  ;;  %v1835_v56 = vor.u32 %v1834_v36, %v1831_v24  ;;  %v3609_v38 = vsel %vm7792_vm6, %v3604_v9, %v3608_v28  ;;  %3235 = vmatmul.bf16.gmra.mxu1 %v6887_v5  ;;  %v1850_v36 = vrot.slane %v1848_v47, 5 }
 0x204   : > { %v2140_v48 = vunpack.c.l.b16 %v1827_v8  ;;  %v3599_v26 = vsel %vm7792_vm6, %v3594_v20, %v3598_v12  ;;  %v3768_v8 = vunpack.c.l.b16 %v3609_v38  ;;  %v1846_v12 = vrot.slane %v1845_v11, 4  ;;  %v1696_v20 = vld [vmem:[#allocation2 + $0x80] sm:$0xf]  ;;  %5476 = vmatpush.bf16.msra.mxu1 %v6954_v1  ;;  %v8151_v1 = vpop.f32.mrf.mxu2 }
 0x205   : > { %v1836_v0 = vrot.slane %v1835_v56, 4  ;;  %v3767_v24 = vunpack.c.l.b16 %v3599_v26  ;;  %v3613_v21 = vrot.slane %v3611_v23, 4  ;;  %v3616_v9 = vrot.slane %v3614_v41, 5  ;;  %9226 = vst [vmem:[#allocation36_spill] sm:$0xff] %v8151_v1 }
 0x206   : > { %v8109_v37 = vpop.f32.mrf.mxu3  ;;  %v3622_v28 = vrot.slane %v3620_v6, 5  ;;  %v1853_v61 = vshrl.u32 %v1696_v20, 16  ;;  %v1851_v56 = vsel %vm7792_vm6, %v1846_v12, %v1850_v36  ;;  %v1862_v26 = vshll.u32 %v1697_v25, 16  ;;  %v8136_v11 = vpop.f32.mrf.mxu0 }
 0x207   : > { %v1866_v38 = vshrl.u32 %v1697_v25, 16  ;;  %9223 = vst [vmem:[#allocation33_spill] sm:$0xff] %v8136_v11  ;;  %v3789_v47 = vpack.c.b16 %v3768_v8, %v3767_v24  ;;  %v3617_v23 = vor.u32 %v3616_v9, %v3613_v21  ;;  %v3630_v6 = vshll.u32 %v3333_v30, 16  ;;  %v1698_v24 = vld [vmem:[#allocation2 + $0x88] sm:$0x1] }
 0x208   : > { %v3627_v41 = vor.u32 %v3626_v40, %v3622_v28  ;;  %v6888_v9 = vld [vmem:[#allocation2 + $0x128] sm:$0xff]  ;;  %v3334_v30 = vld [vmem:[#allocation2 + $0x140] sm:$0xf] }
 0x209   : > { %v8128_v5 = vpop.f32.mrf.mxu1  ;;  %v3618_v12 = vrot.slane %v3617_v23, 4  ;;  %v3632_v25 = vrot.slane %v3630_v6, 5  ;;  %v1868_v8 = vrot.slane %v1866_v38, 4  ;;  %v3635_v23 = vshrl.u32 %v3334_v30, 16 }
 0x20a   : > { %9222 = vst [vmem:[#allocation32_spill] sm:$0xff] %v8128_v5  ;;  %v1864_v5 = vrot.slane %v1862_v26, 5  ;;  %v3628_v36 = vrot.slane %v3627_v41, 4  ;;  %v3638_v38 = vshll.u32 %v3334_v30, 16  ;;  %v3336_v30 = vld [vmem:[#allocation2 + $0x148] sm:$0x1] }
 0x20c   : > { %4810 = vmatmul.bf16.gmra.mxu0 %v6919_v53  ;;  %v2168_v53 = vpack.c.b16 %v2140_v48, %v2139_v39  ;;  %v1856_v39 = vshll.u32 %v1696_v20, 16  ;;  %v1841_v48 = vsel %vm7792_vm6, %v1836_v0, %v1840_v3  ;;  %v2142_v3 = vunpack.c.l.b16 %v1851_v56 }
 0x20d   : > { %v2141_v20 = vunpack.c.l.b16 %v1841_v48  ;;  %v3633_v48 = vsel %vm7792_vm6, %v3628_v36, %v3632_v25  ;;  %v1869_v26 = vor.u32 %v1868_v8, %v1864_v5  ;;  %v3640_v36 = vrot.slane %v3638_v38, 5  ;;  %v1699_v25 = vld [vmem:[#allocation2 + $0x98] sm:$0xf] }
 0x20e   : > { %v8119_v57 = vpop.f32.mrf.mxu3  ;;  %v1858_v0 = vrot.slane %v1856_v39, 5  ;;  %v3623_v39 = vsel %vm7792_vm6, %v3618_v12, %v3622_v28  ;;  %v3637_v12 = vrot.slane %v3635_v23, 4  ;;  %v6921_v23 = vld [vmem:[#allocation2 + $0x98] sm:$0xff]  ;;  %v1880_v38 = vshll.u32 %v1699_v25, 16 }
 0x20f   : > { %v2169_v56 = vpack.c.b16 %v2142_v3, %v2141_v20 }
 0x211   : > { %3917 = vmatmul.bf16.gmra.mxu2 %v3789_v47  ;;  %v8141_v21 = vpop.f32.mrf.mxu1  ;;  %v3335_v47 = vld [vmem:[#allocation2 + $0x144] sm:$0xf] }
 0x212   : > { %9224 = vst [vmem:[#allocation34_spill] sm:$0xff] %v8141_v21  ;;  %v3644_v41 = vshll.u32 %v3335_v47, 16  ;;  %v3648_v6 = vshrl.u32 %v3335_v47, 16 }
 0x213   : > { %2268 = vmatmul.bf16.gmra.mxu3 %v2168_v53  ;;  %v1855_v53 = vrot.slane %v1853_v61, 4  ;;  %v1872_v61 = vshll.u32 %v1698_v24, 16  ;;  %3240 = vmatmul.bf16.gmra.mxu1 %v6888_v9  ;;  %v3770_v24 = vunpack.c.l.b16 %v3633_v48  ;;  %v1870_v9 = vrot.slane %v1869_v26, 4 }
 0x214   : > { %v3646_v20 = vrot.slane %v3644_v41, 5  ;;  %v3650_v3 = vrot.slane %v3648_v6, 4  ;;  %v3641_v48 = vor.u32 %v3640_v36, %v3637_v12 }
 0x215   : > { %v1859_v11 = vor.u32 %v1858_v0, %v1855_v53  ;;  %v3769_v0 = vunpack.c.l.b16 %v3623_v39  ;;  %v1874_v21 = vrot.slane %v1872_v61, 5  ;;  %v1877_v39 = vshrl.u32 %v1699_v25, 16 }
 0x216   : > { %v8130_v49 = vpop.f32.mrf.mxu3  ;;  %v3651_v61 = vor.u32 %v3650_v3, %v3646_v20  ;;  %v1701_v3 = vld [vmem:[#allocation2 + $0xa0] sm:$0x1] }
 0x217   : > { %v1860_v53 = vrot.slane %v1859_v11, 4  ;;  %v3790_v1 = vpack.c.b16 %v3770_v24, %v3769_v0  ;;  %v1875_v26 = vsel %vm7792_vm6, %v1870_v9, %v1874_v21 }
 0x218   : > { %v2144_v24 = vunpack.c.l.b16 %v1875_v26  ;;  %v3652_v12 = vrot.slane %v3651_v61, 4 }
 0x219   : > { %v8153_v28 = vpop.f32.mrf.mxu1  ;;  %v1865_v11 = vsel %vm7792_vm6, %v1860_v53, %v1864_v5  ;;  %v8164_v5 = vpop.f32.mrf.mxu2  ;;  %v3642_v53 = vrot.slane %v3641_v48, 4  ;;  %v6937_v48 = vld [vmem:[%s9183_s4 + $0x1a0] sm:$0xff] }
 0x21a   : > { %9227 = vst [vmem:[#allocation37_spill] sm:$0xff] %v8153_v28  ;;  %v3337_v28 = vld [vmem:[#allocation2 + $0x158] sm:$0xf]  ;;  %v2143_v0 = vunpack.c.l.b16 %v1865_v11  ;;  %4513 = vmatpush.bf16.msra.mxu3 %v6937_v48 }
 0x21b   : > { %9229 = vst [vmem:[#allocation39_spill] sm:$0xff] %v8164_v5  ;;  %v3659_v25 = vshrl.u32 %v3337_v28, 16  ;;  %v3662_v11 = vshll.u32 %v3337_v28, 16 }
 0x21c   : > { %4815 = vmatmul.bf16.gmra.mxu0 %v6920_v2  ;;  %v8149_v2 = vpop.f32.mrf.mxu0 }
 0x21d   : > { %9225 = vst [vmem:[#allocation35_spill] sm:$0xff] %v8149_v2  ;;  %v1700_v2 = vld [vmem:[#allocation2 + $0x9c] sm:$0xf]  ;;  %v3664_v28 = vrot.slane %v3662_v11, 5 }
 0x21e   : > { %v8143_v40 = vpop.f32.mrf.mxu3  ;;  %v1886_v41 = vshll.u32 %v1700_v2, 16  ;;  %v1890_v6 = vshrl.u32 %v1700_v2, 16  ;;  %v1882_v2 = vrot.slane %v1880_v38, 5  ;;  %v1896_v38 = vshll.u32 %v1701_v3, 16 }
 0x220   : > { %v1888_v58 = vrot.slane %v1886_v41, 5  ;;  %v1892_v63 = vrot.slane %v1890_v6, 4  ;;  %v1898_v29 = vrot.slane %v1896_v38, 5 }
 0x221   : > { %3922 = vmatmul.bf16.gmra.mxu2 %v3790_v1  ;;  %v8166_v21 = vpop.f32.mrf.mxu1  ;;  %v6889_v1 = vld [vmem:[#allocation2 + $0x140] sm:$0xff] }
 0x222   : > { %9230 = vst [vmem:[#allocation40_spill] sm:$0xff] %v8166_v21  ;;  %v1893_v6 = vor.u32 %v1892_v63, %v1888_v58  ;;  %v8180_v63 = vpop.f32.mrf.mxu2 }
 0x223   : > { %2273 = vmatmul.bf16.gmra.mxu3 %v2169_v56  ;;  %v3654_v56 = vshll.u32 %v3336_v30, 16  ;;  %v1879_v30 = vrot.slane %v1877_v39, 4  ;;  %3245 = vmatmul.bf16.gmra.mxu1 %v6889_v1  ;;  %v3647_v39 = vsel %vm7792_vm6, %v3642_v53, %v3646_v20  ;;  %9233 = vst [vmem:[#allocation43_spill] sm:$0xff] %v8180_v63 }
 0x224   : > { %v3771_v21 = vunpack.c.l.b16 %v3647_v39  ;;  %v6922_v39 = vld [vmem:[#allocation2 + $0xb0] sm:$0xff] }
 0x225   : > { %v3656_v36 = vrot.slane %v3654_v56, 5  ;;  %v2170_v56 = vpack.c.b16 %v2144_v24, %v2143_v0  ;;  %v1883_v41 = vor.u32 %v1882_v2, %v1879_v30  ;;  %v1703_v0 = vld [vmem:[#allocation2 + $0xb4] sm:$0xf] }
 0x226   : > { %v1661_v8 = vpop.f32.mrf.mxu3  ;;  %v1914_v48 = vshrl.u32 %v1703_v0, 16 }
 0x227   : > { %v8156_v47 = vadd.f32 %v1661_v8, %v8060_v45  ;;  %v8162_v45 = vpop.f32.mrf.mxu0  ;;  %v3338_v8 = vld [vmem:[#allocation2 + $0x15c] sm:$0xf]  ;;  %v3657_v61 = vsel %vm7792_vm6, %v3652_v12, %v3656_v36  ;;  %v1884_v53 = vrot.slane %v1883_v41, 4  ;;  %v1894_v12 = vrot.slane %v1893_v6, 4 }
 0x228   : > { %9228 = vst [vmem:[#allocation38_spill] sm:$0xff] %v8162_v45  ;;  %v3668_v26 = vshll.u32 %v3338_v8, 16  ;;  %v3672_v45 = vshrl.u32 %v3338_v8, 16  ;;  %v3772_v5 = vunpack.c.l.b16 %v3657_v61 }
 0x229   : > { %v8185_v2 = vpop.f32.mrf.mxu1  ;;  %v1889_v61 = vsel %vm7792_vm6, %v1884_v53, %v1888_v58  ;;  %v1916_v58 = vrot.slane %v1914_v48, 4  ;;  %v6952_v48 = vld [vmem:[%s9183_s4 + $0x218] sm:$0xff] }
 0x22a   : > { %v3670_v8 = vrot.slane %v3668_v26, 5  ;;  %v3674_v1 = vrot.slane %v3672_v45, 4  ;;  %9234 = vst [vmem:[#allocation44_spill] sm:$0xff] %v8185_v2  ;;  %v3791_v11 = vpack.c.b16 %v3772_v5, %v3771_v21  ;;  %v1910_v26 = vshll.u32 %v1703_v0, 16 }
 0x22b   : > { %v2145_v5 = vunpack.c.l.b16 %v1889_v61 }
 0x22c   : > { %4820 = vmatmul.bf16.gmra.mxu0 %v6921_v23  ;;  %v3675_v45 = vor.u32 %v3674_v1, %v3670_v8  ;;  %v3341_v1 = vld [vmem:[#allocation2 + $0x174] sm:$0xf] }
 0x22e   : > { %v1663_v9 = vpop.f32.mrf.mxu3 }
 0x22f   : > { %v8169_v23 = vadd.f32 %v1663_v9, %v8070_v34  ;;  %v3661_v34 = vrot.slane %v3659_v25, 4  ;;  %v1702_v9 = vld [vmem:[#allocation2 + $0xb0] sm:$0xf]  ;;  %v3678_v25 = vshll.u32 %v3339_v31, 16  ;;  %v3676_v31 = vrot.slane %v3675_v45, 4 }
 0x230   : > { %v1901_v24 = vshrl.u32 %v1702_v9, 16  ;;  %v1904_v36 = vshll.u32 %v1702_v9, 16  ;;  %v1912_v9 = vrot.slane %v1910_v26, 5  ;;  %v3696_v26 = vshrl.u32 %v3341_v1, 16 }
 0x231   : > { %9231 = vst [vmem:[#allocation41_spill] sm:$0xff] %v8169_v23  ;;  %v8178_v23 = vpop.f32.mrf.mxu0  ;;  %v3665_v30 = vor.u32 %v3664_v28, %v3661_v34  ;;  %3927 = vmatmul.bf16.gmra.mxu2 %v3791_v11  ;;  %v3680_v6 = vrot.slane %v3678_v25, 5  ;;  %v3340_v28 = vld [vmem:[#allocation2 + $0x170] sm:$0xf]  ;;  %v3692_v11 = vshll.u32 %v3341_v1, 16 }
 0x232   : > { %9232 = vst [vmem:[#allocation42_spill] sm:$0xff] %v8178_v23  ;;  %v1903_v38 = vrot.slane %v1901_v24, 4  ;;  %v1906_v34 = vrot.slane %v1904_v36, 5  ;;  %v3683_v45 = vshrl.u32 %v3340_v28, 16  ;;  %v3686_v25 = vshll.u32 %v3340_v28, 16 }
 0x233   : > { %2278 = vmatmul.bf16.gmra.mxu3 %v2170_v56  ;;  %v1899_v56 = vsel %vm7792_vm6, %v1894_v12, %v1898_v29  ;;  %v3666_v41 = vrot.slane %v3665_v30, 4  ;;  %v1704_v29 = vld [vmem:[#allocation2 + $0xb8] sm:$0x1]  ;;  %v3681_v0 = vsel %vm7792_vm6, %v3676_v31, %v3680_v6  ;;  %v1917_v61 = vor.u32 %v1916_v58, %v1912_v9  ;;  %v1705_v31 = vld [vmem:[#allocation2 + $0xc8] sm:$0xf] }
 0x234   : > { %v2146_v21 = vunpack.c.l.b16 %v1899_v56  ;;  %v1907_v36 = vor.u32 %v1906_v34, %v1903_v38  ;;  %v1920_v56 = vshll.u32 %v1704_v29, 16  ;;  %v3774_v38 = vunpack.c.l.b16 %v3681_v0 }
 0x235   : > { %v3671_v12 = vsel %vm7792_vm6, %v3666_v41, %v3670_v8  ;;  %v3685_v6 = vrot.slane %v3683_v45, 4  ;;  %v3688_v34 = vrot.slane %v3686_v25, 5  ;;  %v8210_v28 = vrot.slane %v3692_v11, 5 }
 0x236   : > { %v1666_v20 = vpop.f32.mrf.mxu3  ;;  %v2171_v8 = vpack.c.b16 %v2146_v21, %v2145_v5  ;;  %v1908_v41 = vrot.slane %v1907_v36, 4  ;;  %v3698_v1 = vrot.slane %v3696_v26, 4  ;;  %v1922_v23 = vrot.slane %v1920_v56, 5  ;;  %v6951_v5 = vld [vmem:[%s9183_s4 + $0x210] sm:$0xff]  ;;  %v6923_v56 = vld [vmem:[#allocation2 + $0xc8] sm:$0xff] }
 0x237   : > { %v8183_v3 = vadd.f32 %v1666_v20, %v8086_v22  ;;  %v6953_v22 = vld [vmem:[%s9183_s4 + $0x220] sm:$0xff]  ;;  %v6890_v20 = vld [vmem:[#allocation2 + $0x158] sm:$0xff]  ;;  %v1925_v58 = vshrl.u32 %v1705_v31, 16  ;;  %v1928_v29 = vshll.u32 %v1705_v31, 16  ;;  %v3689_v11 = vor.u32 %v3688_v34, %v3685_v6 }
 0x238   : > { %5477 = vmatpush.bf16.msra.mxu1 %v6953_v22  ;;  %v8208_v22 = vpop.f32.mrf.mxu1  ;;  %v1913_v0 = vsel %vm7792_vm6, %v1908_v41, %v1912_v9  ;;  %v3699_v26 = vor.u32 %v3698_v1, %v8210_v28 }
 0x239   : > { %v8201_v30 = vpop.f32.mrf.mxu0  ;;  %3250 = vmatmul.bf16.gmra.mxu1 %v6890_v20  ;;  %9237 = vst [vmem:[#allocation47_spill] sm:$0xff] %v8208_v22  ;;  %v1706_v20 = vld [vmem:[#allocation2 + $0xcc] sm:$0xf]  ;;  %v1927_v9 = vrot.slane %v1925_v58, 4  ;;  %v2147_v31 = vunpack.c.l.b16 %v1913_v0  ;;  %v6891_v58 = vld [vmem:[#allocation2 + $0x170] sm:$0xff] }
 0x23a   : > { %9235 = vst [vmem:[#allocation45_spill] sm:$0xff] %v8201_v30  ;;  %v1918_v30 = vrot.slane %v1917_v61, 4  ;;  %v1934_v36 = vshll.u32 %v1706_v20, 16  ;;  %v1938_v45 = vshrl.u32 %v1706_v20, 16  ;;  %v3343_v0 = vld [vmem:[#allocation2 + $0x188] sm:$0xf] }
 0x23c   : > { %4825 = vmatmul.bf16.gmra.mxu0 %v6922_v39  ;;  %v8206_v39 = vpop.f32.mrf.mxu2  ;;  %5478 = vmatpush.bf16.msra.mxu1 %v6952_v48  ;;  %v1940_v6 = vrot.slane %v1938_v45, 4 }
 0x23d   : > { %9236 = vst [vmem:[#allocation46_spill] sm:$0xff] %v8206_v39 }
 0x23e   : > { %v1668_v53 = vpop.f32.mrf.mxu3 }
 0x23f   : > { %v8199_v24 = vadd.f32 %v1668_v53, %v8099_v15  ;;  %v3773_v15 = vunpack.c.l.b16 %v3671_v12  ;;  %v3342_v53 = vld [vmem:[#allocation2 + $0x178] sm:$0x1] }
 0x240   : > { %5479 = vmatpush.bf16.msra.mxu1 %v6951_v5  ;;  %v3702_v48 = vshll.u32 %v3342_v53, 16  ;;  %v8232_v34 = vpop.f32.mrf.mxu1  ;;  %v1707_v53 = vld [vmem:[#allocation2 + $0xd0] sm:$0x1]  ;;  %v6949_v5 = vld [vmem:[%s9183_s4 + $0x200] sm:$0xff] }
 0x241   : > { %v3792_v25 = vpack.c.b16 %v3774_v38, %v3773_v15  ;;  %v8223_v61 = vpop.f32.mrf.mxu0  ;;  %v1930_v15 = vrot.slane %v1928_v29, 5  ;;  %v8230_v38 = vrot.slane %v1934_v36, 5  ;;  %9240 = vst [vmem:[#allocation50_spill] sm:$0xff] %v8232_v34  ;;  %v3344_v36 = vld [vmem:[#allocation2 + $0x18c] sm:$0xf] }
 0x242   : > { %9238 = vst [vmem:[#allocation48_spill] sm:$0xff] %v8223_v61  ;;  %v3704_v1 = vrot.slane %v3702_v48, 5  ;;  %v3710_v61 = vshll.u32 %v3343_v0, 16  ;;  %v3716_v34 = vshll.u32 %v3344_v36, 16  ;;  %v3720_v22 = vshrl.u32 %v3344_v36, 16 }
 0x243   : > { %2283 = vmatmul.bf16.gmra.mxu3 %v2171_v8  ;;  %v1923_v8 = vsel %vm7792_vm6, %v1918_v30, %v1922_v23  ;;  %3932 = vmatmul.bf16.gmra.mxu2 %v3792_v25  ;;  %v3690_v23 = vrot.slane %v3689_v11, 4  ;;  %v3700_v30 = vrot.slane %v3699_v26, 4  ;;  %v1931_v25 = vor.u32 %v1930_v15, %v1927_v9 }
 0x244   : > { %v8228_v41 = vpop.f32.mrf.mxu2  ;;  %v2148_v20 = vunpack.c.l.b16 %v1923_v8  ;;  %v1941_v11 = vor.u32 %v1940_v6, %v8230_v38  ;;  %v1944_v26 = vshll.u32 %v1707_v53, 16  ;;  %v4914_v53 = vld [vmem:[#allocation2 + $0x3c] sm:$0xf] }
 0x245   : > { %9239 = vst [vmem:[#allocation49_spill] sm:$0xff] %v8228_v41  ;;  %v3695_v48 = vsel %vm7792_vm6, %v3690_v23, %v8210_v28  ;;  %v3705_v8 = vsel %vm7792_vm6, %v3700_v30, %v3704_v1  ;;  %v1932_v9 = vrot.slane %v1931_v25, 4  ;;  %v1708_v28 = vld [vmem:[#allocation2 + $0xe0] sm:$0xf]  ;;  %v3718_v1 = vrot.slane %v3716_v34, 5 }
 0x246   : > { %v1671_v21 = vpop.f32.mrf.mxu3  ;;  %v1942_v15 = vrot.slane %v1941_v11, 4  ;;  %v1946_v6 = vrot.slane %v1944_v26, 5  ;;  %v4971_v26 = vshll.u32 %v4914_v53, 16  ;;  %v4975_v2 = vshrl.u32 %v4914_v53, 16  ;;  %v6924_v53 = vld [vmem:[#allocation2 + $0xe0] sm:$0xff] }
 0x247   : > { %v8216_v12 = vadd.f32 %v1671_v21, %v8109_v37  ;;  %v6950_v37 = vld [vmem:[%s9183_s4 + $0x208] sm:$0xff]  ;;  %v6936_v21 = vld [vmem:[%s9183_s4 + $0x198] sm:$0xff]  ;;  %v1949_v34 = vshrl.u32 %v1708_v28, 16 }
 0x248   : > { %5480 = vmatpush.bf16.msra.mxu1 %v6950_v37  ;;  %4514 = vmatpush.bf16.msra.mxu3 %v6936_v21  ;;  %v3707_v37 = vshrl.u32 %v3343_v0, 16  ;;  %v1709_v0 = vld [vmem:[#allocation2 + $0xe4] sm:$0xf]  ;;  %v8253_v36 = vpop.f32.mrf.mxu1  ;;  %v4977_v63 = vrot.slane %v4975_v2, 4 }
 0x249   : > { %3255 = vmatmul.bf16.gmra.mxu1 %v6891_v58  ;;  %v8249_v21 = vpop.f32.mrf.mxu0  ;;  %v3775_v58 = vunpack.c.l.b16 %v3695_v48  ;;  %9244 = vst [vmem:[#allocation54_spill] sm:$0xff] %v8253_v36  ;;  %v1937_v48 = vsel %vm7792_vm6, %v1932_v9, %v8230_v38  ;;  %v1951_v9 = vrot.slane %v1949_v34, 4 }
 0x24a   : > { %9242 = vst [vmem:[#allocation52_spill] sm:$0xff] %v8249_v21  ;;  %v3709_v30 = vrot.slane %v3707_v37, 4  ;;  %v1958_v37 = vshll.u32 %v1709_v0, 16 }
 0x24c   : > { %4830 = vmatmul.bf16.gmra.mxu0 %v6923_v56  ;;  %v2172_v56 = vpack.c.b16 %v2148_v20, %v2147_v31  ;;  %5481 = vmatpush.bf16.msra.mxu1 %v6949_v5  ;;  %v8251_v23 = vpop.f32.mrf.mxu2  ;;  %v3712_v31 = vrot.slane %v3710_v61, 5  ;;  %v3722_v20 = vrot.slane %v3720_v22, 4  ;;  %v1947_v61 = vsel %vm7792_vm6, %v1942_v15, %v1946_v6 }
 0x24d   : > { %9243 = vst [vmem:[#allocation53_spill] sm:$0xff] %v8251_v23  ;;  %v2150_v38 = vunpack.c.l.b16 %v1947_v61  ;;  %v8263_v6 = vrot.slane %v1958_v37, 5 }
 0x24e   : > { %v1673_v29 = vpop.f32.mrf.mxu3  ;;  %v3713_v36 = vor.u32 %v3712_v31, %v3709_v30  ;;  %v3723_v23 = vor.u32 %v3722_v20, %v3718_v1  ;;  %v1710_v30 = vld [vmem:[#allocation2 + $0xe8] sm:$0x1] }
 0x24f   : > { %v8241_v45 = vadd.f32 %v1673_v29, %v8119_v57  ;;  %v4913_v57 = vld [vmem:[#allocation2 + $0x38] sm:$0xf]  ;;  %v3776_v29 = vunpack.c.l.b16 %v3705_v8  ;;  %v1952_v8 = vshll.u32 %v1708_v28, 16 }
 0x250   : > { %v4962_v25 = vshrl.u32 %v4913_v57, 16  ;;  %v4965_v11 = vshll.u32 %v4913_v57, 16  ;;  %v1962_v57 = vshrl.u32 %v1709_v0, 16  ;;  %v6892_v0 = vld [vmem:[#allocation2 + $0x188] sm:$0xff]  ;;  %v8272_v61 = vpop.f32.mrf.mxu1 }
 0x251   : > { %9241 = vst [vmem:[#allocation51_spill] sm:$0xff] %v8241_v45  ;;  %v3793_v22 = vpack.c.b16 %v3776_v29, %v3775_v58  ;;  %v4915_v45 = vld [vmem:[#allocation2 + $0x40] sm:$0x1]  ;;  %v1954_v15 = vrot.slane %v1952_v8, 5  ;;  %v3714_v58 = vrot.slane %v3713_v36, 4  ;;  %v3724_v29 = vrot.slane %v3723_v23, 4  ;;  %v8265_v20 = vpop.f32.mrf.mxu0 }
 0x252   : > { %v4964_v39 = vrot.slane %v4962_v25, 4  ;;  %v1964_v31 = vrot.slane %v1962_v57, 4  ;;  %9246 = vst [vmem:[#allocation56_spill] sm:$0xff] %v8265_v20  ;;  %v4981_v2 = vshll.u32 %v4915_v45, 16  ;;  %v1968_v23 = vshll.u32 %v1710_v30, 16 }
 0x253   : > { %2288 = vmatmul.bf16.gmra.mxu3 %v2172_v56  ;;  %v3345_v56 = vld [vmem:[#allocation2 + $0x190] sm:$0x1]  ;;  %3937 = vmatmul.bf16.gmra.mxu2 %v3793_v22  ;;  %9247 = vst [vmem:[#allocation57_spill] sm:$0xff] %v8272_v61  ;;  %v1955_v34 = vor.u32 %v1954_v15, %v1951_v9 }
 0x254   : > { %v3726_v41 = vshll.u32 %v3345_v56, 16  ;;  %v4916_v8 = vld [vmem:[#allocation2 + $0x50] sm:$0xf] }
 0x256   : > { %v1676_v5 = vpop.f32.mrf.mxu3  ;;  %v3728_v28 = vrot.slane %v3726_v41, 5  ;;  %v3719_v41 = vsel %vm7792_vm6, %v3714_v58, %v3718_v1  ;;  %v6964_v1 = vld [vmem:[%s9186_s7 + $0x38] sm:$0xff] }
 0x257   : > { %v8256_v21 = vadd.f32 %v1676_v5, %v8130_v49  ;;  %v4967_v49 = vrot.slane %v4965_v11, 5  ;;  %v4973_v5 = vrot.slane %v4971_v26, 5  ;;  %v3777_v37 = vunpack.c.l.b16 %v3719_v41  ;;  %5777 = vmatpush.bf16.msra.mxu2 %v6964_v1  ;;  %v4918_v1 = vld [vmem:[#allocation2 + $0x58] sm:$0x1] }
 0x258   : > { %v3729_v22 = vsel %vm7792_vm6, %v3724_v29, %v3728_v28  ;;  %v4986_v29 = vshrl.u32 %v4916_v8, 16  ;;  %v4989_v28 = vshll.u32 %v4916_v8, 16 }
 0x259   : > { %9245 = vst [vmem:[#allocation55_spill] sm:$0xff] %v8256_v21  ;;  %v2149_v21 = vunpack.c.l.b16 %v1937_v48  ;;  %v4968_v25 = vor.u32 %v4967_v49, %v4964_v39  ;;  %v4978_v11 = vor.u32 %v4977_v63, %v4973_v5  ;;  %v8270_v48 = vpop.f32.mrf.mxu2  ;;  %3260 = vmatmul.bf16.gmra.mxu1 %v6892_v0  ;;  %v1965_v63 = vor.u32 %v1964_v31, %v8263_v6 }
 0x25a   : > { %v3778_v57 = vunpack.c.l.b16 %v3729_v22  ;;  %v1956_v49 = vrot.slane %v1955_v34, 4  ;;  %v6925_v34 = vld [vmem:[#allocation2 + $0xf8] sm:$0xff]  ;;  %v4988_v8 = vrot.slane %v4986_v29, 4 }
 0x25b   : > { %v2173_v36 = vpack.c.b16 %v2150_v38, %v2149_v21  ;;  %v4969_v39 = vrot.slane %v4968_v25, 4  ;;  %v4979_v45 = vrot.slane %v4978_v11, 4  ;;  %v1966_v21 = vrot.slane %v1965_v63, 4  ;;  %v1712_v25 = vld [vmem:[#allocation2 + $0xfc] sm:$0xf]  ;;  %v8289_v11 = vpop.f32.mrf.mxu0 }
 0x25c   : > { %4835 = vmatmul.bf16.gmra.mxu0 %v6924_v53  ;;  %v4917_v53 = vld [vmem:[#allocation2 + $0x54] sm:$0xf]  ;;  %v1970_v38 = vrot.slane %v1968_v23, 5  ;;  %9248 = vst [vmem:[#allocation58_spill] sm:$0xff] %v8289_v11 }
 0x25d   : > { %v4974_v9 = vsel %vm7792_vm6, %v4969_v39, %v4973_v5  ;;  %v4995_v31 = vshll.u32 %v4917_v53, 16  ;;  %v4999_v0 = vshrl.u32 %v4917_v53, 16  ;;  %v1961_v5 = vsel %vm7792_vm6, %v1956_v49, %v8263_v6 }
 0x25e   : > { %v1678_v56 = vpop.f32.mrf.mxu3  ;;  %v1971_v41 = vsel %vm7792_vm6, %v1966_v21, %v1970_v38  ;;  %v2151_v49 = vunpack.c.l.b16 %v1961_v5  ;;  %v6935_v21 = vld [vmem:[%s9183_s4 + $0x190] sm:$0xff] }
 0x25f   : > { %v8268_v26 = vadd.f32 %v1678_v56, %v8143_v40  ;;  %v4983_v40 = vrot.slane %v4981_v2, 5  ;;  %v1711_v56 = vld [vmem:[#allocation2 + $0xf8] sm:$0xf]  ;;  %v3794_v2 = vpack.c.b16 %v3778_v57, %v3777_v37  ;;  %v4991_v37 = vrot.slane %v4989_v28, 5  ;;  %4515 = vmatpush.bf16.msra.mxu3 %v6935_v21 }
 0x260   : > { %v1973_v63 = vshrl.u32 %v1711_v56, 16  ;;  %v1976_v39 = vshll.u32 %v1711_v56, 16  ;;  %v4997_v57 = vrot.slane %v4995_v31, 5  ;;  %v5001_v53 = vrot.slane %v4999_v0, 4  ;;  %v1713_v31 = vld [vmem:[#allocation2 + $0x100] sm:$0x1] }
 0x261   : > { %v4984_v15 = vsel %vm7792_vm6, %v4979_v45, %v4983_v40  ;;  %v8296_v22 = vpop.f32.mrf.mxu2  ;;  %v1982_v45 = vshll.u32 %v1712_v25, 16  ;;  %v1986_v40 = vshrl.u32 %v1712_v25, 16  ;;  %v4992_v25 = vor.u32 %v4991_v37, %v4988_v8  ;;  %v1714_v37 = vld [vmem:[#allocation2 + $0x110] sm:$0xf] }
 0x262   : > { %v5363_v23 = vunpack.c.l.b16 %v4984_v15  ;;  %9249 = vst [vmem:[#allocation59_spill] sm:$0xff] %v8296_v22  ;;  %v1975_v15 = vrot.slane %v1973_v63, 4  ;;  %v5002_v29 = vor.u32 %v5001_v53, %v4997_v57  ;;  %v5005_v28 = vshll.u32 %v4918_v1, 16  ;;  %v1715_v53 = vld [vmem:[#allocation2 + $0x114] sm:$0xf] }
 0x263   : > { %2293 = vmatmul.bf16.gmra.mxu3 %v2173_v36  ;;  %v5362_v36 = vunpack.c.l.b16 %v4974_v9  ;;  %3942 = vmatmul.bf16.gmra.mxu2 %v3794_v2  ;;  %v2152_v9 = vunpack.c.l.b16 %v1971_v41  ;;  %v1984_v56 = vrot.slane %v1982_v45, 5  ;;  %v1988_v2 = vrot.slane %v1986_v40, 4 }
 0x264   : > { %v1992_v41 = vshll.u32 %v1713_v31, 16  ;;  %v4993_v11 = vrot.slane %v4992_v25, 4  ;;  %v5003_v20 = vrot.slane %v5002_v29, 4  ;;  %v5007_v63 = vrot.slane %v5005_v28, 5 }
 0x265   : > { %v5394_v6 = vpack.c.b16 %v5363_v23, %v5362_v36  ;;  %v2174_v0 = vpack.c.b16 %v2152_v9, %v2151_v49  ;;  %v8305_v36 = vpop.f32.mrf.mxu0  ;;  %v1989_v5 = vor.u32 %v1988_v2, %v1984_v56  ;;  %v1997_v29 = vshrl.u32 %v1714_v37, 16 }
 0x266   : > { %v2254_v58 = vpop.f32.mrf.mxu3  ;;  %9251 = vst [vmem:[#allocation61_spill] sm:$0xff] %v8305_v36  ;;  %v1994_v9 = vrot.slane %v1992_v41, 5  ;;  %v2000_v28 = vshll.u32 %v1714_v37, 16  ;;  %v2006_v31 = vshll.u32 %v1715_v53, 16  ;;  %v6926_v41 = vld [vmem:[#allocation2 + $0x110] sm:$0xff] }
 0x267   : > { %v8287_v30 = vadd.f32 %v2254_v58, %v7633_v27  ;;  %v8298_v27 = vpop.f32.mrf.mxu1  ;;  %v1978_v58 = vrot.slane %v1976_v39, 5  ;;  %v4920_v39 = vld [vmem:[#allocation2 + $0x6c] sm:$0xf]  ;;  %v1990_v49 = vrot.slane %v1989_v5, 4 }
 0x268   : > { %9250 = vst [vmem:[#allocation60_spill] sm:$0xff] %v8298_v27  ;;  %v5019_v21 = vshll.u32 %v4920_v39, 16  ;;  %v5023_v25 = vshrl.u32 %v4920_v39, 16  ;;  %v1999_v39 = vrot.slane %v1997_v29, 4  ;;  %v2002_v37 = vrot.slane %v2000_v28, 5 }
 0x269   : > { %5482 = vmatmul.bf16.vlgmr.msra.gmra.mxu1 %v5394_v6  ;;  %v1979_v23 = vor.u32 %v1978_v58, %v1975_v15  ;;  %v4998_v15 = vsel %vm7792_vm6, %v4993_v11, %v4997_v57  ;;  %v5008_v58 = vsel %vm7792_vm6, %v5003_v20, %v5007_v63  ;;  %v1995_v11 = vsel %vm7792_vm6, %v1990_v49, %v1994_v9  ;;  %v4921_v20 = vld [vmem:[#allocation2 + $0x70] sm:$0x1]  ;;  %v4922_v28 = vld [vmem:[#allocation2 + $0x80] sm:$0xf] }
 0x26a   : > { %v5365_v5 = vunpack.c.l.b16 %v5008_v58  ;;  %v5021_v57 = vrot.slane %v5019_v21, 5  ;;  %v5029_v61 = vshll.u32 %v4921_v20, 16  ;;  %v2003_v21 = vor.u32 %v2002_v37, %v1999_v39 }
 0x26b   : > { %v1980_v6 = vrot.slane %v1979_v23, 4  ;;  %v5364_v23 = vunpack.c.l.b16 %v4998_v15  ;;  %v1716_v15 = vld [vmem:[#allocation2 + $0x118] sm:$0x1] }
 0x26c   : > { %4840 = vmatmul.bf16.gmra.mxu0 %v6925_v34  ;;  %v4919_v34 = vld [vmem:[#allocation2 + $0x68] sm:$0xf]  ;;  %v2016_v29 = vshll.u32 %v1716_v15, 16 }
 0x26d   : > { %v5010_v40 = vshrl.u32 %v4919_v34, 16  ;;  %v5013_v8 = vshll.u32 %v4919_v34, 16  ;;  %v8320_v63 = vpop.f32.mrf.mxu0  ;;  %v5395_v27 = vpack.c.b16 %v5365_v5, %v5364_v23  ;;  %v5037_v23 = vshll.u32 %v4922_v28, 16 }
 0x26e   : > { %v8303_v38 = vpop.f32.mrf.mxu3  ;;  %9253 = vst [vmem:[#allocation63_spill] sm:$0xff] %v8320_v63  ;;  %v5034_v63 = vshrl.u32 %v4922_v28, 16  ;;  %v2018_v20 = vrot.slane %v2016_v29, 5  ;;  %v4924_v29 = vld [vmem:[#allocation2 + $0x88] sm:$0x1] }
 0x26f   : > { %v8307_v45 = vpop.f32.mrf.mxu1  ;;  %v5012_v34 = vrot.slane %v5010_v40, 4  ;;  %v5015_v36 = vrot.slane %v5013_v8, 5 }
 0x270   : > { %9252 = vst [vmem:[#allocation62_spill] sm:$0xff] %v8307_v45  ;;  %v1985_v45 = vsel %vm7792_vm6, %v1980_v6, %v1984_v56  ;;  %v5036_v15 = vrot.slane %v5034_v63, 4  ;;  %v6927_v63 = vld [vmem:[#allocation2 + $0x128] sm:$0xff] }
 0x271   : > { %v2153_v8 = vunpack.c.l.b16 %v1985_v45  ;;  %v5016_v6 = vor.u32 %v5015_v36, %v5012_v34  ;;  %v2004_v36 = vrot.slane %v2003_v21, 4 }
 0x273   : > { %2298 = vmatmul.bf16.gmra.mxu3 %v2174_v0  ;;  %v2010_v0 = vshrl.u32 %v1715_v53, 16  ;;  %v2008_v53 = vrot.slane %v2006_v31, 5  ;;  %v4923_v31 = vld [vmem:[#allocation2 + $0x84] sm:$0xf]  ;;  %v5017_v45 = vrot.slane %v5016_v6, 4 }
 0x274   : > { %v5043_v5 = vshll.u32 %v4923_v31, 16 }
 0x275   : > { %v2012_v40 = vrot.slane %v2010_v0, 4  ;;  %v5022_v39 = vsel %vm7792_vm6, %v5017_v45, %v5021_v57 }
 0x276   : > { %v2259_v1 = vpop.f32.mrf.mxu3  ;;  %v5045_v21 = vrot.slane %v5043_v5, 5  ;;  %v6934_v5 = vld [vmem:[%s9183_s4 + $0x188] sm:$0xff] }
 0x277   : > { %v8314_v2 = vadd.f32 %v2259_v1, %v7707_v43  ;;  %v5025_v43 = vrot.slane %v5023_v25, 4  ;;  %v2154_v1 = vunpack.c.l.b16 %v1995_v11  ;;  %v8322_v58 = vpop.f32.mrf.mxu1  ;;  %v2013_v25 = vor.u32 %v2012_v40, %v2008_v53  ;;  %v1718_v40 = vld [vmem:[#allocation2 + $0x12c] sm:$0xf]  ;;  %4516 = vmatpush.bf16.msra.mxu3 %v6934_v5 }
 0x278   : > { %9254 = vst [vmem:[#allocation64_spill] sm:$0xff] %v8322_v58  ;;  %v2034_v45 = vshrl.u32 %v1718_v40, 16 }
 0x279   : > { %v5026_v9 = vor.u32 %v5025_v43, %v5021_v57  ;;  %5487 = vmatmul.bf16.gmra.mxu1 %v5395_v27  ;;  %v2175_v0 = vpack.c.b16 %v2154_v1, %v2153_v8  ;;  %v2014_v34 = vrot.slane %v2013_v25, 4  ;;  %v6963_v27 = vld [vmem:[%s9186_s7 + $0x30] sm:$0xff]  ;;  %v8330_v43 = vpop.f32.mrf.mxu0 }
 0x27a   : > { %9255 = vst [vmem:[#allocation65_spill] sm:$0xff] %v8330_v43  ;;  %5778 = vmatpush.bf16.msra.mxu2 %v6963_v27  ;;  %v5053_v43 = vshll.u32 %v4924_v29, 16 }
 0x27b   : > { %v5027_v11 = vrot.slane %v5026_v9, 4  ;;  %v2009_v9 = vsel %vm7792_vm6, %v2004_v36, %v2008_v53  ;;  %v2019_v57 = vsel %vm7792_vm6, %v2014_v34, %v2018_v20  ;;  %v2036_v34 = vrot.slane %v2034_v45, 4  ;;  %v4926_v45 = vld [vmem:[#allocation2 + $0x9c] sm:$0xf] }
 0x27c   : > { %4845 = vmatmul.bf16.gmra.mxu0 %v6926_v41  ;;  %v5031_v41 = vrot.slane %v5029_v61, 5  ;;  %v1717_v61 = vld [vmem:[#allocation2 + $0x128] sm:$0xf]  ;;  %v2156_v27 = vunpack.c.l.b16 %v2019_v57 }
 0x27d   : > { %v2021_v28 = vshrl.u32 %v1717_v61, 16 }
 0x27e   : > { %v2261_v56 = vpop.f32.mrf.mxu3  ;;  %v5032_v8 = vsel %vm7792_vm6, %v5027_v11, %v5031_v41 }
 0x27f   : > { %v8325_v49 = vadd.f32 %v2261_v56, %v7717_v13  ;;  %v5047_v13 = vshrl.u32 %v4923_v31, 16  ;;  %v5039_v56 = vrot.slane %v5037_v23, 5  ;;  %v8339_v6 = vpop.f32.mrf.mxu1  ;;  %v2024_v31 = vshll.u32 %v1717_v61, 16  ;;  %v1719_v61 = vld [vmem:[#allocation2 + $0x130] sm:$0x1] }
 0x280   : > { %9256 = vst [vmem:[#allocation66_spill] sm:$0xff] %v8339_v6  ;;  %v5367_v41 = vunpack.c.l.b16 %v5032_v8  ;;  %v2155_v23 = vunpack.c.l.b16 %v2009_v9  ;;  %v2023_v53 = vrot.slane %v2021_v28, 4  ;;  %v2040_v29 = vshll.u32 %v1719_v61, 16  ;;  %v4925_v28 = vld [vmem:[#allocation2 + $0x98] sm:$0xf] }
 0x281   : > { %v5049_v25 = vrot.slane %v5047_v13, 4  ;;  %v5040_v11 = vor.u32 %v5039_v56, %v5036_v15  ;;  %v2026_v36 = vrot.slane %v2024_v31, 5  ;;  %v5055_v56 = vrot.slane %v5053_v43, 5 }
 0x282   : > { %v2176_v9 = vpack.c.b16 %v2156_v27, %v2155_v23  ;;  %v5061_v43 = vshll.u32 %v4925_v28, 16 }
 0x283   : > { %2303 = vmatmul.bf16.gmra.mxu3 %v2175_v0  ;;  %v2030_v0 = vshll.u32 %v1718_v40, 16  ;;  %v8351_v40 = vpop.f32.mrf.mxu0  ;;  %v5041_v8 = vrot.slane %v5040_v11, 4  ;;  %v2027_v57 = vor.u32 %v2026_v36, %v2023_v53  ;;  %v2042_v11 = vrot.slane %v2040_v29, 5  ;;  %v1720_v36 = vld [vmem:[#allocation2 + $0x140] sm:$0xf] }
 0x284   : > { %9257 = vst [vmem:[#allocation67_spill] sm:$0xff] %v8351_v40  ;;  %v5071_v53 = vshrl.u32 %v4926_v45, 16 }
 0x285   : > { %v2032_v6 = vrot.slane %v2030_v0, 5  ;;  %v5046_v0 = vsel %vm7792_vm6, %v5041_v8, %v5045_v21  ;;  %v5063_v8 = vrot.slane %v5061_v43, 5 }
 0x286   : > { %v2264_v37 = vpop.f32.mrf.mxu3  ;;  %v5368_v5 = vunpack.c.l.b16 %v5046_v0  ;;  %v4927_v0 = vld [vmem:[#allocation2 + $0xa0] sm:$0x1] }
 0x287   : > { %v8337_v1 = vadd.f32 %v2264_v37, %v7761_v46  ;;  %v5366_v46 = vunpack.c.l.b16 %v5022_v39  ;;  %v5050_v37 = vor.u32 %v5049_v25, %v5045_v21  ;;  %v2037_v25 = vor.u32 %v2036_v34, %v2032_v6  ;;  %v8353_v31 = vpop.f32.mrf.mxu1  ;;  %v1721_v34 = vld [vmem:[#allocation2 + $0x144] sm:$0xf] }
 0x288   : > { %9258 = vst [vmem:[#allocation68_spill] sm:$0xff] %v8353_v31 }
 0x289   : > { %v5396_v20 = vpack.c.b16 %v5367_v41, %v5366_v46  ;;  %v5051_v15 = vrot.slane %v5050_v37, 4  ;;  %v5058_v46 = vshrl.u32 %v4925_v28, 16  ;;  %v2028_v41 = vrot.slane %v2027_v57, 4 }
 0x28a   : > { %v5067_v37 = vshll.u32 %v4926_v45, 16  ;;  %v2054_v57 = vshll.u32 %v1721_v34, 16  ;;  %v5073_v28 = vrot.slane %v5071_v53, 4  ;;  %v4928_v53 = vld [vmem:[#allocation2 + $0xb0] sm:$0xf] }
 0x28b   : > { %5492 = vmatmul.bf16.gmra.mxu1 %v5396_v20  ;;  %v2033_v21 = vsel %vm7792_vm6, %v2028_v41, %v2032_v6  ;;  %v5060_v61 = vrot.slane %v5058_v46, 4 }
 0x28c   : > { %4850 = vmatmul.bf16.gmra.mxu0 %v6927_v63  ;;  %v2038_v63 = vrot.slane %v2037_v25, 4  ;;  %v2058_v25 = vshrl.u32 %v1721_v34, 16  ;;  %v5069_v29 = vrot.slane %v5067_v37, 5  ;;  %v2157_v6 = vunpack.c.l.b16 %v2033_v21  ;;  %v1722_v37 = vld [vmem:[#allocation2 + $0x148] sm:$0x1] }
 0x28d   : > { %v2056_v43 = vrot.slane %v2054_v57, 5  ;;  %v5077_v34 = vshll.u32 %v4927_v0, 16  ;;  %v2064_v21 = vshll.u32 %v1722_v37, 16 }
 0x28e   : > { %v2266_v13 = vpop.f32.mrf.mxu3  ;;  %v2060_v40 = vrot.slane %v2058_v25, 4  ;;  %v6962_v25 = vld [vmem:[%s9186_s7 + $0x28] sm:$0xff] }
 0x28f   : > { %v8349_v39 = vadd.f32 %v2266_v13, %v7781_v17  ;;  %v5056_v17 = vsel %vm7792_vm6, %v5051_v15, %v5055_v56  ;;  %v2043_v13 = vsel %vm7792_vm6, %v2038_v63, %v2042_v11  ;;  %v8366_v15 = vpop.f32.mrf.mxu0  ;;  %v6928_v56 = vld [vmem:[#allocation2 + $0x140] sm:$0xff]  ;;  %v8368_v45 = vpop.f32.mrf.mxu1  ;;  %5779 = vmatpush.bf16.msra.mxu2 %v6962_v25 }
 0x290   : > { %v5369_v20 = vunpack.c.l.b16 %v5056_v17  ;;  %9259 = vst [vmem:[#allocation69_spill] sm:$0xff] %v8368_v45  ;;  %v2158_v41 = vunpack.c.l.b16 %v2043_v13 }
 0x292   : > { %v5397_v17 = vpack.c.b16 %v5369_v20, %v5368_v5  ;;  %v2177_v45 = vpack.c.b16 %v2158_v41, %v2157_v6  ;;  %v2061_v20 = vor.u32 %v2060_v40, %v2056_v43  ;;  %v2066_v41 = vrot.slane %v2064_v21, 5  ;;  %v6929_v21 = vld [vmem:[#allocation2 + $0x158] sm:$0xff] }
 0x293   : > { %2308 = vmatmul.bf16.gmra.mxu3 %v2176_v9  ;;  %v2045_v9 = vshrl.u32 %v1720_v36, 16 }
 0x294   : > { %v2062_v6 = vrot.slane %v2061_v20, 4 }
 0x295   : > { %v2047_v46 = vrot.slane %v2045_v9, 4  ;;  %v5085_v9 = vshll.u32 %v4928_v53, 16 }
 0x296   : > { %v2269_v23 = vpop.f32.mrf.mxu3 }
 0x297   : > { %v8360_v27 = vadd.f32 %v2269_v23, %v7788_v51  ;;  %v2048_v51 = vshll.u32 %v1720_v36, 16  ;;  %v5064_v23 = vor.u32 %v5063_v8, %v5060_v61  ;;  %v5074_v36 = vor.u32 %v5073_v28, %v5069_v29  ;;  %v1723_v28 = vld [vmem:[#allocation2 + $0x158] sm:$0xf]  ;;  %v8378_v0 = vpop.f32.mrf.mxu1 }
 0x298   : > { %v5079_v61 = vrot.slane %v5077_v34, 5  ;;  %v5082_v8 = vshrl.u32 %v4928_v53, 16  ;;  %9260 = vst [vmem:[#allocation70_spill] sm:$0xff] %v8378_v0  ;;  %v2069_v53 = vshrl.u32 %v1723_v28, 16  ;;  %v4930_v0 = vld [vmem:[#allocation2 + $0xb8] sm:$0x1] }
 0x299   : > { %v2050_v11 = vrot.slane %v2048_v51, 5  ;;  %v5065_v58 = vrot.slane %v5064_v23, 4  ;;  %v5075_v13 = vrot.slane %v5074_v36, 4  ;;  %v8373_v51 = vpop.f32.mrf.mxu0  ;;  %v1724_v23 = vld [vmem:[#allocation2 + $0x15c] sm:$0xf]  ;;  %v5087_v36 = vrot.slane %v5085_v9, 5 }
 0x29a   : > { %v2071_v9 = vrot.slane %v2069_v53, 4 }
 0x29b   : > { %5497 = vmatmul.bf16.gmra.mxu1 %v5397_v17  ;;  %v2051_v5 = vor.u32 %v2050_v11, %v2047_v46  ;;  %v5070_v40 = vsel %vm7792_vm6, %v5065_v58, %v5069_v29  ;;  %v5084_v11 = vrot.slane %v5082_v8, 4  ;;  %v2078_v58 = vshll.u32 %v1724_v23, 16 }
 0x29c   : > { %4855 = vmatmul.bf16.gmra.mxu0 %v6928_v56  ;;  %v4929_v56 = vld [vmem:[#allocation2 + $0xb4] sm:$0xf]  ;;  %v2082_v29 = vshrl.u32 %v1724_v23, 16  ;;  %v5101_v8 = vshll.u32 %v4930_v0, 16 }
 0x29d   : > { %v5095_v57 = vshrl.u32 %v4929_v56, 16 }
 0x29e   : > { %v2271_v63 = vpop.f32.mrf.mxu3 }
 0x29f   : > { %v8371_v31 = vadd.f32 %v2271_v63, %v7807_v35  ;;  %v5091_v35 = vshll.u32 %v4929_v56, 16  ;;  %v5080_v63 = vsel %vm7792_vm6, %v5075_v13, %v5079_v61  ;;  %v5097_v37 = vrot.slane %v5095_v57, 4  ;;  %v8399_v0 = vpop.f32.mrf.mxu1 }
 0x2a0   : > { %v2072_v56 = vshll.u32 %v1723_v28, 16  ;;  %v5371_v20 = vunpack.c.l.b16 %v5080_v63  ;;  %v5088_v13 = vor.u32 %v5087_v36, %v5084_v11  ;;  %v2080_v28 = vrot.slane %v2078_v58, 5  ;;  %v1725_v63 = vld [vmem:[#allocation2 + $0x160] sm:$0x1]  ;;  %9262 = vst [vmem:[#allocation72_spill] sm:$0xff] %v8399_v0 }
 0x2a1   : > { %v5093_v34 = vrot.slane %v5091_v35, 5  ;;  %v8394_v23 = vpop.f32.mrf.mxu0  ;;  %v5103_v11 = vrot.slane %v5101_v8, 5  ;;  %v4931_v58 = vld [vmem:[#allocation2 + $0xc8] sm:$0xf] }
 0x2a2   : > { %v2074_v35 = vrot.slane %v2072_v56, 5  ;;  %v2088_v56 = vshll.u32 %v1725_v63, 16 }
 0x2a3   : > { %2313 = vmatmul.bf16.gmra.mxu3 %v2177_v45  ;;  %v2052_v45 = vrot.slane %v2051_v5, 4  ;;  %v5370_v5 = vunpack.c.l.b16 %v5070_v40  ;;  %v5098_v61 = vor.u32 %v5097_v37, %v5093_v34  ;;  %v6933_v40 = vld [vmem:[%s9183_s4 + $0x180] sm:$0xff] }
 0x2a4   : > { %4517 = vmatpush.bf16.msra.mxu3 %v6933_v40  ;;  %v2075_v37 = vor.u32 %v2074_v35, %v2071_v9  ;;  %v1726_v35 = vld [vmem:[#allocation2 + $0x170] sm:$0xf] }
 0x2a5   : > { %v2057_v22 = vsel %vm7792_vm6, %v2052_v45, %v2056_v43  ;;  %v5398_v43 = vpack.c.b16 %v5371_v20, %v5370_v5  ;;  %v5106_v20 = vshrl.u32 %v4931_v58, 16 }
 0x2a6   : > { %v2274_v17 = vpop.f32.mrf.mxu3  ;;  %v2159_v57 = vunpack.c.l.b16 %v2057_v22  ;;  %v5099_v22 = vrot.slane %v5098_v61, 4  ;;  %v2090_v61 = vrot.slane %v2088_v56, 5  ;;  %v2093_v56 = vshrl.u32 %v1726_v35, 16 }
 0x2a7   : > { %v8385_v46 = vadd.f32 %v2274_v17, %v7814_v55  ;;  %v2067_v55 = vsel %vm7792_vm6, %v2062_v6, %v2066_v41  ;;  %v2084_v17 = vrot.slane %v2082_v29, 4  ;;  %v5089_v41 = vrot.slane %v5088_v13, 4  ;;  %v4932_v29 = vld [vmem:[#allocation2 + $0xcc] sm:$0xf] }
 0x2a8   : > { %v2160_v25 = vunpack.c.l.b16 %v2067_v55  ;;  %v5115_v55 = vshll.u32 %v4932_v29, 16  ;;  %v2076_v13 = vrot.slane %v2075_v37, 4  ;;  %v5119_v8 = vshrl.u32 %v4932_v29, 16 }
 0x2a9   : > { %v2085_v53 = vor.u32 %v2084_v17, %v2080_v28  ;;  %v5094_v5 = vsel %vm7792_vm6, %v5089_v41, %v5093_v34  ;;  %v8408_v17 = vpop.f32.mrf.mxu0 }
 0x2aa   : > { %v2178_v36 = vpack.c.b16 %v2160_v25, %v2159_v57  ;;  %v1727_v25 = vld [vmem:[#allocation2 + $0x174] sm:$0xf]  ;;  %v2081_v41 = vsel %vm7792_vm6, %v2076_v13, %v2080_v28  ;;  %v5121_v37 = vrot.slane %v5119_v8, 4 }
 0x2ab   : > { %5502 = vmatmul.bf16.gmra.mxu1 %v5398_v43  ;;  %v2086_v40 = vrot.slane %v2085_v53, 4  ;;  %v5372_v43 = vunpack.c.l.b16 %v5094_v5  ;;  %v8414_v53 = vpop.f32.mrf.mxu1  ;;  %v2102_v29 = vshll.u32 %v1727_v25, 16 }
 0x2ac   : > { %4860 = vmatmul.bf16.gmra.mxu0 %v6929_v21  ;;  %v5109_v21 = vshll.u32 %v4931_v58, 16  ;;  %9264 = vst [vmem:[#allocation74_spill] sm:$0xff] %v8414_v53  ;;  %v2096_v58 = vshll.u32 %v1726_v35, 16  ;;  %v1728_v53 = vld [vmem:[#allocation2 + $0x178] sm:$0x1] }
 0x2ae   : > { %v2276_v45 = vpop.f32.mrf.mxu3  ;;  %v5111_v63 = vrot.slane %v5109_v21, 5 }
 0x2af   : > { %v8397_v6 = vadd.f32 %v2276_v45, %v7830_v19  ;;  %v5104_v19 = vsel %vm7792_vm6, %v5099_v22, %v5103_v11  ;;  %v5108_v45 = vrot.slane %v5106_v20, 4  ;;  %v2091_v22 = vsel %vm7792_vm6, %v2086_v40, %v2090_v61  ;;  %v4933_v11 = vld [vmem:[#allocation2 + $0xd0] sm:$0x1] }
 0x2b0   : > { %v5373_v34 = vunpack.c.l.b16 %v5104_v19  ;;  %v2161_v20 = vunpack.c.l.b16 %v2081_v41  ;;  %v2162_v21 = vunpack.c.l.b16 %v2091_v22  ;;  %v5125_v28 = vshll.u32 %v4933_v11, 16  ;;  %v4934_v22 = vld [vmem:[#allocation2 + $0xe0] sm:$0xf]  ;;  %v4935_v11 = vld [vmem:[#allocation2 + $0xe4] sm:$0xf] }
 0x2b1   : > { %9261 = vst [vmem:[#allocation71_spill] sm:$0xff] %v8397_v6  ;;  %v5112_v19 = vor.u32 %v5111_v63, %v5108_v45  ;;  %v2098_v40 = vrot.slane %v2096_v58, 5  ;;  %v2104_v61 = vrot.slane %v2102_v29, 5  ;;  %v2112_v41 = vshll.u32 %v1728_v53, 16 }
 0x2b2   : > { %v5399_v5 = vpack.c.b16 %v5373_v34, %v5372_v43  ;;  %v2179_v6 = vpack.c.b16 %v2162_v21, %v2161_v20  ;;  %v5127_v43 = vrot.slane %v5125_v28, 5  ;;  %v8419_v34 = vpop.f32.mrf.mxu0  ;;  %v5133_v58 = vshll.u32 %v4934_v22, 16 }
 0x2b3   : > { %2318 = vmatmul.bf16.gmra.mxu3 %v2178_v36  ;;  %v5117_v36 = vrot.slane %v5115_v55, 5  ;;  %v5113_v35 = vrot.slane %v5112_v19, 4 }
 0x2b4   : > { %v5135_v28 = vrot.slane %v5133_v58, 5 }
 0x2b5   : > { %v5122_v0 = vor.u32 %v5121_v37, %v5117_v36  ;;  %v8421_v37 = vpop.f32.mrf.mxu1 }
 0x2b6   : > { %v2279_v57 = vpop.f32.mrf.mxu3  ;;  %9265 = vst [vmem:[#allocation75_spill] sm:$0xff] %v8421_v37 }
 0x2b7   : > { %v8406_v9 = vadd.f32 %v2279_v57, %v7838_v4  ;;  %v6930_v4 = vld [vmem:[#allocation2 + $0x170] sm:$0xff]  ;;  %v2106_v57 = vshrl.u32 %v1727_v25, 16  ;;  %v5123_v25 = vrot.slane %v5122_v0, 4  ;;  %v5139_v0 = vshll.u32 %v4935_v11, 16 }
 0x2b9   : > { %9263 = vst [vmem:[#allocation73_spill] sm:$0xff] %v8406_v9  ;;  %v2095_v9 = vrot.slane %v2093_v56, 4  ;;  %v2108_v55 = vrot.slane %v2106_v57, 4  ;;  %v5130_v56 = vshrl.u32 %v4934_v22, 16 }
 0x2bb   : > { %5507 = vmatmul.bf16.gmra.mxu1 %v5399_v5  ;;  %v2099_v45 = vor.u32 %v2098_v40, %v2095_v9  ;;  %v2109_v63 = vor.u32 %v2108_v55, %v2104_v61  ;;  %v6961_v9 = vld [vmem:[%s9186_s7 + $0x20] sm:$0xff]  ;;  %v2114_v5 = vrot.slane %v2112_v41, 5  ;;  %v5132_v21 = vrot.slane %v5130_v56, 4  ;;  %v6931_v40 = vld [vmem:[#allocation2 + $0x188] sm:$0xff]  ;;  %v8437_v41 = vpop.f32.mrf.mxu0 }
 0x2bc   : > { %4865 = vmatmul.bf16.gmra.mxu0 %v6930_v4  ;;  %v5128_v4 = vsel %vm7792_vm6, %v5123_v25, %v5127_v43  ;;  %5780 = vmatpush.bf16.msra.mxu2 %v6961_v9  ;;  %v5141_v25 = vrot.slane %v5139_v0, 5 }
 0x2bd   : > { %v2100_v53 = vrot.slane %v2099_v45, 4  ;;  %v2110_v57 = vrot.slane %v2109_v63, 4  ;;  %v5375_v20 = vunpack.c.l.b16 %v5128_v4  ;;  %v3983_v45 = vld [vmem:[#allocation2 + $0x3c] sm:$0xf]  ;;  %v4936_v63 = vld [vmem:[#allocation2 + $0xe8] sm:$0x1]  ;;  %v8439_v4 = vpop.f32.mrf.mxu1  ;;  %v5136_v9 = vor.u32 %v5135_v28, %v5132_v21 }
 0x2be   : > { %v2281_v13 = vpop.f32.mrf.mxu3  ;;  %9267 = vst [vmem:[#allocation77_spill] sm:$0xff] %v8439_v4  ;;  %v4937_v4 = vld [vmem:[#allocation2 + $0xf8] sm:$0xf] }
 0x2bf   : > { %v8417_v8 = vadd.f32 %v2281_v13, %v7859_v60  ;;  %v5118_v60 = vsel %vm7792_vm6, %v5113_v35, %v5117_v36  ;;  %v3982_v13 = vld [vmem:[#allocation2 + $0x38] sm:$0xf]  ;;  %v2105_v55 = vsel %vm7792_vm6, %v2100_v53, %v2104_v61  ;;  %v2115_v35 = vsel %vm7792_vm6, %v2110_v57, %v2114_v5  ;;  %v3981_v53 = vld [vmem:[#allocation2 + $0x34] sm:$0x8] }
 0x2c0   : > { %v5374_v36 = vunpack.c.l.b16 %v5118_v60  ;;  %v2164_v22 = vunpack.c.l.b16 %v2115_v35  ;;  %v4044_v60 = vshrl.u32 %v3983_v45, 16  ;;  %v4030_v5 = vshrl.u32 %v3981_v53, 16 }
 0x2c2   : > { %v5400_v56 = vpack.c.b16 %v5375_v20, %v5374_v36  ;;  %v4046_v37 = vrot.slane %v4044_v60, 7  ;;  %v4047_v36 = vshll.u32 %v3983_v45, 16  ;;  %v4938_v20 = vld [vmem:[#allocation2 + $0xfc] sm:$0xf]  ;;  %v6573_v21 = vrot.slane %v4030_v5, 11 }
 0x2c3   : > { %2323 = vmatmul.bf16.gmra.mxu3 %v2179_v6  ;;  %v5143_v6 = vshrl.u32 %v4935_v11, 16  ;;  %v4035_v11 = vshrl.u32 %v3982_v13, 16  ;;  %v5157_v60 = vshll.u32 %v4937_v4, 16 }
 0x2c5   : > { %v5145_v43 = vrot.slane %v5143_v6, 4  ;;  %v4037_v6 = vrot.slane %v4035_v11, 7  ;;  %v5154_v11 = vshrl.u32 %v4937_v4, 16  ;;  %v8451_v45 = vpop.f32.mrf.mxu1 }
 0x2c6   : > { %v2284_v29 = vpop.f32.mrf.mxu3  ;;  %9269 = vst [vmem:[#allocation79_spill] sm:$0xff] %v8451_v45 }
 0x2c7   : > { %v8431_v19 = vadd.f32 %v2284_v29, %v7874_v32  ;;  %v2163_v32 = vunpack.c.l.b16 %v2105_v55  ;;  %v5146_v61 = vor.u32 %v5145_v43, %v5141_v25  ;;  %v5149_v29 = vshll.u32 %v4936_v63, 16 }
 0x2c8   : > { %v4042_v43 = vrot.slane %v4037_v6, 4 }
 0x2c9   : > { %9266 = vst [vmem:[#allocation76_spill] sm:$0xff] %v8431_v19  ;;  %v2180_v57 = vpack.c.b16 %v2164_v22, %v2163_v32  ;;  %v5147_v55 = vrot.slane %v5146_v61, 4  ;;  %v5151_v35 = vrot.slane %v5149_v29, 5  ;;  %v4038_v19 = vshll.u32 %v3982_v13, 16 }
 0x2ca   : > { %v4049_v22 = vor.u32 %v4047_v36, %v4046_v37  ;;  %v5163_v13 = vshll.u32 %v4938_v20, 16  ;;  %v5156_v37 = vrot.slane %v5154_v11, 4  ;;  %v3984_v36 = vld [vmem:[#allocation2 + $0x4c] sm:$0x8] }
 0x2cb   : > { %5512 = vmatmul.bf16.gmra.mxu1 %v5400_v56  ;;  %v4040_v28 = vor.u32 %v4038_v19, %v4037_v6  ;;  %v5152_v63 = vsel %vm7792_vm6, %v5147_v55, %v5151_v35  ;;  %v3986_v19 = vld [vmem:[#allocation2 + $0x54] sm:$0xf]  ;;  %v4939_v6 = vld [vmem:[#allocation2 + $0x100] sm:$0x1] }
 0x2cc   : > { %4870 = vmatmul.bf16.gmra.mxu0 %v6931_v40  ;;  %v5137_v40 = vrot.slane %v5136_v9, 4  ;;  %v3985_v9 = vld [vmem:[#allocation2 + $0x50] sm:$0xf]  ;;  %v5377_v29 = vunpack.c.l.b16 %v5152_v63  ;;  %v4050_v53 = vsel %vm7445_vm3, %v4042_v43, %v4049_v22  ;;  %v5165_v5 = vrot.slane %v5163_v13, 5 }
 0x2cd   : > { %v4057_v4 = vshrl.u32 %v3985_v9, 16  ;;  %v4399_v35 = vunpack.c.l.b16 %v4050_v53  ;;  %v4052_v43 = vshrl.u32 %v3984_v36, 16  ;;  %v8460_v13 = vpop.f32.mrf.mxu1  ;;  %v4069_v45 = vshll.u32 %v3986_v19, 16  ;;  %v4941_v53 = vld [vmem:[#allocation2 + $0x114] sm:$0xf] }
 0x2ce   : > { %v2286_v58 = vpop.f32.mrf.mxu3  ;;  %9270 = vst [vmem:[#allocation80_spill] sm:$0xff] %v8460_v13  ;;  %v5187_v36 = vshll.u32 %v4941_v53, 16 }
 0x2cf   : > { %v8442_v0 = vadd.f32 %v2286_v58, %v7895_v59  ;;  %v5142_v59 = vsel %vm7792_vm6, %v5137_v40, %v5141_v25  ;;  %v5167_v58 = vshrl.u32 %v4938_v20, 16  ;;  %v4041_v25 = vsel %vm7445_vm3, %v6573_v21, %v4040_v28 }
 0x2d0   : > { %v5376_v61 = vunpack.c.l.b16 %v5142_v59  ;;  %v4066_v40 = vshrl.u32 %v3986_v19, 16  ;;  %v4398_v55 = vunpack.c.l.b16 %v4041_v25  ;;  %v5173_v28 = vshll.u32 %v4939_v6, 16  ;;  %v4940_v25 = vld [vmem:[#allocation2 + $0x110] sm:$0xf] }
 0x2d1   : > { %v4059_v22 = vrot.slane %v4057_v4, 7  ;;  %v5181_v6 = vshll.u32 %v4940_v25, 16  ;;  %v5191_v4 = vshrl.u32 %v4941_v53, 16 }
 0x2d2   : > { %v5401_v20 = vpack.c.b16 %v5377_v29, %v5376_v61  ;;  %v4068_v11 = vrot.slane %v4066_v40, 7  ;;  %v6960_v40 = vld [vmem:[%s9186_s7 + $0x18] sm:$0xff] }
 0x2d3   : > { %2328 = vmatmul.bf16.gmra.mxu3 %v2180_v57  ;;  %v5159_v57 = vrot.slane %v5157_v60, 5  ;;  %v4430_v60 = vpack.c.b16 %v4399_v35, %v4398_v55  ;;  %5781 = vmatpush.bf16.msra.mxu2 %v6960_v40 }
 0x2d5   : > { %v5160_v63 = vor.u32 %v5159_v57, %v5156_v37  ;;  %v4064_v37 = vrot.slane %v4059_v22, 4  ;;  %v4071_v57 = vor.u32 %v4069_v45, %v4068_v11 }
 0x2d6   : > { %v2289_v32 = vpop.f32.mrf.mxu3 }
 0x2d7   : > { %v8449_v56 = vadd.f32 %v2289_v32, %v7912_v14  ;;  %v5169_v14 = vrot.slane %v5167_v58, 4  ;;  %v4060_v58 = vshll.u32 %v3985_v9, 16  ;;  %v5161_v61 = vrot.slane %v5160_v63, 4 }
 0x2d9   : > { %9268 = vst [vmem:[#allocation78_spill] sm:$0xff] %v8449_v56  ;;  %v5170_v21 = vor.u32 %v5169_v14, %v5165_v5  ;;  %v5175_v56 = vrot.slane %v5173_v28, 5  ;;  %v5178_v14 = vshrl.u32 %v4940_v25, 16  ;;  %v5166_v19 = vsel %vm7792_vm6, %v5161_v61, %v5165_v5 }
 0x2da   : > { %v5189_v28 = vrot.slane %v5187_v36, 5  ;;  %v5378_v11 = vunpack.c.l.b16 %v5166_v19 }
 0x2db   : > { %5517 = vmatmul.bf16.gmra.mxu1 %v5401_v20  ;;  %v5171_v29 = vrot.slane %v5170_v21, 4  ;;  %v4072_v20 = vsel %vm7445_vm3, %v4064_v37, %v4071_v57  ;;  %v5180_v63 = vrot.slane %v5178_v14, 4  ;;  %v5183_v21 = vrot.slane %v5181_v6, 5 }
 0x2dc   : > { %v4401_v25 = vunpack.c.l.b16 %v4072_v20 }
 0x2dd   : > { %v5176_v55 = vsel %vm7792_vm6, %v5171_v29, %v5175_v56  ;;  %v8476_v56 = vpop.f32.mrf.mxu1  ;;  %v5184_v61 = vor.u32 %v5183_v21, %v5180_v63  ;;  %v4943_v21 = vld [vmem:[#allocation2 + $0x128] sm:$0xf] }
 0x2de   : > { %v2291_v32 = vpop.f32.mrf.mxu3  ;;  %v5379_v5 = vunpack.c.l.b16 %v5176_v55  ;;  %9271 = vst [vmem:[#allocation81_spill] sm:$0xff] %v8476_v56 }
 0x2df   : > { %v8458_v59 = vadd.f32 %v2291_v32, %v7935_v33  ;;  %v6574_v33 = vrot.slane %v4052_v43, 11  ;;  %v4062_v32 = vor.u32 %v4060_v58, %v4059_v22  ;;  %v5193_v43 = vrot.slane %v5191_v4, 4  ;;  %v3988_v22 = vld [vmem:[#allocation2 + $0x68] sm:$0xf]  ;;  %v3989_v58 = vld [vmem:[#allocation2 + $0x6c] sm:$0xf] }
 0x2e0   : > { %v4079_v53 = vshrl.u32 %v3988_v22, 16  ;;  %v4088_v40 = vshrl.u32 %v3989_v58, 16  ;;  %v5402_v37 = vpack.c.b16 %v5379_v5, %v5378_v11  ;;  %v4082_v20 = vshll.u32 %v3988_v22, 16 }
 0x2e1   : > { %v4063_v45 = vsel %vm7445_vm3, %v6574_v33, %v4062_v32  ;;  %v5194_v29 = vor.u32 %v5193_v43, %v5189_v28  ;;  %v3987_v32 = vld [vmem:[#allocation2 + $0x64] sm:$0x8]  ;;  %v4091_v63 = vshll.u32 %v3989_v58, 16  ;;  %v4944_v43 = vld [vmem:[#allocation2 + $0x12c] sm:$0xf] }
 0x2e2   : > { %v4074_v36 = vshrl.u32 %v3987_v32, 16  ;;  %v4081_v4 = vrot.slane %v4079_v53, 7  ;;  %v5211_v22 = vshll.u32 %v4944_v43, 16 }
 0x2e3   : > { %4518 = vmatmul.bf16.vlgmr.msra.gmra.mxu3 %v4430_v60  ;;  %v4942_v60 = vld [vmem:[#allocation2 + $0x118] sm:$0x1]  ;;  %v5195_v19 = vrot.slane %v5194_v29, 4  ;;  %v5205_v29 = vshll.u32 %v4943_v21, 16 }
 0x2e4   : > { %v5197_v33 = vshll.u32 %v4942_v60, 16  ;;  %v6575_v60 = vrot.slane %v4074_v36, 11  ;;  %v4084_v56 = vor.u32 %v4082_v20, %v4081_v4  ;;  %v4086_v5 = vrot.slane %v4081_v4, 4 }
 0x2e5   : > { %v5207_v36 = vrot.slane %v5205_v29, 5  ;;  %v5213_v4 = vrot.slane %v5211_v22, 5 }
 0x2e6   : > { %v2294_v9 = vpop.f32.mrf.mxu3  ;;  %v5199_v55 = vrot.slane %v5197_v33, 5  ;;  %v5215_v33 = vshrl.u32 %v4944_v43, 16 }
 0x2e7   : > { %v8470_v35 = vadd.f32 %v2294_v9, %v7951_v44  ;;  %v4400_v44 = vunpack.c.l.b16 %v4063_v45  ;;  %v5185_v9 = vrot.slane %v5184_v61, 4  ;;  %v4090_v45 = vrot.slane %v4088_v40, 7 }
 0x2e8   : > { %v5202_v61 = vshrl.u32 %v4943_v21, 16 }
 0x2e9   : > { %v4431_v6 = vpack.c.b16 %v4401_v25, %v4400_v44  ;;  %v5190_v11 = vsel %vm7792_vm6, %v5185_v9, %v5189_v28  ;;  %v4093_v44 = vor.u32 %v4091_v63, %v4090_v45  ;;  %v8485_v25 = vpop.f32.mrf.mxu1  ;;  %v4085_v28 = vsel %vm7445_vm3, %v6575_v60, %v4084_v56  ;;  %v3990_v56 = vld [vmem:[#allocation2 + $0x7c] sm:$0x8] }
 0x2ea   : > { %9272 = vst [vmem:[#allocation82_spill] sm:$0xff] %v8485_v25  ;;  %v5380_v32 = vunpack.c.l.b16 %v5190_v11  ;;  %v5217_v9 = vrot.slane %v5215_v33, 4  ;;  %v4402_v45 = vunpack.c.l.b16 %v4085_v28 }
 0x2eb   : > { %5522 = vmatmul.bf16.gmra.mxu1 %v5402_v37  ;;  %v4094_v37 = vsel %vm7445_vm3, %v4086_v5, %v4093_v44 }
 0x2ec   : > { %v4403_v20 = vunpack.c.l.b16 %v4094_v37 }
 0x2ee   : > { %v2296_v57 = vpop.f32.mrf.mxu3  ;;  %v4432_v44 = vpack.c.b16 %v4403_v20, %v4402_v45 }
 0x2ef   : > { %v8479_v14 = vadd.f32 %v2296_v57, %v7978_v42  ;;  %v5200_v42 = vsel %vm7792_vm6, %v5195_v19, %v5199_v55  ;;  %v3991_v57 = vld [vmem:[#allocation2 + $0x80] sm:$0xf]  ;;  %v3992_v19 = vld [vmem:[#allocation2 + $0x84] sm:$0xf]  ;;  %v4945_v55 = vld [vmem:[#allocation2 + $0x130] sm:$0x1] }
 0x2f0   : > { %v5381_v40 = vunpack.c.l.b16 %v5200_v42  ;;  %v4101_v63 = vshrl.u32 %v3991_v57, 16  ;;  %v5218_v42 = vor.u32 %v5217_v9, %v5213_v4 }
 0x2f1   : > { %v8497_v5 = vpop.f32.mrf.mxu1 }
 0x2f2   : > { %v5403_v21 = vpack.c.b16 %v5381_v40, %v5380_v32  ;;  %9274 = vst [vmem:[#allocation84_spill] sm:$0xff] %v8497_v5  ;;  %v4103_v29 = vrot.slane %v4101_v63, 7  ;;  %v5219_v33 = vrot.slane %v5218_v42, 4  ;;  %v4104_v32 = vshll.u32 %v3991_v57, 16  ;;  %v4946_v40 = vld [vmem:[#allocation2 + $0x140] sm:$0xf] }
 0x2f3   : > { %4523 = vmatmul.bf16.gmra.mxu3 %v4431_v6  ;;  %v5204_v6 = vrot.slane %v5202_v61, 4  ;;  %v4096_v61 = vshrl.u32 %v3990_v56, 16  ;;  %v3994_v42 = vld [vmem:[#allocation2 + $0x98] sm:$0xf] }
 0x2f4   : > { %v4108_v25 = vrot.slane %v4103_v29, 4 }
 0x2f5   : > { %v5208_v11 = vor.u32 %v5207_v36, %v5204_v6  ;;  %v4113_v6 = vshll.u32 %v3992_v19, 16  ;;  %v4947_v36 = vld [vmem:[#allocation2 + $0x144] sm:$0xf]  ;;  %v6576_v9 = vrot.slane %v4096_v61, 11 }
 0x2f6   : > { %v2299_v53 = vpop.f32.mrf.mxu3 }
 0x2f7   : > { %v8488_v58 = vadd.f32 %v2299_v53, %v8006_v62  ;;  %v4110_v62 = vshrl.u32 %v3992_v19, 16  ;;  %v5221_v53 = vshll.u32 %v4945_v55, 16  ;;  %v5209_v22 = vrot.slane %v5208_v11, 4 }
 0x2f8   : > { %v4106_v55 = vor.u32 %v4104_v32, %v4103_v29  ;;  %v5229_v19 = vshll.u32 %v4946_v40, 16  ;;  %v5239_v11 = vshrl.u32 %v4947_v36, 16  ;;  %v4123_v32 = vshrl.u32 %v3994_v42, 16 }
 0x2f9   : > { %v5223_v28 = vrot.slane %v5221_v53, 5  ;;  %v4112_v37 = vrot.slane %v4110_v62, 7  ;;  %v5214_v45 = vsel %vm7792_vm6, %v5209_v22, %v5213_v4  ;;  %v3995_v53 = vld [vmem:[#allocation2 + $0x9c] sm:$0xf]  ;;  %v8509_v56 = vpop.f32.mrf.mxu1 }
 0x2fa   : > { %9276 = vst [vmem:[#allocation86_spill] sm:$0xff] %v8509_v56  ;;  %v4107_v4 = vsel %vm7445_vm3, %v6576_v9, %v4106_v55  ;;  %v4135_v5 = vshll.u32 %v3995_v53, 16 }
 0x2fb   : > { %5527 = vmatmul.bf16.gmra.mxu1 %v5403_v21  ;;  %v5224_v20 = vsel %vm7792_vm6, %v5219_v33, %v5223_v28  ;;  %v4115_v62 = vor.u32 %v4113_v6, %v4112_v37  ;;  %v5226_v21 = vshrl.u32 %v4946_v40, 16  ;;  %v5231_v33 = vrot.slane %v5229_v19, 5  ;;  %v4948_v37 = vld [vmem:[#allocation2 + $0x148] sm:$0x1] }
 0x2fc   : > { %v5383_v61 = vunpack.c.l.b16 %v5224_v20  ;;  %v5241_v28 = vrot.slane %v5239_v11, 4  ;;  %v4132_v40 = vshrl.u32 %v3995_v53, 16  ;;  %v4404_v6 = vunpack.c.l.b16 %v4107_v4  ;;  %v4949_v4 = vld [vmem:[#allocation2 + $0x158] sm:$0xf] }
 0x2fd   : > { %v4116_v29 = vsel %vm7445_vm3, %v4108_v25, %v4115_v62  ;;  %v5228_v22 = vrot.slane %v5226_v21, 4  ;;  %v5245_v55 = vshll.u32 %v4948_v37, 16  ;;  %v4125_v62 = vrot.slane %v4123_v32, 7 }
 0x2fe   : > { %v2301_v43 = vpop.f32.mrf.mxu3  ;;  %v4134_v21 = vrot.slane %v4132_v40, 7  ;;  %v4126_v11 = vshll.u32 %v3994_v42, 16  ;;  %v5250_v37 = vshrl.u32 %v4949_v4, 16  ;;  %v5253_v32 = vshll.u32 %v4949_v4, 16 }
 0x2ff   : > { %v8495_v60 = vadd.f32 %v2301_v43, %v8032_v16  ;;  %v6959_v16 = vld [vmem:[%s9186_s7 + $0x10] sm:$0xff]  ;;  %v5235_v43 = vshll.u32 %v4947_v36, 16  ;;  %v4405_v36 = vunpack.c.l.b16 %v4116_v29  ;;  %v5232_v20 = vor.u32 %v5231_v33, %v5228_v22  ;;  %v4950_v29 = vld [vmem:[#allocation2 + $0x15c] sm:$0xf] }
 0x300   : > { %5782 = vmatpush.bf16.msra.mxu2 %v6959_v16  ;;  %v3993_v16 = vld [vmem:[#allocation2 + $0x94] sm:$0x8]  ;;  %v5247_v13 = vrot.slane %v5245_v55, 5  ;;  %v4128_v22 = vor.u32 %v4126_v11, %v4125_v62  ;;  %v4130_v33 = vrot.slane %v4125_v62, 4  ;;  %v5259_v40 = vshll.u32 %v4950_v29, 16 }
 0x301   : > { %9273 = vst [vmem:[#allocation83_spill] sm:$0xff] %v8495_v60  ;;  %v4118_v25 = vshrl.u32 %v3993_v16, 16  ;;  %v4433_v19 = vpack.c.b16 %v4405_v36, %v4404_v6  ;;  %v5263_v6 = vshrl.u32 %v4950_v29, 16  ;;  %v3997_v62 = vld [vmem:[#allocation2 + $0xb0] sm:$0xf] }
 0x302   : > { %v5261_v55 = vrot.slane %v5259_v40, 5  ;;  %v3998_v11 = vld [vmem:[#allocation2 + $0xb4] sm:$0xf]  ;;  %v4145_v29 = vshrl.u32 %v3997_v62, 16 }
 0x303   : > { %4528 = vmatmul.bf16.gmra.mxu3 %v4432_v44  ;;  %v5382_v44 = vunpack.c.l.b16 %v5214_v45 }
 0x306   : > { %v2304_v63 = vpop.f32.mrf.mxu3 }
 0x307   : > { %v8507_v57 = vadd.f32 %v2304_v63, %v8047_v50  ;;  %v5237_v50 = vrot.slane %v5235_v43, 5  ;;  %v5404_v63 = vpack.c.b16 %v5383_v61, %v5382_v44  ;;  %v8518_v43 = vpop.f32.mrf.mxu2  ;;  %v5233_v44 = vrot.slane %v5232_v20, 4 }
 0x308   : > { %v5252_v20 = vrot.slane %v5250_v37, 4 }
 0x309   : > { %9275 = vst [vmem:[#allocation85_spill] sm:$0xff] %v8507_v57  ;;  %v5242_v9 = vor.u32 %v5241_v28, %v5237_v50  ;;  %v4137_v28 = vor.u32 %v4135_v5, %v4134_v21  ;;  %v5238_v42 = vsel %vm7792_vm6, %v5233_v44, %v5237_v50  ;;  %v4951_v50 = vld [vmem:[#allocation2 + $0x160] sm:$0x1] }
 0x30a   : > { %v5384_v21 = vunpack.c.l.b16 %v5238_v42  ;;  %v4147_v42 = vrot.slane %v4145_v29, 7 }
 0x30b   : > { %5532 = vmatmul.bf16.gmra.mxu1 %v5404_v63  ;;  %v5243_v61 = vrot.slane %v5242_v9, 4  ;;  %v4138_v5 = vsel %vm7445_vm3, %v4130_v33, %v4137_v28  ;;  %v5255_v9 = vrot.slane %v5253_v32, 5 }
 0x30d   : > { %v5248_v53 = vsel %vm7792_vm6, %v5243_v61, %v5247_v13  ;;  %v5256_v44 = vor.u32 %v5255_v9, %v5252_v20  ;;  %v4148_v20 = vshll.u32 %v3997_v62, 16  ;;  %v4157_v9 = vshll.u32 %v3998_v11, 16 }
 0x30e   : > { %v2306_v56 = vpop.f32.mrf.mxu3 }
 0x30f   : > { %v8516_v45 = vadd.f32 %v2306_v56, %v8056_v10  ;;  %v8520_v10 = vpop.f32.mrf.mxu1  ;;  %v6577_v56 = vrot.slane %v4118_v25, 11  ;;  %v5265_v25 = vrot.slane %v5263_v6, 4  ;;  %v8533_v4 = vpop.f32.mrf.mxu2 }
 0x310   : > { %9278 = vst [vmem:[#allocation88_spill] sm:$0xff] %v8520_v10 }
 0x311   : > { %9277 = vst [vmem:[#allocation87_spill] sm:$0xff] %v8516_v45  ;;  %v4129_v63 = vsel %vm7445_vm3, %v6577_v56, %v4128_v22  ;;  %v5266_v61 = vor.u32 %v5265_v25, %v5261_v55  ;;  %v5269_v56 = vshll.u32 %v4951_v50, 16  ;;  %v3996_v22 = vld [vmem:[#allocation2 + $0xac] sm:$0x8]  ;;  %v4952_v25 = vld [vmem:[#allocation2 + $0x170] sm:$0xf]  ;;  %v4150_v45 = vor.u32 %v4148_v20, %v4147_v42 }
 0x312   : > { %v4406_v13 = vunpack.c.l.b16 %v4129_v63  ;;  %v4140_v6 = vshrl.u32 %v3996_v22, 16  ;;  %v4953_v50 = vld [vmem:[#allocation2 + $0x174] sm:$0xf]  ;;  %v4954_v20 = vld [vmem:[#allocation2 + $0x178] sm:$0x1] }
 0x313   : > { %4533 = vmatmul.bf16.gmra.mxu3 %v4433_v19  ;;  %v5385_v19 = vunpack.c.l.b16 %v5248_v53  ;;  %v5257_v53 = vrot.slane %v5256_v44, 4  ;;  %v5267_v63 = vrot.slane %v5266_v61, 4  ;;  %v5277_v44 = vshll.u32 %v4952_v25, 16 }
 0x314   : > { %v5283_v61 = vshll.u32 %v4953_v50, 16 }
 0x315   : > { %v5405_v28 = vpack.c.b16 %v5385_v19, %v5384_v21  ;;  %v5262_v21 = vsel %vm7792_vm6, %v5257_v53, %v5261_v55  ;;  %v4152_v19 = vrot.slane %v4147_v42, 4  ;;  %v5279_v42 = vrot.slane %v5277_v44, 5 }
 0x316   : > { %v2309_v36 = vpop.f32.mrf.mxu3  ;;  %v5285_v53 = vrot.slane %v5283_v61, 5 }
 0x317   : > { %v8527_v16 = vadd.f32 %v2309_v36, %v8068_v7  ;;  %v4407_v7 = vunpack.c.l.b16 %v4138_v5  ;;  %v4154_v36 = vshrl.u32 %v3998_v11, 16  ;;  %v8535_v33 = vpop.f32.mrf.mxu1  ;;  %v5271_v5 = vrot.slane %v5269_v56, 5  ;;  %v8547_v29 = vpop.f32.mrf.mxu2 }
 0x318   : > { %v5274_v11 = vshrl.u32 %v4952_v25, 16  ;;  %v5287_v56 = vshrl.u32 %v4953_v50, 16 }
 0x319   : > { %9279 = vst [vmem:[#allocation89_spill] sm:$0xff] %v8527_v16  ;;  %v4434_v40 = vpack.c.b16 %v4407_v7, %v4406_v13  ;;  %v4156_v10 = vrot.slane %v4154_v36, 7  ;;  %v6578_v16 = vrot.slane %v4140_v6, 11  ;;  %v6958_v7 = vld [vmem:[%s9186_s7 + $0x8] sm:$0xff]  ;;  %v5386_v36 = vunpack.c.l.b16 %v5262_v21 }
 0x31a   : > { %5783 = vmatpush.bf16.msra.mxu2 %v6958_v7  ;;  %v5276_v6 = vrot.slane %v5274_v11, 4 }
 0x31b   : > { %5537 = vmatmul.bf16.gmra.mxu1 %v5405_v28  ;;  %v4159_v13 = vor.u32 %v4157_v9, %v4156_v10  ;;  %v4151_v10 = vsel %vm7445_vm3, %v6578_v16, %v4150_v45  ;;  %v3999_v45 = vld [vmem:[#allocation2 + $0xc4] sm:$0x8]  ;;  %v9282_v16 = vld [vmem:[#allocation41_spill] sm:$0xff] }
 0x31c   : > { %v4162_v11 = vshrl.u32 %v3999_v45, 16 }
 0x31e   : > { %v2311_v37 = vpop.f32.mrf.mxu3 }
 0x31f   : > { %v8538_v32 = vadd.f32 %v2311_v37, %v8084_v18  ;;  %v5272_v18 = vsel %vm7792_vm6, %v5267_v63, %v5271_v5  ;;  %v8552_v55 = vpop.f32.mrf.mxu1  ;;  %v4160_v37 = vsel %vm7445_vm3, %v4152_v19, %v4159_v13  ;;  %v5289_v63 = vrot.slane %v5287_v56, 4  ;;  %v4001_v5 = vld [vmem:[#allocation2 + $0xcc] sm:$0xf]  ;;  %v8561_v19 = vpop.f32.mrf.mxu2 }
 0x320   : > { %v5387_v28 = vunpack.c.l.b16 %v5272_v18  ;;  %v4409_v9 = vunpack.c.l.b16 %v4160_v37  ;;  %v4176_v50 = vshrl.u32 %v4001_v5, 16  ;;  %v5280_v18 = vor.u32 %v5279_v42, %v5276_v6  ;;  %v4955_v6 = vld [vmem:[#allocation2 + $0x188] sm:$0xf] }
 0x321   : > { %9280 = vst [vmem:[#allocation90_spill] sm:$0xff] %v8538_v32  ;;  %v4179_v42 = vshll.u32 %v4001_v5, 16 }
 0x322   : > { %v5406_v7 = vpack.c.b16 %v5387_v28, %v5386_v36  ;;  %v5281_v56 = vrot.slane %v5280_v18, 4  ;;  %v4178_v36 = vrot.slane %v4176_v50, 7  ;;  %v5298_v18 = vshrl.u32 %v4955_v6, 16 }
 0x323   : > { %4538 = vmatmul.bf16.gmra.mxu3 %v4434_v40  ;;  %v4000_v40 = vld [vmem:[#allocation2 + $0xc8] sm:$0xf]  ;;  %v5301_v50 = vshll.u32 %v4955_v6, 16  ;;  %v4957_v6 = vld [vmem:[#allocation2 + $0x190] sm:$0x1] }
 0x324   : > { %v4167_v25 = vshrl.u32 %v4000_v40, 16  ;;  %v4170_v28 = vshll.u32 %v4000_v40, 16 }
 0x326   : > { %v2314_v62 = vpop.f32.mrf.mxu3  ;;  %v4169_v44 = vrot.slane %v4167_v25, 7  ;;  %v4181_v25 = vor.u32 %v4179_v42, %v4178_v36 }
 0x327   : > { %v8550_v22 = vadd.f32 %v2314_v62, %v8156_v47  ;;  %v4408_v47 = vunpack.c.l.b16 %v4151_v10  ;;  %v5290_v62 = vor.u32 %v5289_v63, %v5285_v53  ;;  %v8563_v61 = vpop.f32.mrf.mxu1  ;;  %v4956_v63 = vld [vmem:[#allocation2 + $0x18c] sm:$0xf]  ;;  %v8572_v5 = vpop.f32.mrf.mxu2 }
 0x328   : > { %v5307_v40 = vshll.u32 %v4956_v63, 16 }
 0x329   : > { %9281 = vst [vmem:[#allocation91_spill] sm:$0xff] %v8550_v22  ;;  %v5293_v22 = vshll.u32 %v4954_v20, 16  ;;  %v4435_v13 = vpack.c.b16 %v4409_v9, %v4408_v47  ;;  %v5291_v10 = vrot.slane %v5290_v62, 4  ;;  %v6579_v20 = vrot.slane %v4162_v11, 11 }
 0x32a   : > { %v5311_v62 = vshrl.u32 %v4956_v63, 16 }
 0x32b   : > { %5542 = vmatmul.bf16.gmra.mxu1 %v5406_v7  ;;  %v5295_v37 = vrot.slane %v5293_v22, 5  ;;  %v5286_v7 = vsel %vm7792_vm6, %v5281_v56, %v5285_v53  ;;  %v5300_v56 = vrot.slane %v5298_v18, 4  ;;  %v4002_v18 = vld [vmem:[#allocation2 + $0xdc] sm:$0x8] }
 0x32c   : > { %v5388_v45 = vunpack.c.l.b16 %v5286_v7  ;;  %v5313_v36 = vrot.slane %v5311_v62, 4 }
 0x32d   : > { %v5296_v47 = vsel %vm7792_vm6, %v5291_v10, %v5295_v37  ;;  %v5303_v10 = vrot.slane %v5301_v50, 5  ;;  %v5309_v37 = vrot.slane %v5307_v40, 5  ;;  %v4184_v40 = vshrl.u32 %v4002_v18, 16 }
 0x32e   : > { %v2316_v21 = vpop.f32.mrf.mxu3 }
 0x32f   : > { %v8559_v32 = vadd.f32 %v2316_v21, %v9282_v16  ;;  %v4172_v21 = vor.u32 %v4170_v28, %v4169_v44  ;;  %v4174_v16 = vrot.slane %v4169_v44, 4  ;;  %v4003_v44 = vld [vmem:[#allocation2 + $0xe0] sm:$0xf]  ;;  %v8578_v28 = vpop.f32.mrf.mxu1 }
 0x331   : > { %9283 = vst [vmem:[#allocation41_spill] sm:$0xff] %v8559_v32  ;;  %v4173_v11 = vsel %vm7445_vm3, %v6579_v20, %v4172_v21  ;;  %v4182_v53 = vsel %vm7445_vm3, %v4174_v16, %v4181_v25  ;;  %v5304_v21 = vor.u32 %v5303_v10, %v5300_v56  ;;  %v5314_v16 = vor.u32 %v5313_v36, %v5309_v37 }
 0x332   : > { %v4410_v42 = vunpack.c.l.b16 %v4173_v11  ;;  %v4411_v63 = vunpack.c.l.b16 %v4182_v53  ;;  %v5317_v25 = vshll.u32 %v4957_v6, 16  ;;  %v6580_v36 = vrot.slane %v4184_v40, 11  ;;  %v4005_v40 = vld [vmem:[#allocation2 + $0xf4] sm:$0x8] }
 0x333   : > { %4543 = vmatmul.bf16.gmra.mxu3 %v4435_v13  ;;  %v5389_v13 = vunpack.c.l.b16 %v5296_v47  ;;  %v4189_v47 = vshrl.u32 %v4003_v44, 16  ;;  %v5305_v57 = vrot.slane %v5304_v21, 4  ;;  %v5315_v11 = vrot.slane %v5314_v16, 4  ;;  %v4006_v16 = vld [vmem:[#allocation2 + $0xf8] sm:$0xf] }
 0x334   : > { %v4436_v50 = vpack.c.b16 %v4411_v63, %v4410_v42  ;;  %v5319_v53 = vrot.slane %v5317_v25, 5 }
 0x335   : > { %v4191_v62 = vrot.slane %v4189_v47, 7 }
 0x336   : > { %v2319_v9 = vpop.f32.mrf.mxu3 }
 0x337   : > { %v8570_v22 = vadd.f32 %v2319_v9, %v8183_v3  ;;  %v4004_v3 = vld [vmem:[#allocation2 + $0xe4] sm:$0xf]  ;;  %v5407_v9 = vpack.c.b16 %v5389_v13, %v5388_v45  ;;  %v8583_v45 = vpop.f32.mrf.mxu2  ;;  %v4192_v13 = vshll.u32 %v4003_v44, 16  ;;  %v8588_v56 = vpop.f32.mrf.mxu1  ;;  %v4196_v42 = vrot.slane %v4191_v62, 4 }
 0x338   : > { %v4201_v60 = vshll.u32 %v4004_v3, 16 }
 0x339   : > { %9284 = vst [vmem:[#allocation92_spill] sm:$0xff] %v8570_v22  ;;  %v4198_v22 = vshrl.u32 %v4004_v3, 16  ;;  %v4194_v6 = vor.u32 %v4192_v13, %v4191_v62  ;;  %v9287_v62 = vld [vmem:[#allocation51_spill] sm:$0xff] }
 0x33b   : > { %5547 = vmatmul.bf16.gmra.mxu1 %v5407_v9  ;;  %v4200_v32 = vrot.slane %v4198_v22, 7  ;;  %v5310_v22 = vsel %vm7792_vm6, %v5305_v57, %v5309_v37  ;;  %v5320_v9 = vsel %vm7792_vm6, %v5315_v11, %v5319_v53  ;;  %v4195_v47 = vsel %vm7445_vm3, %v6580_v36, %v4194_v6 }
 0x33c   : > { %v5390_v3 = vunpack.c.l.b16 %v5310_v22  ;;  %v4211_v57 = vshrl.u32 %v4006_v16, 16  ;;  %v4214_v6 = vshll.u32 %v4006_v16, 16 }
 0x33d   : > { %v4203_v63 = vor.u32 %v4201_v60, %v4200_v32  ;;  %v4007_v60 = vld [vmem:[#allocation2 + $0xfc] sm:$0xf]  ;;  %v4412_v32 = vunpack.c.l.b16 %v4195_v47 }
 0x33e   : > { %v2321_v7 = vpop.f32.mrf.mxu3  ;;  %v4220_v37 = vshrl.u32 %v4007_v60, 16 }
 0x33f   : > { %v8581_v20 = vadd.f32 %v2321_v7, %v8199_v24  ;;  %v6957_v24 = vld [vmem:[%s9186_s7] sm:$0xff]  ;;  %v5391_v7 = vunpack.c.l.b16 %v5320_v9  ;;  %v4204_v21 = vsel %vm7445_vm3, %v4196_v42, %v4203_v63  ;;  %v8601_v18 = vpop.f32.mrf.mxu2  ;;  %v8606_v53 = vpop.f32.mrf.mxu1  ;;  %v4223_v42 = vshll.u32 %v4007_v60, 16 }
 0x340   : > { %5784 = vmatpush.bf16.msra.mxu2 %v6957_v24  ;;  %v4413_v25 = vunpack.c.l.b16 %v4204_v21  ;;  %v4206_v24 = vshrl.u32 %v4005_v40, 16  ;;  %v4222_v36 = vrot.slane %v4220_v37, 7  ;;  %v9291_v37 = vld [vmem:[#allocation8_spill] sm:$0xff] }
 0x341   : > { %9285 = vst [vmem:[#allocation93_spill] sm:$0xff] %v8581_v20  ;;  %v2984_v40 = vadd.f32 %v9291_v37, %v8287_v30  ;;  %v9297_v20 = vld [vmem:[#allocation36_spill] sm:$0xff] }
 0x342   : > { %v4437_v13 = vpack.c.b16 %v4413_v25, %v4412_v32  ;;  %v6581_v63 = vrot.slane %v4206_v24, 11  ;;  %v4225_v47 = vor.u32 %v4223_v42, %v4222_v36  ;;  %v4009_v25 = vld [vmem:[#allocation2 + $0x110] sm:$0xf]  ;;  %v4008_v24 = vld [vmem:[#allocation2 + $0x10c] sm:$0x8] }
 0x343   : > { %4548 = vmatmul.bf16.gmra.mxu3 %v4436_v50  ;;  %v5408_v50 = vpack.c.b16 %v5391_v7, %v5390_v3  ;;  %v9289_v7 = vld [vmem:[#allocation55_spill] sm:$0xff]  ;;  %v9292_v36 = vld [vmem:[#allocation6_spill] sm:$0xff]  ;;  %v4236_v37 = vshll.u32 %v4009_v25, 16 }
 0x346   : > { %v2324_v10 = vpop.f32.mrf.mxu3 }
 0x347   : > { %v8595_v44 = vadd.f32 %v2324_v10, %v8216_v12  ;;  %v4213_v10 = vrot.slane %v4211_v57, 7  ;;  %v4010_v57 = vld [vmem:[#allocation2 + $0x114] sm:$0xf] }
 0x349   : > { %9286 = vst [vmem:[#allocation94_spill] sm:$0xff] %v8595_v44  ;;  %v4216_v22 = vor.u32 %v4214_v6, %v4213_v10  ;;  %v4218_v9 = vrot.slane %v4213_v10, 4  ;;  %v4242_v10 = vshrl.u32 %v4010_v57, 16  ;;  %v9293_v6 = vld [vmem:[#allocation7_spill] sm:$0xff] }
 0x34a   : > { %v1604_v42 = vadd.f32 %v9293_v6, %v9292_v36 }
 0x34b   : > { %5552 = vmatmul.bf16.gmra.mxu1 %v5408_v50  ;;  %v4217_v50 = vsel %vm7445_vm3, %v6581_v63, %v4216_v22  ;;  %v4226_v32 = vsel %vm7445_vm3, %v4218_v9, %v4225_v47  ;;  %v9295_v9 = vld [vmem:[#allocation23_spill] sm:$0xff]  ;;  %v4244_v30 = vrot.slane %v4242_v10, 7  ;;  %v8636_v10 = vpop.f32.mrf.mxu1 }
 0x34c   : > { %v4414_v16 = vunpack.c.l.b16 %v4217_v50  ;;  %v4415_v60 = vunpack.c.l.b16 %v4226_v32  ;;  %v2335_v22 = vadd.f32 %v8303_v38, %v1604_v42  ;;  %v3266_v47 = vadd.f32 %v9295_v9, %v2984_v40  ;;  %v8630_v42 = vpop.f32.mrf.mxu0  ;;  %v9299_v9 = vld [vmem:[#allocation10_spill] sm:$0xff] }
 0x34e   : > { %v2326_v12 = vpop.f32.mrf.mxu3  ;;  %v4438_v63 = vpack.c.b16 %v4415_v60, %v4414_v16  ;;  %v3948_v36 = vadd.f32 %v9297_v20, %v3266_v47  ;;  %v2986_v47 = vadd.f32 %v9299_v9, %v8314_v2  ;;  %v8655_v2 = vld [vmem:[%s9185_s6] ss:$0 sm:$0xff] }
 0x34f   : > { %v8604_v11 = vadd.f32 %v2326_v12, %v9287_v62  ;;  %v8611_v12 = vpop.f32.mrf.mxu2  ;;  %v4233_v62 = vshrl.u32 %v4009_v25, 16 }
 0x351   : > { %9288 = vst [vmem:[#allocation51_spill] sm:$0xff] %v8604_v11  ;;  %v4235_v50 = vrot.slane %v4233_v62, 7  ;;  %v9296_v11 = vld [vmem:[#allocation9_spill] sm:$0xff] }
 0x352   : > { %v2985_v44 = vadd.f32 %v9296_v11, %v2335_v22  ;;  %v9298_v62 = vld [vmem:[#allocation25_spill] sm:$0xff] }
 0x353   : > { %4553 = vmatmul.bf16.gmra.mxu3 %v4437_v13  ;;  %v4240_v16 = vrot.slane %v4235_v50, 4  ;;  %v4013_v11 = vld [vmem:[#allocation2 + $0x12c] sm:$0xf] }
 0x356   : > { %v2329_v3 = vpop.f32.mrf.mxu3 }
 0x357   : > { %v8609_v21 = vadd.f32 %v2329_v3, %v9289_v7  ;;  %v4228_v7 = vshrl.u32 %v4008_v24, 16  ;;  %v8626_v32 = vpop.f32.mrf.mxu2  ;;  %v3267_v24 = vadd.f32 %v9298_v62, %v2985_v44  ;;  %v8648_v44 = vld [vmem:[%s9184_s5] ss:$0 sm:$0xff] }
 0x359   : > { %9290 = vst [vmem:[#allocation55_spill] sm:$0xff] %v8609_v21  ;;  %v4245_v21 = vshll.u32 %v4010_v57, 16  ;;  %v6582_v6 = vrot.slane %v4228_v7, 11  ;;  %v4012_v57 = vld [vmem:[#allocation2 + $0x128] sm:$0xf]  ;;  %v9300_v7 = vld [vmem:[#allocation39_spill] sm:$0xff] }
 0x35a   : > { %v4255_v22 = vshrl.u32 %v4012_v57, 16 }
 0x35b   : > { %v4247_v60 = vor.u32 %v4245_v21, %v4244_v30 }
 0x35d   : > { %v4248_v20 = vsel %vm7445_vm3, %v4240_v16, %v4247_v60  ;;  %v4257_v16 = vrot.slane %v4255_v22, 7  ;;  %v8662_v22 = vpop.f32.mrf.mxu1 }
 0x35e   : > { %v2331_v13 = vpop.f32.mrf.mxu3  ;;  %v4417_v30 = vunpack.c.l.b16 %v4248_v20 }
 0x35f   : > { %v8622_v3 = vadd.f32 %v2331_v13, %v8268_v26  ;;  %v4238_v26 = vor.u32 %v4236_v37, %v4235_v50  ;;  %v3949_v50 = vadd.f32 %v9300_v7, %v3267_v24  ;;  %v4011_v37 = vld [vmem:[#allocation2 + $0x124] sm:$0x8]  ;;  %v8659_v24 = vpop.f32.mrf.mxu0 }
 0x361   : > { %9294 = vst [vmem:[#allocation8_spill] sm:$0xff] %v8622_v3  ;;  %v4239_v25 = vsel %vm7445_vm3, %v6582_v6, %v4238_v26  ;;  %v4264_v6 = vshrl.u32 %v4013_v11, 16 }
 0x362   : > { %v4416_v21 = vunpack.c.l.b16 %v4239_v25  ;;  %v4258_v25 = vshll.u32 %v4012_v57, 16 }
 0x363   : > { %4558 = vmatmul.bf16.gmra.mxu3 %v4438_v63  ;;  %v8640_v63 = vpop.f32.mrf.mxu2  ;;  %v4266_v20 = vrot.slane %v4264_v6, 7  ;;  %v4262_v6 = vrot.slane %v4257_v16, 4 }
 0x364   : > { %v4260_v7 = vor.u32 %v4258_v25, %v4257_v16 }
 0x366   : > { %v4519_v13 = vpop.f32.mrf.mxu3 }
 0x367   : > { %v4599_v38 = vadd.f32 %v4519_v13, %v3948_v36  ;;  %v4250_v13 = vshrl.u32 %v4011_v37, 16  ;;  %v9302_v37 = vld [vmem:[#allocation11_spill] sm:$0xff]  ;;  %v8678_v16 = vpop.f32.mrf.mxu0 }
 0x369   : > { %v4881_v40 = vadd.f32 %v8366_v15, %v4599_v38  ;;  %v4439_v38 = vpack.c.b16 %v4417_v30, %v4416_v21 }
 0x36b   : > { %v5563_v15 = vadd.f32 %v8535_v33, %v4881_v40  ;;  %v9301_v40 = vld [vmem:[#allocation27_spill] sm:$0xff] }
 0x36c   : > { %v3268_v62 = vadd.f32 %v9301_v40, %v2986_v47  ;;  %v9303_v47 = vld [vmem:[#allocation43_spill] sm:$0xff] }
 0x36d   : > { %v5598_v60 = vmul.f32 %v8648_v44, %v5563_v15  ;;  %v6583_v15 = vrot.slane %v4250_v13, 11 }
 0x36e   : > { %v4521_v36 = vpop.f32.mrf.mxu3  ;;  %v3950_v30 = vadd.f32 %v9303_v47, %v3268_v62  ;;  %v4016_v47 = vld [vmem:[#allocation2 + $0x144] sm:$0xf] }
 0x36f   : > { %v4600_v26 = vadd.f32 %v4521_v36, %v3949_v50  ;;  %v4267_v50 = vshll.u32 %v4013_v11, 16  ;;  %v2987_v36 = vadd.f32 %v9302_v37, %v8325_v49  ;;  %v4261_v11 = vsel %vm7445_vm3, %v6583_v15, %v4260_v7  ;;  %v9306_v7 = vld [vmem:[#allocation46_spill] sm:$0xff] }
 0x370   : > { %v4289_v3 = vshll.u32 %v4016_v47, 16 }
 0x371   : > { %v4882_v33 = vadd.f32 %v8373_v51, %v4600_v26  ;;  %v5633_v51 = vadd.f32 %v8655_v2, %v5598_v60  ;;  %v8669_v26 = vpop.f32.mrf.mxu2  ;;  %v9304_v60 = vld [vmem:[#allocation29_spill] sm:$0xff] }
 0x372   : > { %v3269_v25 = vadd.f32 %v9304_v60, %v2987_v36  ;;  %v4014_v36 = vld [vmem:[#allocation2 + $0x13c] sm:$0x8] }
 0x373   : > { %v5564_v9 = vadd.f32 %v8552_v55, %v4882_v33  ;;  %4563 = vmatmul.bf16.gmra.mxu3 %v4439_v38  ;;  %v4269_v55 = vor.u32 %v4267_v50, %v4266_v20  ;;  %v5665_v13 = vmax.f32 %v5633_v51, 0.0  ;;  %v4418_v20 = vunpack.c.l.b16 %v4261_v11 }
 0x375   : > { %v5599_v21 = vmul.f32 %v8648_v44, %v5564_v9  ;;  %v4015_v9 = vld [vmem:[#allocation2 + $0x140] sm:$0xf]  ;;  %v4270_v62 = vsel %vm7445_vm3, %v4262_v6, %v4269_v55  ;;  %v4286_v6 = vshrl.u32 %v4016_v47, 16 }
 0x376   : > { %v4524_v57 = vpop.f32.mrf.mxu3  ;;  %v4277_v50 = vshrl.u32 %v4015_v9, 16  ;;  %v4419_v51 = vunpack.c.l.b16 %v4270_v62 }
 0x377   : > { %v5634_v33 = vadd.f32 %v8655_v2, %v5599_v21  ;;  %v4601_v38 = vadd.f32 %v4524_v57, %v3950_v30  ;;  %v9305_v21 = vld [vmem:[#allocation12_spill] sm:$0xff]  ;;  %v8684_v57 = vpop.f32.mrf.mxu1 }
 0x378   : > { %v2988_v30 = vadd.f32 %v9305_v21, %v8337_v1  ;;  %v4279_v11 = vrot.slane %v4277_v50, 7  ;;  %v4440_v60 = vpack.c.b16 %v4419_v51, %v4418_v20  ;;  %v8697_v20 = vpop.f32.mrf.mxu0 }
 0x379   : > { %v5666_v40 = vmax.f32 %v5634_v33, 0.0  ;;  %v4883_v49 = vadd.f32 %v8394_v23, %v4601_v38  ;;  %v3951_v23 = vadd.f32 %v9306_v7, %v3269_v25  ;;  %v8686_v38 = vpop.f32.mrf.mxu2  ;;  %v4288_v25 = vrot.slane %v4286_v6, 7 }
 0x37b   : > { %v5697_v37 = vpack.c.bf16 %v5666_v40, %v5665_v13  ;;  %v5565_v15 = vadd.f32 %v8563_v61, %v4883_v49  ;;  %v4272_v13 = vshrl.u32 %v4014_v36, 16  ;;  %v9307_v61 = vld [vmem:[#allocation30_spill] sm:$0xff]  ;;  %v9309_v36 = vld [vmem:[#allocation49_spill] sm:$0xff]  ;;  %v4291_v51 = vor.u32 %v4289_v3, %v4288_v25 }
 0x37c   : > { %v3270_v49 = vadd.f32 %v9307_v61, %v2988_v30 }
 0x37d   : > { %5785 = vmatmul.bf16.vlgmr.msra.gmra.mxu2 %v5697_v37  ;;  %v5600_v40 = vmul.f32 %v8648_v44, %v5565_v15  ;;  %v4280_v37 = vshll.u32 %v4015_v9, 16  ;;  %v6584_v21 = vrot.slane %v4272_v13, 11  ;;  %v4284_v9 = vrot.slane %v4279_v11, 4 }
 0x37e   : > { %v4526_v33 = vpop.f32.mrf.mxu3  ;;  %v3952_v15 = vadd.f32 %v9309_v36, %v3270_v49 }
 0x37f   : > { %v4602_v55 = vadd.f32 %v4526_v33, %v3951_v23  ;;  %v4282_v7 = vor.u32 %v4280_v37, %v4279_v11  ;;  %v9308_v23 = vld [vmem:[#allocation13_spill] sm:$0xff]  ;;  %v4292_v3 = vsel %vm7445_vm3, %v4284_v9, %v4291_v51  ;;  %v4019_v37 = vld [vmem:[#allocation2 + $0x15c] sm:$0xf] }
 0x380   : > { %v2989_v33 = vadd.f32 %v9308_v23, %v8349_v39  ;;  %v9311_v23 = vld [vmem:[#allocation14_spill] sm:$0xff]  ;;  %v4421_v36 = vunpack.c.l.b16 %v4292_v3 }
 0x381   : > { %v4884_v1 = vadd.f32 %v8408_v17, %v4602_v55  ;;  %v5635_v17 = vadd.f32 %v8655_v2, %v5600_v40  ;;  %v8700_v55 = vpop.f32.mrf.mxu1  ;;  %v4283_v47 = vsel %vm7445_vm3, %v6584_v21, %v4282_v7  ;;  %v4018_v40 = vld [vmem:[#allocation2 + $0x158] sm:$0xf]  ;;  %v8706_v49 = vpop.f32.mrf.mxu2 }
 0x382   : > { %v4420_v25 = vunpack.c.l.b16 %v4283_v47 }
 0x383   : > { %v5566_v62 = vadd.f32 %v8578_v28, %v4884_v1  ;;  %4568 = vmatmul.bf16.gmra.mxu3 %v4440_v60  ;;  %v5667_v13 = vmax.f32 %v5635_v17, 0.0  ;;  %v9310_v60 = vld [vmem:[#allocation32_spill] sm:$0xff]  ;;  %v4308_v17 = vshrl.u32 %v4019_v37, 16 }
 0x384   : > { %v3271_v61 = vadd.f32 %v9310_v60, %v2989_v33  ;;  %v4017_v33 = vld [vmem:[#allocation2 + $0x154] sm:$0x8] }
 0x385   : > { %v5601_v50 = vmul.f32 %v8648_v44, %v5566_v62  ;;  %v4299_v62 = vshrl.u32 %v4018_v40, 16  ;;  %v4294_v9 = vshrl.u32 %v4017_v33, 16  ;;  %v4310_v60 = vrot.slane %v4308_v17, 7 }
 0x386   : > { %v4529_v30 = vpop.f32.mrf.mxu3 }
 0x387   : > { %v4603_v6 = vadd.f32 %v4529_v30, %v3952_v15  ;;  %v5636_v28 = vadd.f32 %v8655_v2, %v5601_v50  ;;  %v2990_v50 = vadd.f32 %v9311_v23, %v8360_v27  ;;  %v4301_v51 = vrot.slane %v4299_v62, 7 }
 0x388   : > { %v4441_v27 = vpack.c.b16 %v4421_v36, %v4420_v25  ;;  %v6585_v23 = vrot.slane %v4294_v9, 11 }
 0x389   : > { %v4885_v39 = vadd.f32 %v8419_v34, %v4603_v6  ;;  %v5668_v1 = vmax.f32 %v5636_v28, 0.0  ;;  %v9312_v34 = vld [vmem:[#allocation53_spill] sm:$0xff]  ;;  %v8714_v6 = vpop.f32.mrf.mxu0  ;;  %v4302_v28 = vshll.u32 %v4018_v40, 16  ;;  %v9314_v40 = vld [vmem:[#allocation15_spill] sm:$0xff] }
 0x38a   : > { %v3953_v7 = vadd.f32 %v9312_v34, %v3271_v61  ;;  %v4311_v61 = vshll.u32 %v4019_v37, 16  ;;  %v2991_v62 = vadd.f32 %v9314_v40, %v8371_v31  ;;  %v9315_v31 = vld [vmem:[#allocation37_spill] sm:$0xff] }
 0x38b   : > { %v5698_v11 = vpack.c.bf16 %v5668_v1, %v5667_v13  ;;  %v5567_v21 = vadd.f32 %v8588_v56, %v4885_v39  ;;  %v9313_v1 = vld [vmem:[#allocation34_spill] sm:$0xff]  ;;  %v8719_v39 = vpop.f32.mrf.mxu1  ;;  %v4304_v34 = vor.u32 %v4302_v28, %v4301_v51 }
 0x38c   : > { %v3272_v56 = vadd.f32 %v9313_v1, %v2990_v50  ;;  %v4313_v36 = vor.u32 %v4311_v61, %v4310_v60  ;;  %v3273_v9 = vadd.f32 %v9315_v31, %v2991_v62  ;;  %v9317_v61 = vld [vmem:[#allocation59_spill] sm:$0xff] }
 0x38d   : > { %5790 = vmatmul.bf16.gmra.mxu2 %v5698_v11  ;;  %v5602_v47 = vmul.f32 %v8648_v44, %v5567_v21  ;;  %v8722_v11 = vpop.f32.mrf.mxu2  ;;  %v4305_v33 = vsel %vm7445_vm3, %v6585_v23, %v4304_v34  ;;  %v4020_v34 = vld [vmem:[#allocation2 + $0x16c] sm:$0x8] }
 0x38e   : > { %v4531_v15 = vpop.f32.mrf.mxu3  ;;  %v4422_v1 = vunpack.c.l.b16 %v4305_v33 }
 0x38f   : > { %v4604_v30 = vadd.f32 %v4531_v15, %v3953_v7  ;;  %v5637_v25 = vadd.f32 %v8655_v2, %v5602_v47  ;;  %v4306_v7 = vrot.slane %v4301_v51, 4  ;;  %v4021_v51 = vld [vmem:[#allocation2 + $0x170] sm:$0xf] }
 0x390   : > { %v4324_v33 = vshll.u32 %v4021_v51, 16 }
 0x391   : > { %v4886_v13 = vadd.f32 %v8437_v41, %v4604_v30  ;;  %v3954_v41 = vadd.f32 %v8270_v48, %v3272_v56  ;;  %v5669_v17 = vmax.f32 %v5637_v25, 0.0  ;;  %v8734_v28 = vpop.f32.mrf.mxu0  ;;  %v4314_v48 = vsel %vm7445_vm3, %v4306_v7, %v4313_v36  ;;  %v9316_v56 = vld [vmem:[#allocation16_spill] sm:$0xff] }
 0x392   : > { %v2992_v60 = vadd.f32 %v9316_v56, %v8385_v46  ;;  %v4423_v23 = vunpack.c.l.b16 %v4314_v48  ;;  %v9318_v46 = vld [vmem:[#allocation40_spill] sm:$0xff]  ;;  %v9320_v48 = vld [vmem:[#allocation17_spill] sm:$0xff] }
 0x393   : > { %v5568_v3 = vadd.f32 %v8606_v53, %v4886_v13  ;;  %4573 = vmatmul.bf16.gmra.mxu3 %v4441_v27  ;;  %v4022_v13 = vld [vmem:[#allocation2 + $0x174] sm:$0xf]  ;;  %v8738_v27 = vpop.f32.mrf.mxu1 }
 0x395   : > { %v5603_v21 = vmul.f32 %v8648_v44, %v5568_v3  ;;  %v3955_v3 = vadd.f32 %v9317_v61, %v3273_v9  ;;  %v8744_v40 = vpop.f32.mrf.mxu2  ;;  %v9319_v9 = vld [vmem:[#allocation71_spill] sm:$0xff] }
 0x396   : > { %v4534_v50 = vpop.f32.mrf.mxu3 }
 0x397   : > { %v4605_v37 = vadd.f32 %v4534_v50, %v3954_v41  ;;  %v5638_v53 = vadd.f32 %v8655_v2, %v5603_v21  ;;  %v4321_v21 = vshrl.u32 %v4021_v51, 16  ;;  %v4330_v41 = vshrl.u32 %v4022_v13, 16 }
 0x398   : > { %v4316_v50 = vshrl.u32 %v4020_v34, 16  ;;  %v4024_v34 = vld [vmem:[#allocation2 + $0x188] sm:$0xf] }
 0x399   : > { %v4887_v15 = vadd.f32 %v8630_v42, %v4605_v37  ;;  %v5670_v30 = vmax.f32 %v5638_v53, 0.0  ;;  %v4442_v37 = vpack.c.b16 %v4423_v23, %v4422_v1  ;;  %v3274_v53 = vadd.f32 %v9318_v46, %v2992_v60  ;;  %v8750_v31 = vpop.f32.mrf.mxu0 }
 0x39a   : > { %v6586_v51 = vrot.slane %v4316_v50, 11  ;;  %v4343_v46 = vshrl.u32 %v4024_v34, 16 }
 0x39b   : > { %v5699_v47 = vpack.c.bf16 %v5670_v30, %v5669_v17  ;;  %v5569_v42 = vadd.f32 %v8636_v10, %v4887_v15  ;;  %v4323_v10 = vrot.slane %v4321_v21, 7  ;;  %v4332_v15 = vrot.slane %v4330_v41, 7  ;;  %v8757_v1 = vpop.f32.mrf.mxu1  ;;  %v4025_v21 = vld [vmem:[#allocation2 + $0x18c] sm:$0xf] }
 0x39c   : > { %v4333_v17 = vshll.u32 %v4022_v13, 16 }
 0x39d   : > { %5795 = vmatmul.bf16.gmra.mxu2 %v5699_v47  ;;  %v5604_v7 = vmul.f32 %v8648_v44, %v5569_v42  ;;  %v2993_v47 = vadd.f32 %v9320_v48, %v9319_v9  ;;  %v3956_v42 = vadd.f32 %v8518_v43, %v3274_v53  ;;  %v4326_v61 = vor.u32 %v4324_v33, %v4323_v10 }
 0x39e   : > { %v4536_v62 = vpop.f32.mrf.mxu3  ;;  %v4328_v13 = vrot.slane %v4323_v10, 4  ;;  %v4023_v10 = vld [vmem:[#allocation2 + $0x184] sm:$0x8]  ;;  %v4352_v33 = vshrl.u32 %v4025_v21, 16 }
 0x39f   : > { %v4606_v25 = vadd.f32 %v4536_v62, %v3955_v3  ;;  %v4335_v3 = vor.u32 %v4333_v17, %v4332_v15  ;;  %v8760_v62 = vpop.f32.mrf.mxu2  ;;  %v9322_v17 = vld [vmem:[#allocation73_spill] sm:$0xff] }
 0x3a1   : > { %v4888_v36 = vadd.f32 %v8659_v24, %v4606_v25  ;;  %v5639_v24 = vadd.f32 %v8655_v2, %v5604_v7  ;;  %v4336_v50 = vsel %vm7445_vm3, %v4328_v13, %v4335_v3  ;;  %v4354_v13 = vrot.slane %v4352_v33, 7 }
 0x3a2   : > { %v4355_v3 = vshll.u32 %v4025_v21, 16  ;;  %v9326_v21 = vld [vmem:[#allocation19_spill] sm:$0xff] }
 0x3a3   : > { %v5570_v30 = vadd.f32 %v8662_v22, %v4888_v36  ;;  %4578 = vmatmul.bf16.gmra.mxu3 %v4442_v37  ;;  %v5671_v25 = vmax.f32 %v5639_v24, 0.0  ;;  %v9321_v36 = vld [vmem:[#allocation44_spill] sm:$0xff]  ;;  %v4327_v37 = vsel %vm7445_vm3, %v6586_v51, %v4326_v61  ;;  %v4338_v24 = vshrl.u32 %v4023_v10, 16 }
 0x3a4   : > { %v3275_v7 = vadd.f32 %v9321_v36, %v2993_v47  ;;  %v4424_v48 = vunpack.c.l.b16 %v4327_v37  ;;  %v4425_v47 = vunpack.c.l.b16 %v4336_v50  ;;  %v4346_v61 = vshll.u32 %v4024_v34, 16 }
 0x3a5   : > { %v5605_v56 = vmul.f32 %v8648_v44, %v5570_v30  ;;  %v9323_v30 = vld [vmem:[#allocation18_spill] sm:$0xff]  ;;  %v6587_v36 = vrot.slane %v4338_v24, 11  ;;  %v4357_v34 = vor.u32 %v4355_v3, %v4354_v13  ;;  %v4960_v3 = vld [vmem:[#allocation2 + $0x1a8] sm:$0x1] }
 0x3a6   : > { %v4539_v60 = vpop.f32.mrf.mxu3  ;;  %v2994_v9 = vadd.f32 %v9323_v30, %v9322_v17 }
 0x3a7   : > { %v4607_v22 = vadd.f32 %v4539_v60, %v3956_v42  ;;  %v5640_v23 = vadd.f32 %v8655_v2, %v5605_v56  ;;  %v8772_v56 = vpop.f32.mrf.mxu0  ;;  %v4345_v60 = vrot.slane %v4343_v46, 7  ;;  %v2995_v46 = vadd.f32 %v9326_v21, %v8417_v8 }
 0x3a9   : > { %v4889_v41 = vadd.f32 %v8678_v16, %v4607_v22  ;;  %v5672_v43 = vmax.f32 %v5640_v23, 0.0  ;;  %v3957_v16 = vadd.f32 %v8533_v4, %v3275_v7  ;;  %v8774_v22 = vpop.f32.mrf.mxu1  ;;  %v4348_v37 = vor.u32 %v4346_v61, %v4345_v60 }
 0x3aa   : > { %v4350_v50 = vrot.slane %v4345_v60, 4  ;;  %v4027_v60 = vld [vmem:[#allocation2 + $0x1a0] sm:$0xf] }
 0x3ab   : > { %v5700_v53 = vpack.c.bf16 %v5672_v43, %v5671_v25  ;;  %v5571_v15 = vadd.f32 %v8684_v57, %v4889_v41  ;;  %v4443_v41 = vpack.c.b16 %v4425_v47, %v4424_v48  ;;  %v9324_v25 = vld [vmem:[#allocation47_spill] sm:$0xff]  ;;  %v8779_v43 = vpop.f32.mrf.mxu2  ;;  %v4959_v48 = vld [vmem:[#allocation2 + $0x1a4] sm:$0xf] }
 0x3ac   : > { %v3276_v4 = vadd.f32 %v9324_v25, %v2994_v9  ;;  %9325 = vst [vmem:[#allocation6_spill] sm:$0xff] %v8779_v43  ;;  %v4358_v9 = vsel %vm7445_vm3, %v4350_v50, %v4357_v34  ;;  %v4365_v50 = vshrl.u32 %v4027_v60, 16 }
 0x3ad   : > { %5800 = vmatmul.bf16.gmra.mxu2 %v5700_v53  ;;  %v5606_v57 = vmul.f32 %v8648_v44, %v5571_v15  ;;  %v6932_v15 = vld [vmem:[#allocation2 + $0x1a0] sm:$0xff] }
 0x3ae   : > { %v4541_v42 = vpop.f32.mrf.mxu3  ;;  %4875 = vmatmul.bf16.gmra.mxu0 %v6932_v15 }
 0x3af   : > { %v4608_v51 = vadd.f32 %v4541_v42, %v3957_v16  ;;  %v5641_v53 = vadd.f32 %v8655_v2, %v5606_v57  ;;  %v4958_v16 = vld [vmem:[#allocation2 + $0x1a0] sm:$0xf]  ;;  %v8792_v8 = vpop.f32.mrf.mxu0  ;;  %v9327_v42 = vld [vmem:[#allocation50_spill] sm:$0xff] }
 0x3b0   : > { %v3277_v24 = vadd.f32 %v9327_v42, %v2995_v46  ;;  %v5325_v57 = vshll.u32 %v4958_v16, 16 }
 0x3b1   : > { %v4890_v23 = vadd.f32 %v8697_v20, %v4608_v51  ;;  %v3958_v20 = vadd.f32 %v8547_v29, %v3276_v4  ;;  %v5673_v47 = vmax.f32 %v5641_v53, 0.0  ;;  %v4028_v29 = vld [vmem:[#allocation2 + $0x1a4] sm:$0xf]  ;;  %v5322_v51 = vshrl.u32 %v4958_v16, 16 }
 0x3b2   : > { %v4427_v4 = vunpack.c.l.b16 %v4358_v9  ;;  %v5327_v34 = vrot.slane %v5325_v57, 5  ;;  %v4374_v46 = vshrl.u32 %v4028_v29, 16  ;;  %v4377_v57 = vshll.u32 %v4028_v29, 16 }
 0x3b3   : > { %v5572_v7 = vadd.f32 %v8700_v55, %v4890_v23  ;;  %4583 = vmatmul.bf16.gmra.mxu3 %v4443_v41  ;;  %v4349_v55 = vsel %vm7445_vm3, %v6587_v36, %v4348_v37  ;;  %v5331_v23 = vshll.u32 %v4959_v48, 16  ;;  %v8796_v41 = vpop.f32.mrf.mxu1  ;;  %v5324_v36 = vrot.slane %v5322_v51, 4  ;;  %v4026_v37 = vld [vmem:[#allocation2 + $0x19c] sm:$0x8]  ;;  %v8798_v21 = vpop.f32.mrf.mxu2 }
 0x3b4   : > { %v4426_v25 = vunpack.c.l.b16 %v4349_v55  ;;  %9328 = vst [vmem:[#allocation7_spill] sm:$0xff] %v8798_v21 }
 0x3b5   : > { %v5607_v10 = vmul.f32 %v8648_v44, %v5572_v7  ;;  %v5333_v53 = vrot.slane %v5331_v23, 5  ;;  %v5328_v55 = vor.u32 %v5327_v34, %v5324_v36  ;;  %v4367_v23 = vrot.slane %v4365_v50, 7 }
 0x3b6   : > { %v4544_v33 = vpop.f32.mrf.mxu3  ;;  %v4444_v16 = vpack.c.b16 %v4427_v4, %v4426_v25 }
 0x3b7   : > { %v4609_v17 = vadd.f32 %v4544_v33, %v3958_v20  ;;  %v5642_v30 = vadd.f32 %v8655_v2, %v5607_v10  ;;  %v5335_v10 = vshrl.u32 %v4959_v48, 16  ;;  %v5341_v20 = vshll.u32 %v4960_v3, 16  ;;  %v9330_v33 = vld [vmem:[#allocation20_spill] sm:$0xff] }
 0x3b8   : > { %v5329_v21 = vrot.slane %v5328_v55, 4  ;;  %v4376_v48 = vrot.slane %v4374_v46, 7 }
 0x3b9   : > { %v4891_v61 = vadd.f32 %v8714_v6, %v4609_v17  ;;  %v5674_v13 = vmax.f32 %v5642_v30, 0.0  ;;  %v9329_v6 = vld [vmem:[#allocation76_spill] sm:$0xff]  ;;  %v3959_v30 = vadd.f32 %v8561_v19, %v3277_v24  ;;  %v5337_v42 = vrot.slane %v5335_v10, 4  ;;  %v8809_v24 = vpop.f32.mrf.mxu0 }
 0x3ba   : > { %v2996_v15 = vadd.f32 %v9330_v33, %v9329_v6  ;;  %v5343_v43 = vrot.slane %v5341_v20, 5  ;;  %v5334_v19 = vsel %vm7792_vm6, %v5329_v21, %v5333_v53  ;;  %v4379_v46 = vor.u32 %v4377_v57, %v4376_v48  ;;  %v9335_v48 = vld [vmem:[#allocation22_spill] sm:$0xff] }
 0x3bb   : > { %v5701_v7 = vpack.c.bf16 %v5674_v13, %v5673_v47  ;;  %v5573_v17 = vadd.f32 %v8719_v39, %v4891_v61  ;;  %v4360_v47 = vshrl.u32 %v4026_v37, 16  ;;  %v4368_v13 = vshll.u32 %v4027_v60, 16  ;;  %v9331_v61 = vld [vmem:[#allocation54_spill] sm:$0xff]  ;;  %v9332_v60 = vld [vmem:[#allocation21_spill] sm:$0xff]  ;;  %v8814_v50 = vpop.f32.mrf.mxu1  ;;  %v8821_v33 = vpop.f32.mrf.mxu2 }
 0x3bc   : > { %v5338_v3 = vor.u32 %v5337_v42, %v5333_v53  ;;  %v2997_v29 = vadd.f32 %v9332_v60, %v8442_v0  ;;  %v5392_v37 = vunpack.c.l.b16 %v5334_v19 }
 0x3bd   : > { %5805 = vmatmul.bf16.gmra.mxu2 %v5701_v7  ;;  %v5608_v6 = vmul.f32 %v8648_v44, %v5573_v17  ;;  %v3278_v7 = vadd.f32 %v9331_v61, %v2996_v15  ;;  %v6588_v36 = vrot.slane %v4360_v47, 11  ;;  %v4370_v34 = vor.u32 %v4368_v13, %v4367_v23 }
 0x3be   : > { %v4546_v9 = vpop.f32.mrf.mxu3  ;;  %v5339_v25 = vrot.slane %v5338_v3, 4 }
 0x3bf   : > { %v4610_v51 = vadd.f32 %v4546_v9, %v3959_v30  ;;  %v3960_v53 = vadd.f32 %v8572_v5, %v3278_v7  ;;  %v5643_v20 = vadd.f32 %v8655_v2, %v5608_v6  ;;  %v4371_v55 = vsel %vm7445_vm3, %v6588_v36, %v4370_v34 }
 0x3c0   : > { %v5344_v10 = vsel %vm7792_vm6, %v5339_v25, %v5343_v43 }
 0x3c1   : > { %v4892_v39 = vadd.f32 %v8734_v28, %v4610_v51  ;;  %v4372_v28 = vrot.slane %v4367_v23, 4  ;;  %v5393_v0 = vunpack.c.l.b16 %v5344_v10  ;;  %v5675_v9 = vmax.f32 %v5643_v20, 0.0  ;;  %v4841_v57 = vpop.f32.mrf.mxu0  ;;  %v9334_v23 = vld [vmem:[#allocation78_spill] sm:$0xff] }
 0x3c2   : > { %v4428_v51 = vunpack.c.l.b16 %v4371_v55  ;;  %v2998_v3 = vadd.f32 %v9335_v48, %v9334_v23 }
 0x3c3   : > { %v5574_v4 = vadd.f32 %v8738_v27, %v4892_v39  ;;  %4588 = vmatmul.bf16.gmra.mxu3 %v4444_v16  ;;  %v5409_v30 = vpack.c.b16 %v5393_v0, %v5392_v37  ;;  %v4380_v54 = vsel %vm7445_vm3, %v4372_v28, %v4379_v46  ;;  %v9333_v16 = vld [vmem:[#allocation57_spill] sm:$0xff]  ;;  %v5523_v39 = vpop.f32.mrf.mxu1  ;;  %v8834_v19 = vpop.f32.mrf.mxu2 }
 0x3c4   : > { %v3279_v47 = vadd.f32 %v9333_v16, %v2997_v29  ;;  %v4429_v13 = vunpack.c.l.b16 %v4380_v54  ;;  %v9336_v29 = vld [vmem:[#allocation60_spill] sm:$0xff] }
 0x3c5   : > { %v5609_v21 = vmul.f32 %v8648_v44, %v5574_v4  ;;  %5557 = vmatmul.bf16.gmra.mxu1 %v5409_v30  ;;  %v3280_v4 = vadd.f32 %v9336_v29, %v2998_v3  ;;  %v9339_v30 = vld [vmem:[#allocation26_spill] sm:$0xff] }
 0x3c6   : > { %v4549_v27 = vpop.f32.mrf.mxu3  ;;  %v3961_v52 = vadd.f32 %v8583_v45, %v3279_v47  ;;  %v4445_v7 = vpack.c.b16 %v4429_v13, %v4428_v51  ;;  %v9340_v47 = vld [vmem:[#allocation64_spill] sm:$0xff] }
 0x3c7   : > { %v4611_v15 = vadd.f32 %v4549_v27, %v3960_v53  ;;  %v5644_v17 = vadd.f32 %v8655_v2, %v5609_v21  ;;  %v3962_v34 = vadd.f32 %v8601_v18, %v3280_v4  ;;  %v9338_v27 = vld [vmem:[#allocation62_spill] sm:$0xff]  ;;  %v3000_v18 = vadd.f32 %v9339_v30, %v8470_v35  ;;  %v9341_v35 = vld [vmem:[#allocation28_spill] sm:$0xff] }
 0x3c9   : > { %v4893_v43 = vadd.f32 %v8750_v31, %v4611_v15  ;;  %v5676_v5 = vmax.f32 %v5644_v17, 0.0  ;;  %v4843_v46 = vpop.f32.mrf.mxu0 }
 0x3cb   : > { %v5702_v42 = vpack.c.bf16 %v5676_v5, %v5675_v9  ;;  %v5575_v6 = vadd.f32 %v8757_v1, %v4893_v43  ;;  %v9337_v1 = vld [vmem:[#allocation24_spill] sm:$0xff]  ;;  %v8848_v17 = vpop.f32.mrf.mxu2 }
 0x3cc   : > { %v2999_v37 = vadd.f32 %v9337_v1, %v8458_v59 }
 0x3cd   : > { %5810 = vmatmul.bf16.gmra.mxu2 %v5702_v42  ;;  %v5610_v25 = vmul.f32 %v8648_v44, %v5575_v6  ;;  %v3282_v42 = vadd.f32 %v9340_v47, %v3000_v18  ;;  %v9349_v47 = vld [vmem:[#allocation35_spill] sm:$0xff] }
 0x3ce   : > { %v4551_v61 = vpop.f32.mrf.mxu3  ;;  %v3281_v15 = vadd.f32 %v9338_v27, %v2999_v37 }
 0x3cf   : > { %v4612_v31 = vadd.f32 %v4551_v61, %v3961_v52  ;;  %v5645_v28 = vadd.f32 %v8655_v2, %v5610_v25  ;;  %v9342_v25 = vld [vmem:[#allocation66_spill] sm:$0xff] }
 0x3d0   : > { %v3963_v54 = vadd.f32 %v8611_v12, %v3281_v15  ;;  %v3964_v12 = vadd.f32 %v8626_v32, %v3282_v42 }
 0x3d1   : > { %v4894_v60 = vadd.f32 %v8772_v56, %v4612_v31  ;;  %v5525_v56 = vpop.f32.mrf.mxu1  ;;  %v5677_v0 = vmax.f32 %v5645_v28, 0.0  ;;  %v4846_v5 = vpop.f32.mrf.mxu0 }
 0x3d3   : > { %v5576_v36 = vadd.f32 %v8774_v22, %v4894_v60  ;;  %4593 = vmatmul.bf16.gmra.mxu3 %v4445_v7  ;;  %v8858_v23 = vpop.f32.mrf.mxu2 }
 0x3d5   : > { %v5611_v45 = vmul.f32 %v8648_v44, %v5576_v36 }
 0x3d6   : > { %v4554_v10 = vpop.f32.mrf.mxu3 }
 0x3d7   : > { %v4613_v21 = vadd.f32 %v4554_v10, %v3962_v34  ;;  %v5646_v53 = vadd.f32 %v8655_v2, %v5611_v45  ;;  %v9344_v10 = vld [vmem:[#allocation68_spill] sm:$0xff] }
 0x3d9   : > { %v4895_v20 = vadd.f32 %v8792_v8, %v4613_v21  ;;  %v5678_v22 = vmax.f32 %v5646_v53, 0.0  ;;  %v5528_v51 = vpop.f32.mrf.mxu1  ;;  %v4848_v60 = vpop.f32.mrf.mxu0 }
 0x3db   : > { %v5703_v59 = vpack.c.bf16 %v5678_v22, %v5677_v0  ;;  %v5577_v55 = vadd.f32 %v8796_v41, %v4895_v20  ;;  %v3001_v41 = vadd.f32 %v9341_v35, %v8479_v14  ;;  %v9343_v14 = vld [vmem:[#allocation31_spill] sm:$0xff]  ;;  %v8870_v37 = vpop.f32.mrf.mxu2  ;;  %v9346_v22 = vld [vmem:[#allocation33_spill] sm:$0xff]  ;;  %v8889_v35 = vld [vmem:[%s9187_s8] ss:$0 sm:$0xff] }
 0x3dc   : > { %v3002_v36 = vadd.f32 %v9343_v14, %v8488_v58  ;;  %v9345_v0 = vld [vmem:[#allocation83_spill] sm:$0xff] }
 0x3dd   : > { %5815 = vmatmul.bf16.gmra.mxu2 %v5703_v59  ;;  %v5612_v8 = vmul.f32 %v8648_v44, %v5577_v55  ;;  %v3003_v27 = vadd.f32 %v9346_v22, %v9345_v0 }
 0x3de   : > { %v4556_v43 = vpop.f32.mrf.mxu3  ;;  %v3284_v21 = vadd.f32 %v9344_v10, %v3002_v36  ;;  %v7130_v36 = vld [vmem:[%s7345_s18] sm:$0xff] }
 0x3df   : > { %v4614_v9 = vadd.f32 %v4556_v43, %v3963_v54  ;;  %v5647_v3 = vadd.f32 %v8655_v2, %v5612_v8  ;;  %v9347_v43 = vld [vmem:[#allocation69_spill] sm:$0xff] }
 0x3e1   : > { %v4896_v16 = vadd.f32 %v8809_v24, %v4614_v9  ;;  %v5679_v31 = vmax.f32 %v5647_v3, 0.0  ;;  %v5530_v4 = vpop.f32.mrf.mxu1  ;;  %v4851_v20 = vpop.f32.mrf.mxu0  ;;  %v3285_v9 = vadd.f32 %v9347_v43, %v3003_v27 }
 0x3e3   : > { %v5578_v13 = vadd.f32 %v8814_v50, %v4896_v16  ;;  %v3283_v50 = vadd.f32 %v9342_v25, %v3001_v41  ;;  %v8880_v55 = vpop.f32.mrf.mxu2  ;;  %v9348_v16 = vld [vmem:[#allocation85_spill] sm:$0xff]  ;;  %v9351_v25 = vld [vmem:[#allocation87_spill] sm:$0xff] }
 0x3e4   : > { %v3004_v42 = vadd.f32 %v9349_v47, %v9348_v16 }
 0x3e5   : > { %v5613_v48 = vmul.f32 %v8648_v44, %v5578_v13  ;;  %v3965_v32 = vadd.f32 %v8640_v63, %v3283_v50  ;;  %v3967_v13 = vadd.f32 %v8686_v38, %v3285_v9  ;;  %v9352_v50 = vld [vmem:[#allocation38_spill] sm:$0xff] }
 0x3e6   : > { %v4559_v6 = vpop.f32.mrf.mxu3 }
 0x3e7   : > { %v4615_v52 = vadd.f32 %v4559_v6, %v3964_v12  ;;  %v5648_v24 = vadd.f32 %v8655_v2, %v5613_v48  ;;  %v8894_v12 = vld [vmem:[%s9188_s9] ss:$0 sm:$0xff] }
 0x3e9   : > { %v4897_v61 = vadd.f32 %v4841_v57, %v4615_v52  ;;  %v5680_v7 = vmax.f32 %v5648_v24, 0.0  ;;  %v5533_v15 = vpop.f32.mrf.mxu1  ;;  %v4853_v41 = vpop.f32.mrf.mxu0  ;;  %v9350_v24 = vld [vmem:[#allocation70_spill] sm:$0xff] }
 0x3eb   : > { %v5704_v29 = vpack.c.bf16 %v5680_v7, %v5679_v31  ;;  %v5579_v1 = vadd.f32 %v5523_v39, %v4897_v61  ;;  %v3966_v39 = vadd.f32 %v8669_v26, %v3284_v21  ;;  %v3286_v61 = vadd.f32 %v9350_v24, %v3004_v42  ;;  %v9353_v21 = vld [vmem:[#allocation72_spill] sm:$0xff] }
 0x3ed   : > { %5820 = vmatmul.bf16.gmra.mxu2 %v5704_v29  ;;  %v5614_v57 = vmul.f32 %v8648_v44, %v5579_v1  ;;  %v3005_v29 = vadd.f32 %v9352_v50, %v9351_v25 }
 0x3ee   : > { %v4561_v45 = vpop.f32.mrf.mxu3 }
 0x3ef   : > { %v4616_v34 = vadd.f32 %v4561_v45, %v3965_v32  ;;  %v5649_v63 = vadd.f32 %v8655_v2, %v5614_v57  ;;  %v3968_v32 = vadd.f32 %v8706_v49, %v3286_v61  ;;  %v7132_v61 = vld [vmem:[%s7345_s18 + $0x10] sm:$0xff] }
 0x3f1   : > { %v4898_v28 = vadd.f32 %v4843_v46, %v4616_v34  ;;  %v5535_v3 = vpop.f32.mrf.mxu1 }
 0x3f3   : > { %v5580_v53 = vadd.f32 %v5525_v56, %v4898_v28  ;;  %v5681_v56 = vmax.f32 %v5649_v63, 0.0  ;;  %v4856_v28 = vpop.f32.mrf.mxu0 }
 0x3f5   : > { %v5615_v58 = vmul.f32 %v8648_v44, %v5580_v53  ;;  %v3287_v53 = vadd.f32 %v9353_v21, %v3005_v29  ;;  %v9361_v21 = vld [vmem:[#allocation48_spill] sm:$0xff] }
 0x3f6   : > { %v4564_v59 = vpop.f32.mrf.mxu3 }
 0x3f7   : > { %v4617_v30 = vadd.f32 %v4564_v59, %v3966_v39  ;;  %v5650_v18 = vadd.f32 %v8655_v2, %v5615_v58  ;;  %v9354_v59 = vld [vmem:[#allocation89_spill] sm:$0xff]  ;;  %v3969_v43 = vadd.f32 %v8722_v11, %v3287_v53  ;;  %v9357_v11 = vld [vmem:[#allocation90_spill] sm:$0xff] }
 0x3f9   : > { %v4899_v46 = vadd.f32 %v4846_v5, %v4617_v30  ;;  %v5682_v54 = vmax.f32 %v5650_v18, 0.0  ;;  %v5538_v58 = vpop.f32.mrf.mxu1  ;;  %v9355_v30 = vld [vmem:[#allocation42_spill] sm:$0xff] }
 0x3fa   : > { %v3006_v18 = vadd.f32 %v9355_v30, %v9354_v59 }
 0x3fb   : > { %v5705_v8 = vpack.c.bf16 %v5682_v54, %v5681_v56  ;;  %v5581_v26 = vadd.f32 %v5528_v51, %v4899_v46  ;;  %v7131_v56 = vld [vmem:[%s7345_s18 + $0x8] sm:$0xff] }
 0x3fd   : > { %5825 = vmatmul.bf16.gmra.mxu2 %v5705_v8  ;;  %v5616_v6 = vmul.f32 %v8648_v44, %v5581_v26 }
 0x3fe   : > { %v4566_v5 = vpop.f32.mrf.mxu3 }
 0x3ff   : > { %v4618_v48 = vadd.f32 %v4566_v5, %v3967_v13  ;;  %v9356_v13 = vld [vmem:[#allocation74_spill] sm:$0xff] }
 0x400   : > { %v5786_v51 = vpop.f32.mrf.mxu2  ;;  %v3288_v5 = vadd.f32 %v9356_v13, %v3006_v18 }
 0x401   : > { %v4900_v38 = vadd.f32 %v4848_v60, %v4618_v48  ;;  %v5869_v52 = vmul.f32 %v8889_v35, %v5786_v51  ;;  %v5651_v60 = vadd.f32 %v8655_v2, %v5616_v6  ;;  %v9358_v6 = vld [vmem:[#allocation45_spill] sm:$0xff] }
 0x403   : > { %v5582_v31 = vadd.f32 %v5530_v4, %v4900_v38  ;;  %v5904_v7 = vadd.f32 %v8894_v12, %v5869_v52  ;;  %v5683_v22 = vmax.f32 %v5651_v60, 0.0  ;;  %v3007_v38 = vadd.f32 %v9358_v6, %v9357_v11  ;;  %v5540_v52 = vpop.f32.mrf.mxu1 }
 0x405   : > { %v5617_v14 = vmul.f32 %v8648_v44, %v5582_v31  ;;  %v5936_v1 = vadd.f32 %v7130_v36, %v5904_v7  ;;  %v3970_v7 = vadd.f32 %v8744_v40, %v3288_v5  ;;  %v9359_v36 = vld [vmem:[#allocation75_spill] sm:$0xff] }
 0x406   : > { %v4569_v45 = vpop.f32.mrf.mxu3 }
 0x407   : > { %v5968_v34 = vmax.f32 %v5936_v1, 0.0  ;;  %v4619_v57 = vadd.f32 %v4569_v45, %v3968_v32  ;;  %v5652_v4 = vadd.f32 %v8655_v2, %v5617_v14  ;;  %v3289_v1 = vadd.f32 %v9359_v36, %v3007_v38 }
 0x408   : > { %v5788_v10 = vpop.f32.mrf.mxu2 }
 0x409   : > { %6000 = vst.msk [vmem:[%s8911_s11] sm:$0xff] %vm429_vm0, %v5968_v34  ;;  %v4901_v0 = vadd.f32 %v4851_v20, %v4619_v57  ;;  %v5870_v49 = vmul.f32 %v8889_v35, %v5788_v10  ;;  %v5684_v27 = vmax.f32 %v5652_v4, 0.0  ;;  %v9360_v10 = vld [vmem:[#allocation91_spill] sm:$0xff] }
 0x40a   : > { %v3008_v53 = vadd.f32 %v9361_v21, %v9360_v10 }
 0x40b   : > { %v5905_v39 = vadd.f32 %v8894_v12, %v5870_v49  ;;  %v5706_v63 = vpack.c.bf16 %v5684_v27, %v5683_v22  ;;  %v5583_v46 = vadd.f32 %v5533_v15, %v4901_v0  ;;  %v4858_v15 = vpop.f32.mrf.mxu0  ;;  %v7133_v49 = vld [vmem:[%s7345_s18 + $0x18] sm:$0xff]  ;;  %v3971_v27 = vadd.f32 %v8760_v62, %v3289_v1  ;;  %v9364_v62 = vld [vmem:[#allocation52_spill] sm:$0xff] }
 0x40d   : > { %v5937_v54 = vadd.f32 %v7131_v56, %v5905_v39  ;;  %5830 = vmatmul.bf16.gmra.mxu2 %v5706_v63  ;;  %v5618_v47 = vmul.f32 %v8648_v44, %v5583_v46 }
 0x40e   : > { %v4571_v20 = vpop.f32.mrf.mxu3 }
 0x40f   : > { %v5969_v9 = vmax.f32 %v5937_v54, 0.0  ;;  %v4620_v8 = vadd.f32 %v4571_v20, %v3969_v43  ;;  %v9362_v54 = vld [vmem:[#allocation77_spill] sm:$0xff] }
 0x410   : > { %v5791_v16 = vpop.f32.mrf.mxu2 }
 0x411   : > { %6001 = vst.msk [vmem:[%s8911_s11 + $0x8] sm:$0xff] %vm429_vm0, %v5969_v9  ;;  %v4902_v42 = vadd.f32 %v4853_v41, %v4620_v8  ;;  %v5871_v26 = vmul.f32 %v8889_v35, %v5791_v16  ;;  %v5653_v41 = vadd.f32 %v8655_v2, %v5618_v47  ;;  %v9363_v9 = vld [vmem:[#allocation41_spill] sm:$0xff]  ;;  %v7134_v47 = vld [vmem:[%s7345_s18 + $0x20] sm:$0xff] }
 0x412   : > { %v3009_v8 = vadd.f32 %v9364_v62, %v9363_v9 }
 0x413   : > { %v5584_v48 = vadd.f32 %v5535_v3, %v4902_v42  ;;  %v5906_v51 = vadd.f32 %v8894_v12, %v5871_v26  ;;  %v5685_v45 = vmax.f32 %v5653_v41, 0.0  ;;  %v4861_v4 = vpop.f32.mrf.mxu0  ;;  %v9365_v26 = vld [vmem:[#allocation6_spill] sm:$0xff] }
 0x415   : > { %v5619_v24 = vmul.f32 %v8648_v44, %v5584_v48  ;;  %v5938_v31 = vadd.f32 %v7132_v61, %v5906_v51 }
 0x416   : > { %v4574_v25 = vpop.f32.mrf.mxu3 }
 0x417   : > { %v5970_v50 = vmax.f32 %v5938_v31, 0.0  ;;  %v4621_v29 = vadd.f32 %v4574_v25, %v3970_v7  ;;  %v5654_v3 = vadd.f32 %v8655_v2, %v5619_v24  ;;  %v9366_v24 = vld [vmem:[#allocation79_spill] sm:$0xff] }
 0x418   : > { %v5793_v14 = vpop.f32.mrf.mxu2  ;;  %v3291_v61 = vadd.f32 %v9366_v24, %v3009_v8  ;;  %v8985_v8 = vld [vmem:[%s9185_s6] ss:$0 sm:$0xff] }
 0x419   : > { %6002 = vst.msk [vmem:[%s8911_s11 + $0x10] sm:$0xff] %vm429_vm0, %v5970_v50  ;;  %v4903_v32 = vadd.f32 %v4856_v28, %v4621_v29  ;;  %v5872_v60 = vmul.f32 %v8889_v35, %v5793_v14  ;;  %v5686_v34 = vmax.f32 %v5654_v3, 0.0  ;;  %v5543_v28 = vpop.f32.mrf.mxu1  ;;  %v9367_v3 = vld [vmem:[#allocation92_spill] sm:$0xff] }
 0x41a   : > { %v9368_v14 = vld [vmem:[#allocation56_spill] sm:$0xff] }
 0x41b   : > { %v5907_v40 = vadd.f32 %v8894_v12, %v5872_v60  ;;  %v5707_v57 = vpack.c.bf16 %v5686_v34, %v5685_v45  ;;  %v5585_v0 = vadd.f32 %v5538_v58, %v4903_v32  ;;  %v3290_v58 = vadd.f32 %v9362_v54, %v3008_v53  ;;  %v7135_v32 = vld [vmem:[%s7345_s18 + $0x28] sm:$0xff]  ;;  %v9369_v45 = vld [vmem:[#allocation7_spill] sm:$0xff] }
 0x41c   : > { %v3010_v36 = vadd.f32 %v9368_v14, %v9367_v3  ;;  %v3973_v34 = vadd.f32 %v9369_v45, %v3291_v61  ;;  %v7139_v61 = vld [vmem:[%s7345_s18 + $0x38] sm:$0xff] }
 0x41d   : > { %v5939_v22 = vadd.f32 %v7133_v49, %v5907_v40  ;;  %5835 = vmatmul.bf16.gmra.mxu2 %v5707_v57  ;;  %v5620_v18 = vmul.f32 %v8648_v44, %v5585_v0  ;;  %v3972_v13 = vadd.f32 %v9365_v26, %v3290_v58 }
 0x41e   : > { %v4576_v39 = vpop.f32.mrf.mxu3 }
 0x41f   : > { %v5971_v63 = vmax.f32 %v5939_v22, 0.0  ;;  %v4622_v59 = vadd.f32 %v4576_v39, %v3971_v27  ;;  %v5655_v5 = vadd.f32 %v8655_v2, %v5620_v18  ;;  %v9370_v22 = vld [vmem:[#allocation80_spill] sm:$0xff] }
 0x420   : > { %v5796_v30 = vpop.f32.mrf.mxu2  ;;  %v3292_v27 = vadd.f32 %v9370_v22, %v3010_v36 }
 0x421   : > { %6003 = vst.msk [vmem:[%s8911_s11 + $0x18] sm:$0xff] %vm429_vm0, %v5971_v63  ;;  %v4904_v46 = vadd.f32 %v4858_v15, %v4622_v59  ;;  %v5873_v56 = vmul.f32 %v8889_v35, %v5796_v30  ;;  %v4863_v15 = vpop.f32.mrf.mxu0  ;;  %v5545_v38 = vpop.f32.mrf.mxu1  ;;  %v5687_v41 = vmax.f32 %v5655_v5, 0.0  ;;  %v9371_v59 = vld [vmem:[#allocation93_spill] sm:$0xff]  ;;  %v9372_v30 = vld [vmem:[#allocation58_spill] sm:$0xff] }
 0x422   : > { %v3011_v18 = vadd.f32 %v9372_v30, %v9371_v59  ;;  %v3974_v58 = vadd.f32 %v8821_v33, %v3292_v27  ;;  %v9379_v59 = vld [vmem:[#allocation84_spill] sm:$0xff] }
 0x423   : > { %v5586_v43 = vadd.f32 %v5540_v52, %v4904_v46  ;;  %v5908_v20 = vadd.f32 %v8894_v12, %v5873_v56  ;;  %v8976_v46 = vld [vmem:[%s9184_s5] ss:$0 sm:$0xff]  ;;  %v7137_v56 = vld [vmem:[%s7345_s18 + $0x30] sm:$0xff] }
 0x425   : > { %v5621_v16 = vmul.f32 %v8648_v44, %v5586_v43  ;;  %v5940_v42 = vadd.f32 %v7134_v47, %v5908_v20 }
 0x426   : > { %v4579_v48 = vpop.f32.mrf.mxu3 }
 0x427   : > { %v5972_v51 = vmax.f32 %v5940_v42, 0.0  ;;  %v4623_v11 = vadd.f32 %v4579_v48, %v3972_v13  ;;  %v5656_v6 = vadd.f32 %v8655_v2, %v5621_v16  ;;  %v9373_v42 = vld [vmem:[#allocation81_spill] sm:$0xff] }
 0x428   : > { %v5798_v52 = vpop.f32.mrf.mxu2  ;;  %v3293_v26 = vadd.f32 %v9373_v42, %v3011_v18 }
 0x429   : > { %6004 = vst.msk [vmem:[%s8911_s11 + $0x20] sm:$0xff] %vm429_vm0, %v5972_v51  ;;  %v4905_v31 = vadd.f32 %v4861_v4, %v4623_v11  ;;  %v5874_v7 = vmul.f32 %v8889_v35, %v5798_v52  ;;  %v5688_v25 = vmax.f32 %v5656_v6, 0.0  ;;  %v4866_v10 = vpop.f32.mrf.mxu0  ;;  %v9374_v6 = vld [vmem:[#allocation94_spill] sm:$0xff] }
 0x42b   : > { %v5909_v50 = vadd.f32 %v8894_v12, %v5874_v7  ;;  %v5708_v29 = vpack.c.bf16 %v5688_v25, %v5687_v41  ;;  %v5587_v1 = vadd.f32 %v5543_v28, %v4905_v31  ;;  %v5548_v28 = vpop.f32.mrf.mxu1  ;;  %v3975_v7 = vadd.f32 %v8834_v19, %v3293_v26  ;;  %v9378_v19 = vld [vmem:[#allocation63_spill] sm:$0xff] }
 0x42d   : > { %v5941_v60 = vadd.f32 %v7135_v32, %v5909_v50  ;;  %5840 = vmatmul.bf16.gmra.mxu2 %v5708_v29  ;;  %v5622_v53 = vmul.f32 %v8648_v44, %v5587_v1  ;;  %v9376_v1 = vld [vmem:[#allocation82_spill] sm:$0xff] }
 0x42e   : > { %v4581_v40 = vpop.f32.mrf.mxu3 }
 0x42f   : > { %v5973_v57 = vmax.f32 %v5941_v60, 0.0  ;;  %v4624_v4 = vadd.f32 %v4581_v40, %v3973_v34  ;;  %v5657_v43 = vadd.f32 %v8655_v2, %v5622_v53  ;;  %v9377_v40 = vld [vmem:[#allocation51_spill] sm:$0xff] }
 0x430   : > { %v5801_v21 = vpop.f32.mrf.mxu2 }
 0x431   : > { %6005 = vst.msk [vmem:[%s8911_s11 + $0x28] sm:$0xff] %vm429_vm0, %v5973_v57  ;;  %v4906_v0 = vadd.f32 %v4863_v15, %v4624_v4  ;;  %v5875_v49 = vmul.f32 %v8889_v35, %v5801_v21  ;;  %v5689_v2 = vmax.f32 %v5657_v43, 0.0  ;;  %v4868_v15 = vpop.f32.mrf.mxu0  ;;  %v3013_v57 = vadd.f32 %v9378_v19, %v9377_v40  ;;  %v9380_v43 = vld [vmem:[#allocation55_spill] sm:$0xff] }
 0x433   : > { %v5588_v39 = vadd.f32 %v5545_v38, %v4906_v0  ;;  %v5910_v63 = vadd.f32 %v8894_v12, %v5875_v49  ;;  %v5550_v11 = vpop.f32.mrf.mxu1  ;;  %v9375_v38 = vld [vmem:[#allocation61_spill] sm:$0xff]  ;;  %v3295_v30 = vadd.f32 %v9379_v59, %v3013_v57 }
 0x434   : > { %v3012_v52 = vadd.f32 %v9375_v38, %v9374_v6  ;;  %v9382_v6 = vld [vmem:[#allocation86_spill] sm:$0xff] }
 0x435   : > { %v5623_v44 = vmul.f32 %v8976_v46, %v5588_v39  ;;  %v5942_v54 = vadd.f32 %v7137_v56, %v5910_v63  ;;  %v3977_v42 = vadd.f32 %v8858_v23, %v3295_v30 }
 0x436   : > { %v4584_v20 = vpop.f32.mrf.mxu3  ;;  %v3294_v32 = vadd.f32 %v9376_v1, %v3012_v52 }
 0x437   : > { %v5974_v9 = vmax.f32 %v5942_v54, 0.0  ;;  %v4625_v62 = vadd.f32 %v4584_v20, %v3974_v58  ;;  %v5658_v16 = vadd.f32 %v8985_v8, %v5623_v44  ;;  %v9381_v20 = vld [vmem:[#allocation65_spill] sm:$0xff] }
 0x438   : > { %v5803_v47 = vpop.f32.mrf.mxu2  ;;  %v3976_v53 = vadd.f32 %v8848_v17, %v3294_v32 }
 0x439   : > { %6006 = vst.msk [vmem:[%s8911_s11 + $0x30] sm:$0xff] %vm429_vm0, %v5974_v9  ;;  %v4907_v13 = vadd.f32 %v4866_v10, %v4625_v62  ;;  %v5876_v33 = vmul.f32 %v8889_v35, %v5803_v47  ;;  %v5690_v5 = vmax.f32 %v5658_v16, 0.0  ;;  %v4871_v34 = vpop.f32.mrf.mxu0  ;;  %v7140_v10 = vld [vmem:[%s7345_s18 + $0x40] sm:$0xff]  ;;  %v3014_v9 = vadd.f32 %v9381_v20, %v9380_v43  ;;  %v7141_v16 = vld [vmem:[%s7345_s18 + $0x48] sm:$0xff] }
 0x43b   : > { %v5911_v48 = vadd.f32 %v8894_v12, %v5876_v33  ;;  %v5709_v51 = vpack.c.bf16 %v5690_v5, %v5689_v2  ;;  %v5589_v24 = vadd.f32 %v5548_v28, %v4907_v13  ;;  %v5553_v49 = vpop.f32.mrf.mxu1  ;;  %v3296_v38 = vadd.f32 %v9382_v6, %v3014_v9 }
 0x43d   : > { %v5943_v31 = vadd.f32 %v7139_v61, %v5911_v48  ;;  %5845 = vmatmul.bf16.gmra.mxu2 %v5709_v51  ;;  %v5624_v3 = vmul.f32 %v8976_v46, %v5589_v24  ;;  %v9383_v24 = vld [vmem:[#allocation8_spill] sm:$0xff]  ;;  %v9384_v61 = vld [vmem:[#allocation67_spill] sm:$0xff] }
 0x43e   : > { %v4586_v41 = vpop.f32.mrf.mxu3 }
 0x43f   : > { %v5975_v25 = vmax.f32 %v5943_v31, 0.0  ;;  %v4626_v50 = vadd.f32 %v4586_v41, %v3975_v7  ;;  %v5659_v0 = vadd.f32 %v8985_v8, %v5624_v3  ;;  %v3015_v31 = vadd.f32 %v9384_v61, %v9383_v24  ;;  %v7142_v41 = vld [vmem:[%s7345_s18 + $0x50] sm:$0xff]  ;;  %v7147_v24 = vld [vmem:[%s7345_s18 + $0x78] sm:$0xff] }
 0x440   : > { %v5806_v29 = vpop.f32.mrf.mxu2 }
 0x441   : > { %6007 = vst.msk [vmem:[%s8911_s11 + $0x38] sm:$0xff] %vm429_vm0, %v5975_v25  ;;  %v4908_v14 = vadd.f32 %v4868_v15, %v4626_v50  ;;  %v5877_v36 = vmul.f32 %v8889_v35, %v5806_v29  ;;  %v5691_v56 = vmax.f32 %v5659_v0, 0.0  ;;  %v4873_v26 = vpop.f32.mrf.mxu0  ;;  %v3978_v50 = vadd.f32 %v8870_v37, %v3296_v38  ;;  %v7143_v0 = vld [vmem:[%s7345_s18 + $0x58] sm:$0xff] }
 0x443   : > { %v5590_v60 = vadd.f32 %v5550_v11, %v4908_v14  ;;  %v5912_v45 = vadd.f32 %v8894_v12, %v5877_v36  ;;  %v5555_v5 = vpop.f32.mrf.mxu1 }
 0x445   : > { %v5625_v4 = vmul.f32 %v8976_v46, %v5590_v60  ;;  %v5944_v21 = vadd.f32 %v7140_v10, %v5912_v45 }
 0x446   : > { %v4589_v22 = vpop.f32.mrf.mxu3 }
 0x447   : > { %v5976_v27 = vmax.f32 %v5944_v21, 0.0  ;;  %v4627_v28 = vadd.f32 %v4589_v22, %v3976_v53  ;;  %v5660_v39 = vadd.f32 %v8985_v8, %v5625_v4 }
 0x448   : > { %v5808_v63 = vpop.f32.mrf.mxu2 }
 0x449   : > { %6008 = vst.msk [vmem:[%s8911_s11 + $0x40] sm:$0xff] %vm429_vm0, %v5976_v27  ;;  %v4909_v18 = vadd.f32 %v4871_v34, %v4627_v28  ;;  %v5878_v44 = vmul.f32 %v8889_v35, %v5808_v63  ;;  %v5692_v54 = vmax.f32 %v5660_v39, 0.0  ;;  %v4876_v3 = vpop.f32.mrf.mxu0  ;;  %v9385_v34 = vld [vmem:[#allocation88_spill] sm:$0xff] }
 0x44a   : > { %v3297_v40 = vadd.f32 %v9385_v34, %v3015_v31 }
 0x44b   : > { %v5913_v17 = vadd.f32 %v8894_v12, %v5878_v44  ;;  %v5710_v58 = vpack.c.bf16 %v5692_v54, %v5691_v56  ;;  %v5591_v62 = vadd.f32 %v5553_v49, %v4909_v18  ;;  %v5558_v60 = vpop.f32.mrf.mxu1 }
 0x44c   : > { %v3979_v22 = vadd.f32 %v8880_v55, %v3297_v40 }
 0x44d   : > { %v5945_v47 = vadd.f32 %v7141_v16, %v5913_v17  ;;  %5850 = vmatmul.bf16.gmra.mxu2 %v5710_v58  ;;  %v5626_v48 = vmul.f32 %v8976_v46, %v5591_v62  ;;  %v7144_v58 = vld [vmem:[%s7345_s18 + $0x60] sm:$0xff] }
 0x44e   : > { %v4591_v13 = vpop.f32.mrf.mxu3 }
 0x44f   : > { %v5977_v33 = vmax.f32 %v5945_v47, 0.0  ;;  %v4628_v2 = vadd.f32 %v4591_v13, %v3977_v42  ;;  %v5661_v29 = vadd.f32 %v8985_v8, %v5626_v48 }
 0x450   : > { %v5811_v15 = vpop.f32.mrf.mxu2 }
 0x451   : > { %6009 = vst.msk [vmem:[%s8911_s11 + $0x48] sm:$0xff] %vm429_vm0, %v5977_v33  ;;  %v4910_v51 = vadd.f32 %v4873_v26, %v4628_v2  ;;  %v5879_v11 = vmul.f32 %v8889_v35, %v5811_v15  ;;  %v5693_v37 = vmax.f32 %v5661_v29, 0.0  ;;  %v4878_v63 = vpop.f32.mrf.mxu0  ;;  %v7145_v33 = vld [vmem:[%s7345_s18 + $0x68] sm:$0xff] }
 0x453   : > { %v5592_v52 = vadd.f32 %v5555_v5, %v4910_v51  ;;  %v5914_v23 = vadd.f32 %v8894_v12, %v5879_v11  ;;  %v5560_v56 = vpop.f32.mrf.mxu1  ;;  %v7146_v51 = vld [vmem:[%s7345_s18 + $0x70] sm:$0xff] }
 0x455   : > { %v5627_v7 = vmul.f32 %v8976_v46, %v5592_v52  ;;  %v5946_v25 = vadd.f32 %v7142_v41, %v5914_v23 }
 0x456   : > { %v4594_v14 = vpop.f32.mrf.mxu3 }
 0x457   : > { %v5978_v36 = vmax.f32 %v5946_v25, 0.0  ;;  %v4629_v1 = vadd.f32 %v4594_v14, %v3978_v50  ;;  %v5662_v32 = vadd.f32 %v8985_v8, %v5627_v7  ;;  %v7148_v50 = vld [vmem:[%s7345_s18 + $0x80] sm:$0xff] }
 0x458   : > { %v5813_v45 = vpop.f32.mrf.mxu2 }
 0x459   : > { %6010 = vst.msk [vmem:[%s8911_s11 + $0x50] sm:$0xff] %vm429_vm0, %v5978_v36  ;;  %v4911_v19 = vadd.f32 %v4876_v3, %v4629_v1  ;;  %v5880_v57 = vmul.f32 %v8889_v35, %v5813_v45  ;;  %v5694_v4 = vmax.f32 %v5662_v32, 0.0  ;;  %v7149_v32 = vld [vmem:[%s7345_s18 + $0x88] sm:$0xff] }
 0x45b   : > { %v5915_v10 = vadd.f32 %v8894_v12, %v5880_v57  ;;  %v5711_v21 = vpack.c.bf16 %v5694_v4, %v5693_v37  ;;  %v5593_v53 = vadd.f32 %v5558_v60, %v4911_v19  ;;  %v7150_v57 = vld [vmem:[%s7345_s18 + $0x90] sm:$0xff] }
 0x45d   : > { %v5947_v49 = vadd.f32 %v7143_v0, %v5915_v10  ;;  %5855 = vmatmul.bf16.gmra.mxu2 %v5711_v21  ;;  %v5628_v30 = vmul.f32 %v8976_v46, %v5593_v53  ;;  %v7151_v0 = vld [vmem:[%s7345_s18 + $0x98] sm:$0xff] }
 0x45e   : > { %v4596_v27 = vpop.f32.mrf.mxu3 }
 0x45f   : > { %v5979_v28 = vmax.f32 %v5947_v49, 0.0  ;;  %v4630_v39 = vadd.f32 %v4596_v27, %v3979_v22  ;;  %v5663_v20 = vadd.f32 %v8985_v8, %v5628_v30 }
 0x460   : > { %v5816_v59 = vpop.f32.mrf.mxu2 }
 0x461   : > { %6011 = vst.msk [vmem:[%s8911_s11 + $0x58] sm:$0xff] %vm429_vm0, %v5979_v28  ;;  %v4912_v18 = vadd.f32 %v4878_v63, %v4630_v39  ;;  %v5881_v44 = vmul.f32 %v8889_v35, %v5816_v59  ;;  %v5695_v42 = vmax.f32 %v5663_v20, 0.0  ;;  %v7152_v63 = vld [vmem:[%s7345_s18 + $0xa0] sm:$0xff] }
 0x463   : > { %v5594_v54 = vadd.f32 %v5560_v56, %v4912_v18  ;;  %v5916_v17 = vadd.f32 %v8894_v12, %v5881_v44 }
 0x465   : > { %v5629_v55 = vmul.f32 %v8976_v46, %v5594_v54  ;;  %v5948_v43 = vadd.f32 %v7144_v58, %v5916_v17  ;;  %v7153_v54 = vld [vmem:[%s7345_s18 + $0xa8] sm:$0xff] }
 0x467   : > { %v5980_v9 = vmax.f32 %v5948_v43, 0.0  ;;  %v5664_v62 = vadd.f32 %v8985_v8, %v5629_v55 }
 0x468   : > { %v5818_v16 = vpop.f32.mrf.mxu2 }
 0x469   : > { %6012 = vst.msk [vmem:[%s8911_s11 + $0x60] sm:$0xff] %vm429_vm0, %v5980_v9  ;;  %v5882_v47 = vmul.f32 %v8889_v35, %v5818_v16  ;;  %v5696_v26 = vmax.f32 %v5664_v62, 0.0  ;;  %v7154_v9 = vld [vmem:[%s7345_s18 + $0xb0] sm:$0xff] }
 0x46b   : > { %v5917_v13 = vadd.f32 %v8894_v12, %v5882_v47  ;;  %v5712_v46 = vpack.c.bf16 %v5696_v26, %v5695_v42 }
 0x46d   : > { %v5949_v2 = vadd.f32 %v7145_v33, %v5917_v13  ;;  %5860 = vmatmul.bf16.gmra.mxu2 %v5712_v46  ;;  %v7155_v13 = vld [vmem:[%s7345_s18 + $0xb8] sm:$0xff] }
 0x46f   : > { %v5981_v5 = vmax.f32 %v5949_v2, 0.0 }
 0x470   : > { %v5821_v15 = vpop.f32.mrf.mxu2 }
 0x471   : > { %6013 = vst.msk [vmem:[%s8911_s11 + $0x68] sm:$0xff] %vm429_vm0, %v5981_v5  ;;  %v5883_v8 = vmul.f32 %v8889_v35, %v5821_v15 }
 0x473   : > { %v5918_v48 = vadd.f32 %v8894_v12, %v5883_v8  ;;  %v7156_v8 = vld [vmem:[%s7345_s18 + $0xc0] sm:$0xff] }
 0x475   : > { %v5950_v11 = vadd.f32 %v7146_v51, %v5918_v48 }
 0x477   : > { %v5982_v6 = vmax.f32 %v5950_v11, 0.0 }
 0x478   : > { %v5823_v38 = vpop.f32.mrf.mxu2 }
 0x479   : > { %6014 = vst.msk [vmem:[%s8911_s11 + $0x70] sm:$0xff] %vm429_vm0, %v5982_v6  ;;  %v5884_v52 = vmul.f32 %v8889_v35, %v5823_v38 }
 0x47b   : > { %v5919_v23 = vadd.f32 %v8894_v12, %v5884_v52  ;;  %v7157_v52 = vld [vmem:[%s7345_s18 + $0xc8] sm:$0xff] }
 0x47d   : > { %v5951_v61 = vadd.f32 %v7147_v24, %v5919_v23 }
 0x47f   : > { %v5983_v31 = vmax.f32 %v5951_v61, 0.0 }
 0x480   : > { %v5826_v7 = vpop.f32.mrf.mxu2 }
 0x481   : > { %6015 = vst.msk [vmem:[%s8911_s11 + $0x78] sm:$0xff] %vm429_vm0, %v5983_v31  ;;  %v5885_v41 = vmul.f32 %v8889_v35, %v5826_v7 }
 0x483   : > { %v5920_v25 = vadd.f32 %v8894_v12, %v5885_v41  ;;  %v7158_v41 = vld [vmem:[%s7345_s18 + $0xd0] sm:$0xff] }
 0x485   : > { %v5952_v29 = vadd.f32 %v7148_v50, %v5920_v25 }
 0x487   : > { %v5984_v3 = vmax.f32 %v5952_v29, 0.0 }
 0x488   : > { %v5828_v14 = vpop.f32.mrf.mxu2 }
 0x489   : > { %6016 = vst.msk [vmem:[%s8911_s11 + $0x80] sm:$0xff] %vm429_vm0, %v5984_v3  ;;  %v5886_v36 = vmul.f32 %v8889_v35, %v5828_v14 }
 0x48b   : > { %v5921_v1 = vadd.f32 %v8894_v12, %v5886_v36  ;;  %v7159_v36 = vld [vmem:[%s7345_s18 + $0xd8] sm:$0xff] }
 0x48d   : > { %v5953_v60 = vadd.f32 %v7149_v32, %v5921_v1 }
 0x48f   : > { %v5985_v45 = vmax.f32 %v5953_v60, 0.0 }
 0x490   : > { %v5831_v34 = vpop.f32.mrf.mxu2 }
 0x491   : > { %6017 = vst.msk [vmem:[%s8911_s11 + $0x88] sm:$0xff] %vm429_vm0, %v5985_v45  ;;  %v5887_v40 = vmul.f32 %v8889_v35, %v5831_v34 }
 0x493   : > { %v5922_v19 = vadd.f32 %v8894_v12, %v5887_v40  ;;  %v7160_v40 = vld [vmem:[%s7345_s18 + $0xe0] sm:$0xff] }
 0x495   : > { %v5954_v37 = vadd.f32 %v7150_v57, %v5922_v19 }
 0x497   : > { %v5986_v4 = vmax.f32 %v5954_v37, 0.0 }
 0x498   : > { %v5833_v10 = vpop.f32.mrf.mxu2 }
 0x499   : > { %6018 = vst.msk [vmem:[%s8911_s11 + $0x90] sm:$0xff] %vm429_vm0, %v5986_v4  ;;  %v5888_v21 = vmul.f32 %v8889_v35, %v5833_v10 }
 0x49b   : > { %v5923_v53 = vadd.f32 %v8894_v12, %v5888_v21  ;;  %v7161_v21 = vld [vmem:[%s7345_s18 + $0xe8] sm:$0xff] }
 0x49d   : > { %v5955_v49 = vadd.f32 %v7151_v0, %v5923_v53 }
 0x49f   : > { %v5987_v22 = vmax.f32 %v5955_v49, 0.0 }
 0x4a0   : > { %v5836_v27 = vpop.f32.mrf.mxu2 }
 0x4a1   : > { %6019 = vst.msk [vmem:[%s8911_s11 + $0x98] sm:$0xff] %vm429_vm0, %v5987_v22  ;;  %v5889_v28 = vmul.f32 %v8889_v35, %v5836_v27 }
 0x4a3   : > { %v5924_v39 = vadd.f32 %v8894_v12, %v5889_v28  ;;  %v7162_v28 = vld [vmem:[%s7345_s18 + $0xf0] sm:$0xff] }
 0x4a5   : > { %v5956_v59 = vadd.f32 %v7152_v63, %v5924_v39 }
 0x4a7   : > { %v5988_v30 = vmax.f32 %v5956_v59, 0.0 }
 0x4a8   : > { %v5838_v18 = vpop.f32.mrf.mxu2 }
 0x4a9   : > { %6020 = vst.msk [vmem:[%s8911_s11 + $0xa0] sm:$0xff] %vm429_vm0, %v5988_v30  ;;  %v5890_v44 = vmul.f32 %v8889_v35, %v5838_v18 }
 0x4ab   : > { %v5925_v56 = vadd.f32 %v8894_v12, %v5890_v44  ;;  %v7163_v44 = vld [vmem:[%s7345_s18 + $0xf8] sm:$0xff] }
 0x4ad   : > { %v5957_v17 = vadd.f32 %v7153_v54, %v5925_v56 }
 0x4af   : > { %v5989_v55 = vmax.f32 %v5957_v17, 0.0 }
 0x4b0   : > { %v5841_v58 = vpop.f32.mrf.mxu2 }
 0x4b1   : > { %6021 = vst.msk [vmem:[%s8911_s11 + $0xa8] sm:$0xff] %vm429_vm0, %v5989_v55  ;;  %v5891_v43 = vmul.f32 %v8889_v35, %v5841_v58 }
 0x4b3   : > { %v5926_v20 = vadd.f32 %v8894_v12, %v5891_v43 }
 0x4b5   : > { %v5958_v62 = vadd.f32 %v7154_v9, %v5926_v20 }
 0x4b7   : > { %v5990_v16 = vmax.f32 %v5958_v62, 0.0 }
 0x4b8   : > { %v5843_v47 = vpop.f32.mrf.mxu2 }
 0x4b9   : > { %6022 = vst.msk [vmem:[%s8911_s11 + $0xb0] sm:$0xff] %vm429_vm0, %v5990_v16  ;;  %v5892_v42 = vmul.f32 %v8889_v35, %v5843_v47 }
 0x4bb   : > { %v5927_v26 = vadd.f32 %v8894_v12, %v5892_v42 }
 0x4bd   : > { %v5959_v46 = vadd.f32 %v7155_v13, %v5927_v26 }
 0x4bf   : > { %v5991_v33 = vmax.f32 %v5959_v46, 0.0 }
 0x4c0   : > { %v5846_v2 = vpop.f32.mrf.mxu2 }
 0x4c1   : > { %6023 = vst.msk [vmem:[%s8911_s11 + $0xb8] sm:$0xff] %vm429_vm0, %v5991_v33  ;;  %v5893_v5 = vmul.f32 %v8889_v35, %v5846_v2 }
 0x4c3   : > { %v5928_v15 = vadd.f32 %v8894_v12, %v5893_v5 }
 0x4c5   : > { %v5960_v48 = vadd.f32 %v7156_v8, %v5928_v15 }
 0x4c7   : > { %v5992_v51 = vmax.f32 %v5960_v48, 0.0 }
 0x4c8   : > { %v5848_v11 = vpop.f32.mrf.mxu2 }
 0x4c9   : > { %6024 = vst.msk [vmem:[%s8911_s11 + $0xc0] sm:$0xff] %vm429_vm0, %v5992_v51  ;;  %v5894_v6 = vmul.f32 %v8889_v35, %v5848_v11 }
 0x4cb   : > { %v5929_v38 = vadd.f32 %v8894_v12, %v5894_v6 }
 0x4cd   : > { %v5961_v23 = vadd.f32 %v7157_v52, %v5929_v38 }
 0x4cf   : > { %v5993_v24 = vmax.f32 %v5961_v23, 0.0 }
 0x4d0   : > { %v5851_v61 = vpop.f32.mrf.mxu2 }
 0x4d1   : > { %6025 = vst.msk [vmem:[%s8911_s11 + $0xc8] sm:$0xff] %vm429_vm0, %v5993_v24  ;;  %v5895_v31 = vmul.f32 %v8889_v35, %v5851_v61 }
 0x4d3   : > { %v5930_v7 = vadd.f32 %v8894_v12, %v5895_v31 }
 0x4d5   : > { %v5962_v25 = vadd.f32 %v7158_v41, %v5930_v7 }
 0x4d7   : > { %v5994_v50 = vmax.f32 %v5962_v25, 0.0 }
 0x4d8   : > { %v5853_v29 = vpop.f32.mrf.mxu2 }
 0x4d9   : > { %6026 = vst.msk [vmem:[%s8911_s11 + $0xd0] sm:$0xff] %vm429_vm0, %v5994_v50  ;;  %v5896_v3 = vmul.f32 %v8889_v35, %v5853_v29 }
 0x4db   : > { %v5931_v14 = vadd.f32 %v8894_v12, %v5896_v3 }
 0x4dd   : > { %v5963_v1 = vadd.f32 %v7159_v36, %v5931_v14 }
 0x4df   : > { %v5995_v32 = vmax.f32 %v5963_v1, 0.0 }
 0x4e0   : > { %v5856_v60 = vpop.f32.mrf.mxu2 }
 0x4e1   : > { %6027 = vst.msk [vmem:[%s8911_s11 + $0xd8] sm:$0xff] %vm429_vm0, %v5995_v32  ;;  %v5897_v45 = vmul.f32 %v8889_v35, %v5856_v60 }
 0x4e3   : > { %v5932_v34 = vadd.f32 %v8894_v12, %v5897_v45 }
 0x4e5   : > { %v5964_v19 = vadd.f32 %v7160_v40, %v5932_v34 }
 0x4e7   : > { %v5996_v57 = vmax.f32 %v5964_v19, 0.0 }
 0x4e8   : > { %v5858_v37 = vpop.f32.mrf.mxu2 }
 0x4e9   : > { %6028 = vst.msk [vmem:[%s8911_s11 + $0xe0] sm:$0xff] %vm429_vm0, %v5996_v57  ;;  %v5898_v4 = vmul.f32 %v8889_v35, %v5858_v37 }
 0x4eb   : > { %v5933_v10 = vadd.f32 %v8894_v12, %v5898_v4 }
 0x4ed   : > { %v5965_v53 = vadd.f32 %v7161_v21, %v5933_v10 }
 0x4ef   : > { %v5997_v0 = vmax.f32 %v5965_v53, 0.0 }
 0x4f0   : > { %v5861_v49 = vpop.f32.mrf.mxu2 }
 0x4f1   : > { %6029 = vst.msk [vmem:[%s8911_s11 + $0xe8] sm:$0xff] %vm429_vm0, %v5997_v0  ;;  %v5899_v22 = vmul.f32 %v8889_v35, %v5861_v49 }
 0x4f3   : > { %v5934_v27 = vadd.f32 %v8894_v12, %v5899_v22 }
 0x4f5   : > { %v5966_v39 = vadd.f32 %v7162_v28, %v5934_v27 }
 0x4f7   : > { %v5998_v63 = vmax.f32 %v5966_v39, 0.0 }
 0x4f8   : > { %v5863_v59 = vpop.f32.mrf.mxu2 }
 0x4f9   : > { %6030 = vst.msk [vmem:[%s8911_s11 + $0xf0] sm:$0xff] %vm429_vm0, %v5998_v63  ;;  %v5900_v30 = vmul.f32 %v8889_v35, %v5863_v59 }
 0x4fb   : > { %v5935_v18 = vadd.f32 %v8894_v12, %v5900_v30 }
 0x4fd   : > { %v5967_v56 = vadd.f32 %v7163_v44, %v5935_v18 }
 0x4ff   : > { %v5999_v54 = vmax.f32 %v5967_v56, 0.0 }
 0x501   : > { %6031 = vst.msk [vmem:[%s8911_s11 + $0xf8] sm:$0xff] %vm429_vm0, %v5999_v54 }
 0x502   : > { %7191 = shalt.err (!%p7188_p3)
}
 0x503   : > { %s7229_s29 = smov 128   ;;  %s7230_s11 = smov 8  }
 0x504   : > { %7080 = dma.vmem_to_hbm [thread:$0]  (%p7324_p5), %s6046_s12, 4096, %s6048_s20, %s6033_s17, %s7229_s29, %s7229_s29, %s7230_s11  }
 0x505 PF: > { %p7086_p4 = scmp.ge.s32.totalorder %s7226_s16, 2  ;;  %s6062_s26 = sand.u32 1, %s7214_s13  }
 0x506   : > { %s6063_s27 = scalar_lea.sflag [#allocation4], %s6062_s26 }
 0x507   : > { %p7083_p7 = pnand %p7086_p4, %p7328_p6 }
 0x509   : > { %p7084_p8 = pneg %p7083_p7 }
 0x50b   : > { %7209 = dma.done.wait (%p7084_p8), %s6063_s27, 4096  }
 0x50c   : > { %7211 = vsyncadd (%p7084_p8), %s6063_s27, 4294963200  ;;  %p20_p9 = scmp.ge.s32.totalorder %s7311_s19, 4   ;;  %s9386_s13 = smov %s7218_s14 }
 0x50d   : > { %s9387_s14 = smov %s7222_s15  ;;  %s9388_s15 = smov %s7322_s22 }
 0x50e   : > { %s9389_s16 = smov %s7311_s19  ;;  %22 = sbr.rel (!%p20_p9) target bundleno = 3 (0x3), region = 106 }
 0x513   :  { %6069 = vsyncpa [#allocation4], 1 }
 0x514   :  { %6071 = vsyncpa [#allocation4 + $0x1], 1 }

</bundles_post_ra>
